<compile_context>
chip_gen: v7x
topology: tpu7x:2x2x1
jax: 0.10.0
libtpu: 0.0.40
codegen_flags: <defaults>
</compile_context>

<pallas_src>
import math

import jax
import jax.numpy as jnp
from jax import lax
from jax.experimental import pallas as pl
from jax.experimental.pallas import tpu as pltpu

# ----------------------------------------------------------------------------
# Model hyper-parameters (small, consistent with the module's __init__)
# ----------------------------------------------------------------------------
D_MODEL = 32          # input_size (d_model)
HIDDEN = 64           # hidden_size (d_ff)
NUM_LAYERS = 2
MAX_SEQ = 8           # max_sequence
ENC_VOCAB = 16
DEC_VOCAB = 16
NUM_HEADS = 4
HEAD_DIM = D_MODEL // NUM_HEADS
BATCH = 2
SEQ = MAX_SEQ
BS = BATCH * SEQ      # rows per (folded-batch) activation block
EPS = 1e-5            # nn.LayerNorm default eps
LANE = 128            # lane width; output head padded to this

assert D_MODEL % NUM_HEADS == 0

# Dropout is identity at inference time (eval mode) -> not applied.

# ----------------------------------------------------------------------------
# Static weight-slab layout: name -> (rows, cols), packed along rows into a
# single (SLAB_ROWS, 128) f32 array.  Every block is padded to a multiple of
# 8 rows so all in-kernel loads are sublane-aligned.
# ----------------------------------------------------------------------------
def _round8(n):
    return (n + 7) & ~7


def _build_layout():
    lay = []
    for l in range(NUM_LAYERS):
        lay += [
            (f"e{l}_attn", D_MODEL, 4 * D_MODEL),   # [Wq | Wk | Wv | Wo], (in,out)
            (f"e{l}_ln1", 2, D_MODEL),              # row0 = gamma, row1 = beta
            (f"e{l}_w1", D_MODEL, HIDDEN),
            (f"e{l}_b1", 1, HIDDEN),
            (f"e{l}_w2", HIDDEN, D_MODEL),
            (f"e{l}_b2", 1, D_MODEL),
            (f"e{l}_ln2", 2, D_MODEL),
        ]
    for l in range(NUM_LAYERS):
        lay += [
            (f"d{l}_sattn", D_MODEL, 4 * D_MODEL),
            (f"d{l}_ln1", 2, D_MODEL),
            (f"d{l}_cattn", D_MODEL, 4 * D_MODEL),
            (f"d{l}_ln2", 2, D_MODEL),
            (f"d{l}_w1", D_MODEL, HIDDEN),
            (f"d{l}_b1", 1, HIDDEN),
            (f"d{l}_w2", HIDDEN, D_MODEL),
            (f"d{l}_b2", 1, D_MODEL),
            (f"d{l}_ln3", 2, D_MODEL),
        ]
    lay += [
        ("out_w", D_MODEL, LANE),   # true width DEC_VOCAB, zero-padded to 128 lanes
        ("out_b", 1, LANE),
    ]
    return lay


_LAYOUT = _build_layout()
_SHAPES = {n: (r, c) for n, r, c in _LAYOUT}
_OFFSETS = {}
_row = 0
for _n, _r, _c in _LAYOUT:
    _OFFSETS[_n] = _row
    _row += _round8(_r)
SLAB_ROWS = _row


# ----------------------------------------------------------------------------
# Fused forward kernel: whole model (2 encoder + 2 decoder layers + output
# head) for the whole (folded) batch in one kernel invocation.
# ----------------------------------------------------------------------------
def _fused_forward_kernel(x_ref, w_ref, o_ref):
    f32 = jnp.float32

    def blk(name):
        off = _OFFSETS[name]
        nr, nc = _SHAPES[name]
        return w_ref[off:off + nr, 0:nc]

    # -------------------- masks / constants (built once, hoisted) ----------
    # Per-head column mask for the row-stacked-heads trick: row block h of the
    # stacked Q keeps only the columns belonging to head h.
    col = lax.broadcasted_iota(jnp.int32, (BS, D_MODEL), 1)
    head_mask = jnp.concatenate(
        [((col >= h * HEAD_DIM) & (col < (h + 1) * HEAD_DIM)).astype(f32)
         for h in range(NUM_HEADS)], axis=0)                       # (H*BS, D)

    # Batch-block additive mask (keeps folded batches independent) and the
    # causal tril multiplicative mask (reference semantics: score *= mask).
    rows = lax.broadcasted_iota(jnp.int32, (BS, BS), 0)
    cols = lax.broadcasted_iota(jnp.int32, (BS, BS), 1)
    same_b = jnp.zeros((BS, BS), jnp.bool_)
    pos_r = jnp.zeros((BS, BS), jnp.int32)
    pos_c = jnp.zeros((BS, BS), jnp.int32)
    for b in range(BATCH):                                         # static loop
        in_r = (rows >= b * SEQ) & (rows < (b + 1) * SEQ)
        in_c = (cols >= b * SEQ) & (cols < (b + 1) * SEQ)
        same_b = same_b | (in_r & in_c)
        pos_r = jnp.where(in_r, rows - b * SEQ, pos_r)
        pos_c = jnp.where(in_c, cols - b * SEQ, pos_c)
    batch_add = jnp.where(same_b, f32(0.0), f32(-1e30))            # (BS, BS)
    # TODO(synk): reference tril mask is multiplicative (score *= mask), so
    # future positions become score 0, not -inf — kept faithfully.
    tril_mult = (pos_r >= pos_c).astype(f32)                       # (BS, BS)
    batch_add_s = jnp.concatenate([batch_add] * NUM_HEADS, axis=0)  # (H*BS, BS)
    tril_mult_s = jnp.concatenate([tril_mult] * NUM_HEADS, axis=0)  # (H*BS, BS)

    # TODO(synk): reference scales by sqrt(self.input) (undefined attr);
    # intended 1/sqrt(d_model) used (differs from per-head 1/sqrt(head_dim)).
    scale = f32(1.0 / math.sqrt(D_MODEL))

    # -------------------- fused building blocks ----------------------------
    def layernorm(z, name):
        off = _OFFSETS[name]
        g = w_ref[off:off + 1, 0:D_MODEL]
        b = w_ref[off + 1:off + 2, 0:D_MODEL]
        mean = jnp.mean(z, axis=-1, keepdims=True)
        c = z - mean
        var = jnp.mean(c * c, axis=-1, keepdims=True)
        return c * lax.rsqrt(var + EPS) * g + b

    def mha(x_q, x_kv, name, tril_m):
        """Multi-head attention on the folded (BS, D) streams.

        Heads are batched by stacking H column-masked copies of Q along the
        row (sublane) axis, so the score and context computations are each a
        single MXU matmul; the batch-block additive mask keeps the folded
        batches independent (exactly equivalent to per-batch softmax).
        """
        # TODO(synk): reference declares nn.Linear(input_size, bias=False)
        # (missing out_features) and reuses query_linear for K/V; intended
        # separate square Q/K/V/O projections used, stored as (in, out).
        off = _OFFSETS[name]
        wq = w_ref[off:off + D_MODEL, 0 * D_MODEL:1 * D_MODEL]
        wk = w_ref[off:off + D_MODEL, 1 * D_MODEL:2 * D_MODEL]
        wv = w_ref[off:off + D_MODEL, 2 * D_MODEL:3 * D_MODEL]
        wo = w_ref[off:off + D_MODEL, 3 * D_MODEL:4 * D_MODEL]

        q = jnp.dot(x_q, wq, preferred_element_type=f32)            # (BS, D)
        k = jnp.dot(x_kv, wk, preferred_element_type=f32)           # (BS, D)
        v = jnp.dot(x_kv, wv, preferred_element_type=f32)           # (BS, D)

        # Row-stacked, per-head column-masked Q: one matmul gives every
        # head's (BS, BS) score block.
        q_s = jnp.concatenate([q] * NUM_HEADS, axis=0) * head_mask  # (H*BS, D)
        s = lax.dot_general(q_s, k, (((1,), (1,)), ((), ())),
                            preferred_element_type=f32) * scale     # (H*BS, BS)
        if tril_m is not None:
            s = s * tril_m                  # multiplicative, as in the reference
        s = s + batch_add_s                 # -1e30 off the batch-diagonal blocks

        m = jnp.max(s, axis=-1, keepdims=True)
        e = jnp.exp(s - m)
        p = e / jnp.sum(e, axis=-1, keepdims=True)                  # exact softmax

        ctx = jnp.dot(p, v, preferred_element_type=f32)             # (H*BS, D)
        ctx = ctx * head_mask               # keep only head h's columns per block
        merged = ctx[0:BS]
        for h in range(1, NUM_HEADS):
            merged = merged + ctx[h * BS:(h + 1) * BS]              # (BS, D)
        return jnp.dot(merged, wo, preferred_element_type=f32)

    def ffn(z, prefix):
        w1 = blk(prefix + "_w1")
        b1 = blk(prefix + "_b1")
        w2 = blk(prefix + "_w2")
        b2 = blk(prefix + "_b2")
        h = jnp.maximum(jnp.dot(z, w1, preferred_element_type=f32) + b1, 0.0)
        return jnp.dot(h, w2, preferred_element_type=f32) + b2

    # -------------------- forward pass --------------------------------------
    x_all = x_ref[...]                       # (2*BS, D): enc rows then dec rows
    x = x_all[0:BS]                          # encoder stream (BS, D)
    y = x_all[BS:2 * BS]                     # decoder stream (BS, D)

    # Encoder stack (no mask in the reference encoder self-attention).
    for l in range(NUM_LAYERS):              # static unroll
        attn = mha(x, x, f"e{l}_attn", None)
        x = layernorm(x + attn, f"e{l}_ln1")
        # TODO(synk): reference computes `self.dropout(self.feed_forward_block)`
        # (a Module, not a call); intended ff(x) used.
        f = ffn(x, f"e{l}")
        x = layernorm(x + f, f"e{l}_ln2")
    enc_out = x

    # Decoder stack.
    for l in range(NUM_LAYERS):
        sa = mha(y, y, f"d{l}_sattn", tril_mult_s)
        y = layernorm(y + sa, f"d{l}_ln1")
        # TODO(synk): reference calls cross-attention as (q=enc, k=enc, v=dec);
        # standard/intended q=decoder stream, k=v=encoder output used here.
        ca = mha(y, enc_out, f"d{l}_cattn", None)
        y = layernorm(y + ca, f"d{l}_ln2")
        f = ffn(y, f"d{l}")
        y = layernorm(y + f, f"d{l}_ln3")

    # Output projection (no softmax, as in the reference).  Lane-dense 128-wide
    # store; the true DEC_VOCAB columns are sliced out in the wrapper.
    wout = blk("out_w")
    bout = blk("out_b")
    o_ref[...] = jnp.dot(y, wout, preferred_element_type=f32) + bout


# ----------------------------------------------------------------------------
# pallas_call wrapper — a single launch, no grid, everything resident in VMEM
# ----------------------------------------------------------------------------
def slr_forward_fused(slab, enc_x, dec_x):
    B, S, D = enc_x.shape
    # Fold batch and fuse both token streams into one lane-/sublane-friendly
    # activation block: rows [0, B*S) = encoder, rows [B*S, 2*B*S) = decoder.
    x = jnp.concatenate(
        [enc_x.reshape(B * S, D), dec_x.reshape(B * S, D)], axis=0)

    out = pl.pallas_call(
        _fused_forward_kernel,
        out_shape=jax.ShapeDtypeStruct((B * S, LANE), jnp.float32),
        in_specs=[
            pl.BlockSpec(memory_space=pltpu.MemorySpace.VMEM),   # activations
            pl.BlockSpec(memory_space=pltpu.MemorySpace.VMEM),   # weight slab
        ],
        out_specs=pl.BlockSpec(memory_space=pltpu.MemorySpace.VMEM),
    )(x, slab)

    return out.reshape(B, S, LANE)[..., :DEC_VOCAB]


# ----------------------------------------------------------------------------
# Parameter construction (deterministic); weights stored pre-transposed as
# (in_features, out_features) and packed into the single lane-dense slab.
# ----------------------------------------------------------------------------
def _pack_slab(tensors):
    slab = jnp.zeros((SLAB_ROWS, LANE), jnp.float32)
    for name, nr, nc in _LAYOUT:
        mat = jnp.asarray(tensors[name], jnp.float32).reshape(nr, nc)
        slab = slab.at[_OFFSETS[name]:_OFFSETS[name] + nr, 0:nc].set(mat)
    return slab


def _init_params(key):
    keys = iter(jax.random.split(key, 64))

    def nrm(shape, scale=0.02):
        return scale * jax.random.normal(next(keys), shape, dtype=jnp.float32)

    ln_init = jnp.concatenate(
        [jnp.ones((1, D_MODEL), jnp.float32), jnp.zeros((1, D_MODEL), jnp.float32)],
        axis=0)                                           # row0 gamma, row1 beta

    tensors = {}
    for l in range(NUM_LAYERS):
        tensors[f"e{l}_attn"] = nrm((D_MODEL, 4 * D_MODEL))
        tensors[f"e{l}_ln1"] = ln_init
        tensors[f"e{l}_w1"] = nrm((D_MODEL, HIDDEN))
        tensors[f"e{l}_b1"] = jnp.zeros((1, HIDDEN), jnp.float32)
        tensors[f"e{l}_w2"] = nrm((HIDDEN, D_MODEL))
        tensors[f"e{l}_b2"] = jnp.zeros((1, D_MODEL), jnp.float32)
        tensors[f"e{l}_ln2"] = ln_init
    for l in range(NUM_LAYERS):
        tensors[f"d{l}_sattn"] = nrm((D_MODEL, 4 * D_MODEL))
        tensors[f"d{l}_ln1"] = ln_init
        tensors[f"d{l}_cattn"] = nrm((D_MODEL, 4 * D_MODEL))
        tensors[f"d{l}_ln2"] = ln_init
        tensors[f"d{l}_w1"] = nrm((D_MODEL, HIDDEN))
        tensors[f"d{l}_b1"] = jnp.zeros((1, HIDDEN), jnp.float32)
        tensors[f"d{l}_w2"] = nrm((HIDDEN, D_MODEL))
        tensors[f"d{l}_b2"] = jnp.zeros((1, D_MODEL), jnp.float32)
        tensors[f"d{l}_ln3"] = ln_init

    out_w = jnp.zeros((D_MODEL, LANE), jnp.float32)
    out_w = out_w.at[:, :DEC_VOCAB].set(nrm((D_MODEL, DEC_VOCAB)))
    tensors["out_w"] = out_w
    tensors["out_b"] = jnp.zeros((1, LANE), jnp.float32)

    return {
        "enc_embed": jax.random.normal(next(keys), (ENC_VOCAB, D_MODEL),
                                       dtype=jnp.float32),
        "dec_embed": jax.random.normal(next(keys), (DEC_VOCAB, D_MODEL),
                                       dtype=jnp.float32),
        "slab": _pack_slab(tensors),
    }


def _positional_encoding():
    even = jnp.arange(0, D_MODEL, 2, dtype=jnp.float32)
    pos = jnp.arange(MAX_SEQ, dtype=jnp.float32)[:, None]
    denom = jnp.power(10000.0, even / D_MODEL)
    pe = jnp.zeros((MAX_SEQ, D_MODEL), jnp.float32)
    pe = pe.at[:, 0::2].set(jnp.sin(pos / denom))
    pe = pe.at[:, 1::2].set(jnp.cos(pos / denom))
    return pe


# ----------------------------------------------------------------------------
# Forward pass (embedding gather + positional encoding are plain-JAX glue;
# the rest is one fused Pallas kernel launch)
# ----------------------------------------------------------------------------
@jax.jit
def slr_transformer_forward(params, encoder_input, decoder_input):
    pe = _positional_encoding()
    enc_x = jnp.take(params["enc_embed"], encoder_input, axis=0)   # (B, S, D)
    dec_x = jnp.take(params["dec_embed"], decoder_input, axis=0)   # (B, S, D)
    # TODO(synk): reference adds `pe[:, x.size(1)]` (single position); intended
    # slice pe[:seq_len] used.
    enc_x = enc_x + pe[None, :SEQ, :]
    dec_x = dec_x + pe[None, :SEQ, :]
    return slr_forward_fused(params["slab"], enc_x, dec_x)


# ----------------------------------------------------------------------------
if __name__ == "__main__":
    key = jax.random.PRNGKey(0)
    k_par, k_enc, k_dec = jax.random.split(key, 3)

    params = _init_params(k_par)
    encoder_input = jax.random.randint(k_enc, (BATCH, SEQ), 0, ENC_VOCAB, jnp.int32)
    decoder_input = jax.random.randint(k_dec, (BATCH, SEQ), 0, DEC_VOCAB, jnp.int32)

    out = slr_transformer_forward(params, encoder_input, decoder_input)
    out = jax.block_until_ready(out)

    assert out.shape == (BATCH, SEQ, DEC_VOCAB), out.shape
    assert bool(jnp.all(jnp.isfinite(out)))
    print("KERNEL_OK")
</pallas_src>

<mosaic_0001>
module attributes {stable_mosaic.version = 11 : i64} {
  func.func @_fused_forward_kernel(%arg0: memref<32x32xf32, #tpu.memory_space<vmem>>, %arg1: memref<760x128xf32, #tpu.memory_space<vmem>>, %arg2: memref<16x128xf32, #tpu.memory_space<vmem>>) attributes {dimension_semantics = [], scalar_prefetch = 0 : i64, scratch_operands = 0 : i64, tpu.core_type = #tpu.core_type<tc>} {
    %0 = tpu.iota {dimensions = array<i32: 1>} : vector<16x32xi32>
    %c0_i32 = arith.constant 0 : i32
    %1 = vector.broadcast %c0_i32 : i32 to vector<16x32xi32>
    %2 = arith.cmpi sge, %0, %1 : vector<16x32xi32>
    %c8_i32 = arith.constant 8 : i32
    %3 = vector.broadcast %c8_i32 : i32 to vector<16x32xi32>
    %4 = arith.cmpi slt, %0, %3 : vector<16x32xi32>
    %5 = arith.andi %2, %4 : vector<16x32xi1>
    %6 = arith.extui %5 : vector<16x32xi1> to vector<16x32xi32>
    %7 = arith.sitofp %6 : vector<16x32xi32> to vector<16x32xf32>
    %c8_i32_0 = arith.constant 8 : i32
    %8 = vector.broadcast %c8_i32_0 : i32 to vector<16x32xi32>
    %9 = arith.cmpi sge, %0, %8 : vector<16x32xi32>
    %c16_i32 = arith.constant 16 : i32
    %10 = vector.broadcast %c16_i32 : i32 to vector<16x32xi32>
    %11 = arith.cmpi slt, %0, %10 : vector<16x32xi32>
    %12 = arith.andi %9, %11 : vector<16x32xi1>
    %13 = arith.extui %12 : vector<16x32xi1> to vector<16x32xi32>
    %14 = arith.sitofp %13 : vector<16x32xi32> to vector<16x32xf32>
    %c16_i32_1 = arith.constant 16 : i32
    %15 = vector.broadcast %c16_i32_1 : i32 to vector<16x32xi32>
    %16 = arith.cmpi sge, %0, %15 : vector<16x32xi32>
    %c24_i32 = arith.constant 24 : i32
    %17 = vector.broadcast %c24_i32 : i32 to vector<16x32xi32>
    %18 = arith.cmpi slt, %0, %17 : vector<16x32xi32>
    %19 = arith.andi %16, %18 : vector<16x32xi1>
    %20 = arith.extui %19 : vector<16x32xi1> to vector<16x32xi32>
    %21 = arith.sitofp %20 : vector<16x32xi32> to vector<16x32xf32>
    %c24_i32_2 = arith.constant 24 : i32
    %22 = vector.broadcast %c24_i32_2 : i32 to vector<16x32xi32>
    %23 = arith.cmpi sge, %0, %22 : vector<16x32xi32>
    %c32_i32 = arith.constant 32 : i32
    %24 = vector.broadcast %c32_i32 : i32 to vector<16x32xi32>
    %25 = arith.cmpi slt, %0, %24 : vector<16x32xi32>
    %26 = arith.andi %23, %25 : vector<16x32xi1>
    %27 = arith.extui %26 : vector<16x32xi1> to vector<16x32xi32>
    %28 = arith.sitofp %27 : vector<16x32xi32> to vector<16x32xf32>
    %29 = tpu.concatenate %7, %14, %21, %28 in 0 : vector<16x32xf32>, vector<16x32xf32>, vector<16x32xf32>, vector<16x32xf32> -> vector<64x32xf32>
    %30 = tpu.iota {dimensions = array<i32: 0>} : vector<16x16xi32>
    %31 = tpu.iota {dimensions = array<i32: 1>} : vector<16x16xi32>
    %false = arith.constant false
    %32 = vector.broadcast %false : i1 to vector<16x16xi1>
    %c0_i32_3 = arith.constant 0 : i32
    %33 = vector.broadcast %c0_i32_3 : i32 to vector<16x16xi32>
    %c0_i32_4 = arith.constant 0 : i32
    %34 = vector.broadcast %c0_i32_4 : i32 to vector<16x16xi32>
    %c0_i32_5 = arith.constant 0 : i32
    %35 = vector.broadcast %c0_i32_5 : i32 to vector<16x16xi32>
    %36 = arith.cmpi sge, %30, %35 : vector<16x16xi32>
    %c8_i32_6 = arith.constant 8 : i32
    %37 = vector.broadcast %c8_i32_6 : i32 to vector<16x16xi32>
    %38 = arith.cmpi slt, %30, %37 : vector<16x16xi32>
    %39 = arith.andi %36, %38 : vector<16x16xi1>
    %c0_i32_7 = arith.constant 0 : i32
    %40 = vector.broadcast %c0_i32_7 : i32 to vector<16x16xi32>
    %41 = arith.cmpi sge, %31, %40 : vector<16x16xi32>
    %c8_i32_8 = arith.constant 8 : i32
    %42 = vector.broadcast %c8_i32_8 : i32 to vector<16x16xi32>
    %43 = arith.cmpi slt, %31, %42 : vector<16x16xi32>
    %44 = arith.andi %41, %43 : vector<16x16xi1>
    %45 = arith.andi %39, %44 : vector<16x16xi1>
    %46 = arith.ori %32, %45 : vector<16x16xi1>
    %c0_i32_9 = arith.constant 0 : i32
    %47 = vector.broadcast %c0_i32_9 : i32 to vector<16x16xi32>
    %48 = arith.subi %30, %47 : vector<16x16xi32>
    %49 = arith.select %39, %48, %33 : vector<16x16xi1>, vector<16x16xi32>
    %c0_i32_10 = arith.constant 0 : i32
    %50 = vector.broadcast %c0_i32_10 : i32 to vector<16x16xi32>
    %51 = arith.subi %31, %50 : vector<16x16xi32>
    %52 = arith.select %44, %51, %34 : vector<16x16xi1>, vector<16x16xi32>
    %c8_i32_11 = arith.constant 8 : i32
    %53 = vector.broadcast %c8_i32_11 : i32 to vector<16x16xi32>
    %54 = arith.cmpi sge, %30, %53 : vector<16x16xi32>
    %c16_i32_12 = arith.constant 16 : i32
    %55 = vector.broadcast %c16_i32_12 : i32 to vector<16x16xi32>
    %56 = arith.cmpi slt, %30, %55 : vector<16x16xi32>
    %57 = arith.andi %54, %56 : vector<16x16xi1>
    %c8_i32_13 = arith.constant 8 : i32
    %58 = vector.broadcast %c8_i32_13 : i32 to vector<16x16xi32>
    %59 = arith.cmpi sge, %31, %58 : vector<16x16xi32>
    %c16_i32_14 = arith.constant 16 : i32
    %60 = vector.broadcast %c16_i32_14 : i32 to vector<16x16xi32>
    %61 = arith.cmpi slt, %31, %60 : vector<16x16xi32>
    %62 = arith.andi %59, %61 : vector<16x16xi1>
    %63 = arith.andi %57, %62 : vector<16x16xi1>
    %64 = arith.ori %46, %63 : vector<16x16xi1>
    %c8_i32_15 = arith.constant 8 : i32
    %65 = vector.broadcast %c8_i32_15 : i32 to vector<16x16xi32>
    %66 = arith.subi %30, %65 : vector<16x16xi32>
    %67 = arith.select %57, %66, %49 : vector<16x16xi1>, vector<16x16xi32>
    %c8_i32_16 = arith.constant 8 : i32
    %68 = vector.broadcast %c8_i32_16 : i32 to vector<16x16xi32>
    %69 = arith.subi %31, %68 : vector<16x16xi32>
    %70 = arith.select %62, %69, %52 : vector<16x16xi1>, vector<16x16xi32>
    %cst = arith.constant 0.000000e+00 : f32
    %cst_17 = arith.constant -1.000000e+30 : f32
    %71 = vector.broadcast %cst : f32 to vector<16x16xf32>
    %72 = vector.broadcast %cst_17 : f32 to vector<16x16xf32>
    %73 = arith.select %64, %71, %72 : vector<16x16xi1>, vector<16x16xf32>
    %74 = arith.cmpi sge, %67, %70 : vector<16x16xi32>
    %75 = arith.extui %74 : vector<16x16xi1> to vector<16x16xi32>
    %76 = arith.sitofp %75 : vector<16x16xi32> to vector<16x16xf32>
    %77 = tpu.concatenate %73, %73, %73, %73 in 0 : vector<16x16xf32>, vector<16x16xf32>, vector<16x16xf32>, vector<16x16xf32> -> vector<64x16xf32>
    %78 = tpu.concatenate %76, %76, %76, %76 in 0 : vector<16x16xf32>, vector<16x16xf32>, vector<16x16xf32>, vector<16x16xf32> -> vector<64x16xf32>
    %c0 = arith.constant 0 : index
    %c0_18 = arith.constant 0 : index
    %79 = vector.load %arg0[%c0, %c0_18] : memref<32x32xf32, #tpu.memory_space<vmem>>, vector<32x32xf32>
    %80 = vector.extract_strided_slice %79 {offsets = [0, 0], sizes = [16, 32], strides = [1, 1]} : vector<32x32xf32> to vector<16x32xf32>
    %81 = vector.extract_strided_slice %79 {offsets = [16, 0], sizes = [16, 32], strides = [1, 1]} : vector<32x32xf32> to vector<16x32xf32>
    %c0_19 = arith.constant 0 : index
    %c0_20 = arith.constant 0 : index
    %82 = vector.load %arg1[%c0_19, %c0_20] : memref<760x128xf32, #tpu.memory_space<vmem>>, vector<32x32xf32>
    %c0_21 = arith.constant 0 : index
    %c32 = arith.constant 32 : index
    %83 = vector.load %arg1[%c0_21, %c32] : memref<760x128xf32, #tpu.memory_space<vmem>>, vector<32x32xf32>
    %c0_22 = arith.constant 0 : index
    %c64 = arith.constant 64 : index
    %84 = vector.load %arg1[%c0_22, %c64] : memref<760x128xf32, #tpu.memory_space<vmem>>, vector<32x32xf32>
    %c0_23 = arith.constant 0 : index
    %c96 = arith.constant 96 : index
    %85 = vector.load %arg1[%c0_23, %c96] : memref<760x128xf32, #tpu.memory_space<vmem>>, vector<32x32xf32>
    %cst_24 = arith.constant dense<0.000000e+00> : vector<16x32xf32>
    %86 = tpu.matmul %80, %82, %cst_24 {dimension_numbers = #tpu.dot_dimension_numbers<[1], [0], [0], [1], [0, 0, 1, 1], [], []>} : vector<16x32xf32>, vector<32x32xf32>, vector<16x32xf32> -> vector<16x32xf32>
    %cst_25 = arith.constant dense<0.000000e+00> : vector<16x32xf32>
    %87 = tpu.matmul %80, %83, %cst_25 {dimension_numbers = #tpu.dot_dimension_numbers<[1], [0], [0], [1], [0, 0, 1, 1], [], []>} : vector<16x32xf32>, vector<32x32xf32>, vector<16x32xf32> -> vector<16x32xf32>
    %cst_26 = arith.constant dense<0.000000e+00> : vector<16x32xf32>
    %88 = tpu.matmul %80, %84, %cst_26 {dimension_numbers = #tpu.dot_dimension_numbers<[1], [0], [0], [1], [0, 0, 1, 1], [], []>} : vector<16x32xf32>, vector<32x32xf32>, vector<16x32xf32> -> vector<16x32xf32>
    %89 = tpu.concatenate %86, %86, %86, %86 in 0 : vector<16x32xf32>, vector<16x32xf32>, vector<16x32xf32>, vector<16x32xf32> -> vector<64x32xf32>
    %90 = arith.mulf %89, %29 : vector<64x32xf32>
    %cst_27 = arith.constant dense<0.000000e+00> : vector<64x16xf32>
    %91 = tpu.matmul %90, %87, %cst_27 {dimension_numbers = #tpu.dot_dimension_numbers<[1], [1], [0], [0], [0, 0, 1, 0], [], []>} : vector<64x32xf32>, vector<16x32xf32>, vector<64x16xf32> -> vector<64x16xf32>
    %cst_28 = arith.constant 0.176776692 : f32
    %92 = vector.broadcast %cst_28 : f32 to vector<64x16xf32>
    %93 = arith.mulf %91, %92 : vector<64x16xf32>
    %94 = arith.addf %93, %77 : vector<64x16xf32>
    %cst_29 = arith.constant dense<0xFF800000> : vector<64xf32>
    %95 = vector.multi_reduction <maximumf>, %94, %cst_29 [1] : vector<64x16xf32> to vector<64xf32>
    %96 = vector.shape_cast %95 : vector<64xf32> to vector<64x1xf32>
    %97 = vector.broadcast %96 : vector<64x1xf32> to vector<64x16xf32>
    %98 = arith.subf %94, %97 : vector<64x16xf32>
    %99 = math.exp %98 : vector<64x16xf32>
    %cst_30 = arith.constant dense<0.000000e+00> : vector<64xf32>
    %100 = vector.multi_reduction <add>, %99, %cst_30 [1] : vector<64x16xf32> to vector<64xf32>
    %101 = vector.shape_cast %100 : vector<64xf32> to vector<64x1xf32>
    %102 = vector.broadcast %101 : vector<64x1xf32> to vector<64x16xf32>
    %103 = arith.divf %99, %102 : vector<64x16xf32>
    %cst_31 = arith.constant dense<0.000000e+00> : vector<64x32xf32>
    %104 = tpu.matmul %103, %88, %cst_31 {dimension_numbers = #tpu.dot_dimension_numbers<[1], [0], [0], [1], [0, 0, 1, 1], [], []>} : vector<64x16xf32>, vector<16x32xf32>, vector<64x32xf32> -> vector<64x32xf32>
    %105 = arith.mulf %104, %29 : vector<64x32xf32>
    %106 = vector.extract_strided_slice %105 {offsets = [0, 0], sizes = [16, 32], strides = [1, 1]} : vector<64x32xf32> to vector<16x32xf32>
    %107 = vector.extract_strided_slice %105 {offsets = [16, 0], sizes = [16, 32], strides = [1, 1]} : vector<64x32xf32> to vector<16x32xf32>
    %108 = arith.addf %106, %107 : vector<16x32xf32>
    %109 = vector.extract_strided_slice %105 {offsets = [32, 0], sizes = [16, 32], strides = [1, 1]} : vector<64x32xf32> to vector<16x32xf32>
    %110 = arith.addf %108, %109 : vector<16x32xf32>
    %111 = vector.extract_strided_slice %105 {offsets = [48, 0], sizes = [16, 32], strides = [1, 1]} : vector<64x32xf32> to vector<16x32xf32>
    %112 = arith.addf %110, %111 : vector<16x32xf32>
    %cst_32 = arith.constant dense<0.000000e+00> : vector<16x32xf32>
    %113 = tpu.matmul %112, %85, %cst_32 {dimension_numbers = #tpu.dot_dimension_numbers<[1], [0], [0], [1], [0, 0, 1, 1], [], []>} : vector<16x32xf32>, vector<32x32xf32>, vector<16x32xf32> -> vector<16x32xf32>
    %114 = arith.addf %80, %113 : vector<16x32xf32>
    %c32_33 = arith.constant 32 : index
    %c0_34 = arith.constant 0 : index
    %115 = vector.load %arg1[%c32_33, %c0_34] : memref<760x128xf32, #tpu.memory_space<vmem>>, vector<1x32xf32>
    %c33 = arith.constant 33 : index
    %c0_35 = arith.constant 0 : index
    %116 = vector.load %arg1[%c33, %c0_35] : memref<760x128xf32, #tpu.memory_space<vmem>>, vector<1x32xf32>
    %cst_36 = arith.constant dense<0.000000e+00> : vector<16xf32>
    %117 = vector.multi_reduction <add>, %114, %cst_36 [1] : vector<16x32xf32> to vector<16xf32>
    %118 = vector.shape_cast %117 : vector<16xf32> to vector<16x1xf32>
    %cst_37 = arith.constant 3.200000e+01 : f32
    %119 = vector.broadcast %cst_37 : f32 to vector<16x1xf32>
    %120 = arith.divf %118, %119 : vector<16x1xf32>
    %121 = vector.broadcast %120 : vector<16x1xf32> to vector<16x32xf32>
    %122 = arith.subf %114, %121 : vector<16x32xf32>
    %123 = arith.mulf %122, %122 : vector<16x32xf32>
    %cst_38 = arith.constant dense<0.000000e+00> : vector<16xf32>
    %124 = vector.multi_reduction <add>, %123, %cst_38 [1] : vector<16x32xf32> to vector<16xf32>
    %125 = vector.shape_cast %124 : vector<16xf32> to vector<16x1xf32>
    %cst_39 = arith.constant 3.200000e+01 : f32
    %126 = vector.broadcast %cst_39 : f32 to vector<16x1xf32>
    %127 = arith.divf %125, %126 : vector<16x1xf32>
    %cst_40 = arith.constant 9.99999974E-6 : f32
    %128 = vector.broadcast %cst_40 : f32 to vector<16x1xf32>
    %129 = arith.addf %127, %128 : vector<16x1xf32>
    %130 = math.rsqrt %129 : vector<16x1xf32>
    %131 = vector.broadcast %130 : vector<16x1xf32> to vector<16x32xf32>
    %132 = arith.mulf %122, %131 : vector<16x32xf32>
    %133 = vector.broadcast %115 : vector<1x32xf32> to vector<16x32xf32>
    %134 = arith.mulf %132, %133 : vector<16x32xf32>
    %135 = vector.broadcast %116 : vector<1x32xf32> to vector<16x32xf32>
    %136 = arith.addf %134, %135 : vector<16x32xf32>
    %c40 = arith.constant 40 : index
    %c0_41 = arith.constant 0 : index
    %137 = vector.load %arg1[%c40, %c0_41] : memref<760x128xf32, #tpu.memory_space<vmem>>, vector<32x64xf32>
    %c72 = arith.constant 72 : index
    %c0_42 = arith.constant 0 : index
    %138 = vector.load %arg1[%c72, %c0_42] : memref<760x128xf32, #tpu.memory_space<vmem>>, vector<1x64xf32>
    %c80 = arith.constant 80 : index
    %c0_43 = arith.constant 0 : index
    %139 = vector.load %arg1[%c80, %c0_43] : memref<760x128xf32, #tpu.memory_space<vmem>>, vector<64x32xf32>
    %c144 = arith.constant 144 : index
    %c0_44 = arith.constant 0 : index
    %140 = vector.load %arg1[%c144, %c0_44] : memref<760x128xf32, #tpu.memory_space<vmem>>, vector<1x32xf32>
    %cst_45 = arith.constant dense<0.000000e+00> : vector<16x64xf32>
    %141 = tpu.matmul %136, %137, %cst_45 {dimension_numbers = #tpu.dot_dimension_numbers<[1], [0], [0], [1], [0, 0, 1, 1], [], []>} : vector<16x32xf32>, vector<32x64xf32>, vector<16x64xf32> -> vector<16x64xf32>
    %142 = vector.broadcast %138 : vector<1x64xf32> to vector<16x64xf32>
    %143 = arith.addf %141, %142 : vector<16x64xf32>
    %cst_46 = arith.constant 0.000000e+00 : f32
    %144 = vector.broadcast %cst_46 : f32 to vector<16x64xf32>
    %145 = arith.maximumf %143, %144 : vector<16x64xf32>
    %cst_47 = arith.constant dense<0.000000e+00> : vector<16x32xf32>
    %146 = tpu.matmul %145, %139, %cst_47 {dimension_numbers = #tpu.dot_dimension_numbers<[1], [0], [0], [1], [0, 0, 1, 1], [], []>} : vector<16x64xf32>, vector<64x32xf32>, vector<16x32xf32> -> vector<16x32xf32>
    %147 = vector.broadcast %140 : vector<1x32xf32> to vector<16x32xf32>
    %148 = arith.addf %146, %147 : vector<16x32xf32>
    %149 = arith.addf %136, %148 : vector<16x32xf32>
    %c152 = arith.constant 152 : index
    %c0_48 = arith.constant 0 : index
    %150 = vector.load %arg1[%c152, %c0_48] : memref<760x128xf32, #tpu.memory_space<vmem>>, vector<1x32xf32>
    %c153 = arith.constant 153 : index
    %c0_49 = arith.constant 0 : index
    %151 = vector.load %arg1[%c153, %c0_49] : memref<760x128xf32, #tpu.memory_space<vmem>>, vector<1x32xf32>
    %cst_50 = arith.constant dense<0.000000e+00> : vector<16xf32>
    %152 = vector.multi_reduction <add>, %149, %cst_50 [1] : vector<16x32xf32> to vector<16xf32>
    %153 = vector.shape_cast %152 : vector<16xf32> to vector<16x1xf32>
    %cst_51 = arith.constant 3.200000e+01 : f32
    %154 = vector.broadcast %cst_51 : f32 to vector<16x1xf32>
    %155 = arith.divf %153, %154 : vector<16x1xf32>
    %156 = vector.broadcast %155 : vector<16x1xf32> to vector<16x32xf32>
    %157 = arith.subf %149, %156 : vector<16x32xf32>
    %158 = arith.mulf %157, %157 : vector<16x32xf32>
    %cst_52 = arith.constant dense<0.000000e+00> : vector<16xf32>
    %159 = vector.multi_reduction <add>, %158, %cst_52 [1] : vector<16x32xf32> to vector<16xf32>
    %160 = vector.shape_cast %159 : vector<16xf32> to vector<16x1xf32>
    %cst_53 = arith.constant 3.200000e+01 : f32
    %161 = vector.broadcast %cst_53 : f32 to vector<16x1xf32>
    %162 = arith.divf %160, %161 : vector<16x1xf32>
    %cst_54 = arith.constant 9.99999974E-6 : f32
    %163 = vector.broadcast %cst_54 : f32 to vector<16x1xf32>
    %164 = arith.addf %162, %163 : vector<16x1xf32>
    %165 = math.rsqrt %164 : vector<16x1xf32>
    %166 = vector.broadcast %165 : vector<16x1xf32> to vector<16x32xf32>
    %167 = arith.mulf %157, %166 : vector<16x32xf32>
    %168 = vector.broadcast %150 : vector<1x32xf32> to vector<16x32xf32>
    %169 = arith.mulf %167, %168 : vector<16x32xf32>
    %170 = vector.broadcast %151 : vector<1x32xf32> to vector<16x32xf32>
    %171 = arith.addf %169, %170 : vector<16x32xf32>
    %c160 = arith.constant 160 : index
    %c0_55 = arith.constant 0 : index
    %172 = vector.load %arg1[%c160, %c0_55] : memref<760x128xf32, #tpu.memory_space<vmem>>, vector<32x32xf32>
    %c160_56 = arith.constant 160 : index
    %c32_57 = arith.constant 32 : index
    %173 = vector.load %arg1[%c160_56, %c32_57] : memref<760x128xf32, #tpu.memory_space<vmem>>, vector<32x32xf32>
    %c160_58 = arith.constant 160 : index
    %c64_59 = arith.constant 64 : index
    %174 = vector.load %arg1[%c160_58, %c64_59] : memref<760x128xf32, #tpu.memory_space<vmem>>, vector<32x32xf32>
    %c160_60 = arith.constant 160 : index
    %c96_61 = arith.constant 96 : index
    %175 = vector.load %arg1[%c160_60, %c96_61] : memref<760x128xf32, #tpu.memory_space<vmem>>, vector<32x32xf32>
    %cst_62 = arith.constant dense<0.000000e+00> : vector<16x32xf32>
    %176 = tpu.matmul %171, %172, %cst_62 {dimension_numbers = #tpu.dot_dimension_numbers<[1], [0], [0], [1], [0, 0, 1, 1], [], []>} : vector<16x32xf32>, vector<32x32xf32>, vector<16x32xf32> -> vector<16x32xf32>
    %cst_63 = arith.constant dense<0.000000e+00> : vector<16x32xf32>
    %177 = tpu.matmul %171, %173, %cst_63 {dimension_numbers = #tpu.dot_dimension_numbers<[1], [0], [0], [1], [0, 0, 1, 1], [], []>} : vector<16x32xf32>, vector<32x32xf32>, vector<16x32xf32> -> vector<16x32xf32>
    %cst_64 = arith.constant dense<0.000000e+00> : vector<16x32xf32>
    %178 = tpu.matmul %171, %174, %cst_64 {dimension_numbers = #tpu.dot_dimension_numbers<[1], [0], [0], [1], [0, 0, 1, 1], [], []>} : vector<16x32xf32>, vector<32x32xf32>, vector<16x32xf32> -> vector<16x32xf32>
    %179 = tpu.concatenate %176, %176, %176, %176 in 0 : vector<16x32xf32>, vector<16x32xf32>, vector<16x32xf32>, vector<16x32xf32> -> vector<64x32xf32>
    %180 = arith.mulf %179, %29 : vector<64x32xf32>
    %cst_65 = arith.constant dense<0.000000e+00> : vector<64x16xf32>
    %181 = tpu.matmul %180, %177, %cst_65 {dimension_numbers = #tpu.dot_dimension_numbers<[1], [1], [0], [0], [0, 0, 1, 0], [], []>} : vector<64x32xf32>, vector<16x32xf32>, vector<64x16xf32> -> vector<64x16xf32>
    %cst_66 = arith.constant 0.176776692 : f32
    %182 = vector.broadcast %cst_66 : f32 to vector<64x16xf32>
    %183 = arith.mulf %181, %182 : vector<64x16xf32>
    %184 = arith.addf %183, %77 : vector<64x16xf32>
    %cst_67 = arith.constant dense<0xFF800000> : vector<64xf32>
    %185 = vector.multi_reduction <maximumf>, %184, %cst_67 [1] : vector<64x16xf32> to vector<64xf32>
    %186 = vector.shape_cast %185 : vector<64xf32> to vector<64x1xf32>
    %187 = vector.broadcast %186 : vector<64x1xf32> to vector<64x16xf32>
    %188 = arith.subf %184, %187 : vector<64x16xf32>
    %189 = math.exp %188 : vector<64x16xf32>
    %cst_68 = arith.constant dense<0.000000e+00> : vector<64xf32>
    %190 = vector.multi_reduction <add>, %189, %cst_68 [1] : vector<64x16xf32> to vector<64xf32>
    %191 = vector.shape_cast %190 : vector<64xf32> to vector<64x1xf32>
    %192 = vector.broadcast %191 : vector<64x1xf32> to vector<64x16xf32>
    %193 = arith.divf %189, %192 : vector<64x16xf32>
    %cst_69 = arith.constant dense<0.000000e+00> : vector<64x32xf32>
    %194 = tpu.matmul %193, %178, %cst_69 {dimension_numbers = #tpu.dot_dimension_numbers<[1], [0], [0], [1], [0, 0, 1, 1], [], []>} : vector<64x16xf32>, vector<16x32xf32>, vector<64x32xf32> -> vector<64x32xf32>
    %195 = arith.mulf %194, %29 : vector<64x32xf32>
    %196 = vector.extract_strided_slice %195 {offsets = [0, 0], sizes = [16, 32], strides = [1, 1]} : vector<64x32xf32> to vector<16x32xf32>
    %197 = vector.extract_strided_slice %195 {offsets = [16, 0], sizes = [16, 32], strides = [1, 1]} : vector<64x32xf32> to vector<16x32xf32>
    %198 = arith.addf %196, %197 : vector<16x32xf32>
    %199 = vector.extract_strided_slice %195 {offsets = [32, 0], sizes = [16, 32], strides = [1, 1]} : vector<64x32xf32> to vector<16x32xf32>
    %200 = arith.addf %198, %199 : vector<16x32xf32>
    %201 = vector.extract_strided_slice %195 {offsets = [48, 0], sizes = [16, 32], strides = [1, 1]} : vector<64x32xf32> to vector<16x32xf32>
    %202 = arith.addf %200, %201 : vector<16x32xf32>
    %cst_70 = arith.constant dense<0.000000e+00> : vector<16x32xf32>
    %203 = tpu.matmul %202, %175, %cst_70 {dimension_numbers = #tpu.dot_dimension_numbers<[1], [0], [0], [1], [0, 0, 1, 1], [], []>} : vector<16x32xf32>, vector<32x32xf32>, vector<16x32xf32> -> vector<16x32xf32>
    %204 = arith.addf %171, %203 : vector<16x32xf32>
    %c192 = arith.constant 192 : index
    %c0_71 = arith.constant 0 : index
    %205 = vector.load %arg1[%c192, %c0_71] : memref<760x128xf32, #tpu.memory_space<vmem>>, vector<1x32xf32>
    %c193 = arith.constant 193 : index
    %c0_72 = arith.constant 0 : index
    %206 = vector.load %arg1[%c193, %c0_72] : memref<760x128xf32, #tpu.memory_space<vmem>>, vector<1x32xf32>
    %cst_73 = arith.constant dense<0.000000e+00> : vector<16xf32>
    %207 = vector.multi_reduction <add>, %204, %cst_73 [1] : vector<16x32xf32> to vector<16xf32>
    %208 = vector.shape_cast %207 : vector<16xf32> to vector<16x1xf32>
    %cst_74 = arith.constant 3.200000e+01 : f32
    %209 = vector.broadcast %cst_74 : f32 to vector<16x1xf32>
    %210 = arith.divf %208, %209 : vector<16x1xf32>
    %211 = vector.broadcast %210 : vector<16x1xf32> to vector<16x32xf32>
    %212 = arith.subf %204, %211 : vector<16x32xf32>
    %213 = arith.mulf %212, %212 : vector<16x32xf32>
    %cst_75 = arith.constant dense<0.000000e+00> : vector<16xf32>
    %214 = vector.multi_reduction <add>, %213, %cst_75 [1] : vector<16x32xf32> to vector<16xf32>
    %215 = vector.shape_cast %214 : vector<16xf32> to vector<16x1xf32>
    %cst_76 = arith.constant 3.200000e+01 : f32
    %216 = vector.broadcast %cst_76 : f32 to vector<16x1xf32>
    %217 = arith.divf %215, %216 : vector<16x1xf32>
    %cst_77 = arith.constant 9.99999974E-6 : f32
    %218 = vector.broadcast %cst_77 : f32 to vector<16x1xf32>
    %219 = arith.addf %217, %218 : vector<16x1xf32>
    %220 = math.rsqrt %219 : vector<16x1xf32>
    %221 = vector.broadcast %220 : vector<16x1xf32> to vector<16x32xf32>
    %222 = arith.mulf %212, %221 : vector<16x32xf32>
    %223 = vector.broadcast %205 : vector<1x32xf32> to vector<16x32xf32>
    %224 = arith.mulf %222, %223 : vector<16x32xf32>
    %225 = vector.broadcast %206 : vector<1x32xf32> to vector<16x32xf32>
    %226 = arith.addf %224, %225 : vector<16x32xf32>
    %c200 = arith.constant 200 : index
    %c0_78 = arith.constant 0 : index
    %227 = vector.load %arg1[%c200, %c0_78] : memref<760x128xf32, #tpu.memory_space<vmem>>, vector<32x64xf32>
    %c232 = arith.constant 232 : index
    %c0_79 = arith.constant 0 : index
    %228 = vector.load %arg1[%c232, %c0_79] : memref<760x128xf32, #tpu.memory_space<vmem>>, vector<1x64xf32>
    %c240 = arith.constant 240 : index
    %c0_80 = arith.constant 0 : index
    %229 = vector.load %arg1[%c240, %c0_80] : memref<760x128xf32, #tpu.memory_space<vmem>>, vector<64x32xf32>
    %c304 = arith.constant 304 : index
    %c0_81 = arith.constant 0 : index
    %230 = vector.load %arg1[%c304, %c0_81] : memref<760x128xf32, #tpu.memory_space<vmem>>, vector<1x32xf32>
    %cst_82 = arith.constant dense<0.000000e+00> : vector<16x64xf32>
    %231 = tpu.matmul %226, %227, %cst_82 {dimension_numbers = #tpu.dot_dimension_numbers<[1], [0], [0], [1], [0, 0, 1, 1], [], []>} : vector<16x32xf32>, vector<32x64xf32>, vector<16x64xf32> -> vector<16x64xf32>
    %232 = vector.broadcast %228 : vector<1x64xf32> to vector<16x64xf32>
    %233 = arith.addf %231, %232 : vector<16x64xf32>
    %cst_83 = arith.constant 0.000000e+00 : f32
    %234 = vector.broadcast %cst_83 : f32 to vector<16x64xf32>
    %235 = arith.maximumf %233, %234 : vector<16x64xf32>
    %cst_84 = arith.constant dense<0.000000e+00> : vector<16x32xf32>
    %236 = tpu.matmul %235, %229, %cst_84 {dimension_numbers = #tpu.dot_dimension_numbers<[1], [0], [0], [1], [0, 0, 1, 1], [], []>} : vector<16x64xf32>, vector<64x32xf32>, vector<16x32xf32> -> vector<16x32xf32>
    %237 = vector.broadcast %230 : vector<1x32xf32> to vector<16x32xf32>
    %238 = arith.addf %236, %237 : vector<16x32xf32>
    %239 = arith.addf %226, %238 : vector<16x32xf32>
    %c312 = arith.constant 312 : index
    %c0_85 = arith.constant 0 : index
    %240 = vector.load %arg1[%c312, %c0_85] : memref<760x128xf32, #tpu.memory_space<vmem>>, vector<1x32xf32>
    %c313 = arith.constant 313 : index
    %c0_86 = arith.constant 0 : index
    %241 = vector.load %arg1[%c313, %c0_86] : memref<760x128xf32, #tpu.memory_space<vmem>>, vector<1x32xf32>
    %cst_87 = arith.constant dense<0.000000e+00> : vector<16xf32>
    %242 = vector.multi_reduction <add>, %239, %cst_87 [1] : vector<16x32xf32> to vector<16xf32>
    %243 = vector.shape_cast %242 : vector<16xf32> to vector<16x1xf32>
    %cst_88 = arith.constant 3.200000e+01 : f32
    %244 = vector.broadcast %cst_88 : f32 to vector<16x1xf32>
    %245 = arith.divf %243, %244 : vector<16x1xf32>
    %246 = vector.broadcast %245 : vector<16x1xf32> to vector<16x32xf32>
    %247 = arith.subf %239, %246 : vector<16x32xf32>
    %248 = arith.mulf %247, %247 : vector<16x32xf32>
    %cst_89 = arith.constant dense<0.000000e+00> : vector<16xf32>
    %249 = vector.multi_reduction <add>, %248, %cst_89 [1] : vector<16x32xf32> to vector<16xf32>
    %250 = vector.shape_cast %249 : vector<16xf32> to vector<16x1xf32>
    %cst_90 = arith.constant 3.200000e+01 : f32
    %251 = vector.broadcast %cst_90 : f32 to vector<16x1xf32>
    %252 = arith.divf %250, %251 : vector<16x1xf32>
    %cst_91 = arith.constant 9.99999974E-6 : f32
    %253 = vector.broadcast %cst_91 : f32 to vector<16x1xf32>
    %254 = arith.addf %252, %253 : vector<16x1xf32>
    %255 = math.rsqrt %254 : vector<16x1xf32>
    %256 = vector.broadcast %255 : vector<16x1xf32> to vector<16x32xf32>
    %257 = arith.mulf %247, %256 : vector<16x32xf32>
    %258 = vector.broadcast %240 : vector<1x32xf32> to vector<16x32xf32>
    %259 = arith.mulf %257, %258 : vector<16x32xf32>
    %260 = vector.broadcast %241 : vector<1x32xf32> to vector<16x32xf32>
    %261 = arith.addf %259, %260 : vector<16x32xf32>
    %c320 = arith.constant 320 : index
    %c0_92 = arith.constant 0 : index
    %262 = vector.load %arg1[%c320, %c0_92] : memref<760x128xf32, #tpu.memory_space<vmem>>, vector<32x32xf32>
    %c320_93 = arith.constant 320 : index
    %c32_94 = arith.constant 32 : index
    %263 = vector.load %arg1[%c320_93, %c32_94] : memref<760x128xf32, #tpu.memory_space<vmem>>, vector<32x32xf32>
    %c320_95 = arith.constant 320 : index
    %c64_96 = arith.constant 64 : index
    %264 = vector.load %arg1[%c320_95, %c64_96] : memref<760x128xf32, #tpu.memory_space<vmem>>, vector<32x32xf32>
    %c320_97 = arith.constant 320 : index
    %c96_98 = arith.constant 96 : index
    %265 = vector.load %arg1[%c320_97, %c96_98] : memref<760x128xf32, #tpu.memory_space<vmem>>, vector<32x32xf32>
    %cst_99 = arith.constant dense<0.000000e+00> : vector<16x32xf32>
    %266 = tpu.matmul %81, %262, %cst_99 {dimension_numbers = #tpu.dot_dimension_numbers<[1], [0], [0], [1], [0, 0, 1, 1], [], []>} : vector<16x32xf32>, vector<32x32xf32>, vector<16x32xf32> -> vector<16x32xf32>
    %cst_100 = arith.constant dense<0.000000e+00> : vector<16x32xf32>
    %267 = tpu.matmul %81, %263, %cst_100 {dimension_numbers = #tpu.dot_dimension_numbers<[1], [0], [0], [1], [0, 0, 1, 1], [], []>} : vector<16x32xf32>, vector<32x32xf32>, vector<16x32xf32> -> vector<16x32xf32>
    %cst_101 = arith.constant dense<0.000000e+00> : vector<16x32xf32>
    %268 = tpu.matmul %81, %264, %cst_101 {dimension_numbers = #tpu.dot_dimension_numbers<[1], [0], [0], [1], [0, 0, 1, 1], [], []>} : vector<16x32xf32>, vector<32x32xf32>, vector<16x32xf32> -> vector<16x32xf32>
    %269 = tpu.concatenate %266, %266, %266, %266 in 0 : vector<16x32xf32>, vector<16x32xf32>, vector<16x32xf32>, vector<16x32xf32> -> vector<64x32xf32>
    %270 = arith.mulf %269, %29 : vector<64x32xf32>
    %cst_102 = arith.constant dense<0.000000e+00> : vector<64x16xf32>
    %271 = tpu.matmul %270, %267, %cst_102 {dimension_numbers = #tpu.dot_dimension_numbers<[1], [1], [0], [0], [0, 0, 1, 0], [], []>} : vector<64x32xf32>, vector<16x32xf32>, vector<64x16xf32> -> vector<64x16xf32>
    %cst_103 = arith.constant 0.176776692 : f32
    %272 = vector.broadcast %cst_103 : f32 to vector<64x16xf32>
    %273 = arith.mulf %271, %272 : vector<64x16xf32>
    %274 = arith.mulf %273, %78 : vector<64x16xf32>
    %275 = arith.addf %274, %77 : vector<64x16xf32>
    %cst_104 = arith.constant dense<0xFF800000> : vector<64xf32>
    %276 = vector.multi_reduction <maximumf>, %275, %cst_104 [1] : vector<64x16xf32> to vector<64xf32>
    %277 = vector.shape_cast %276 : vector<64xf32> to vector<64x1xf32>
    %278 = vector.broadcast %277 : vector<64x1xf32> to vector<64x16xf32>
    %279 = arith.subf %275, %278 : vector<64x16xf32>
    %280 = math.exp %279 : vector<64x16xf32>
    %cst_105 = arith.constant dense<0.000000e+00> : vector<64xf32>
    %281 = vector.multi_reduction <add>, %280, %cst_105 [1] : vector<64x16xf32> to vector<64xf32>
    %282 = vector.shape_cast %281 : vector<64xf32> to vector<64x1xf32>
    %283 = vector.broadcast %282 : vector<64x1xf32> to vector<64x16xf32>
    %284 = arith.divf %280, %283 : vector<64x16xf32>
    %cst_106 = arith.constant dense<0.000000e+00> : vector<64x32xf32>
    %285 = tpu.matmul %284, %268, %cst_106 {dimension_numbers = #tpu.dot_dimension_numbers<[1], [0], [0], [1], [0, 0, 1, 1], [], []>} : vector<64x16xf32>, vector<16x32xf32>, vector<64x32xf32> -> vector<64x32xf32>
    %286 = arith.mulf %285, %29 : vector<64x32xf32>
    %287 = vector.extract_strided_slice %286 {offsets = [0, 0], sizes = [16, 32], strides = [1, 1]} : vector<64x32xf32> to vector<16x32xf32>
    %288 = vector.extract_strided_slice %286 {offsets = [16, 0], sizes = [16, 32], strides = [1, 1]} : vector<64x32xf32> to vector<16x32xf32>
    %289 = arith.addf %287, %288 : vector<16x32xf32>
    %290 = vector.extract_strided_slice %286 {offsets = [32, 0], sizes = [16, 32], strides = [1, 1]} : vector<64x32xf32> to vector<16x32xf32>
    %291 = arith.addf %289, %290 : vector<16x32xf32>
    %292 = vector.extract_strided_slice %286 {offsets = [48, 0], sizes = [16, 32], strides = [1, 1]} : vector<64x32xf32> to vector<16x32xf32>
    %293 = arith.addf %291, %292 : vector<16x32xf32>
    %cst_107 = arith.constant dense<0.000000e+00> : vector<16x32xf32>
    %294 = tpu.matmul %293, %265, %cst_107 {dimension_numbers = #tpu.dot_dimension_numbers<[1], [0], [0], [1], [0, 0, 1, 1], [], []>} : vector<16x32xf32>, vector<32x32xf32>, vector<16x32xf32> -> vector<16x32xf32>
    %295 = arith.addf %81, %294 : vector<16x32xf32>
    %c352 = arith.constant 352 : index
    %c0_108 = arith.constant 0 : index
    %296 = vector.load %arg1[%c352, %c0_108] : memref<760x128xf32, #tpu.memory_space<vmem>>, vector<1x32xf32>
    %c353 = arith.constant 353 : index
    %c0_109 = arith.constant 0 : index
    %297 = vector.load %arg1[%c353, %c0_109] : memref<760x128xf32, #tpu.memory_space<vmem>>, vector<1x32xf32>
    %cst_110 = arith.constant dense<0.000000e+00> : vector<16xf32>
    %298 = vector.multi_reduction <add>, %295, %cst_110 [1] : vector<16x32xf32> to vector<16xf32>
    %299 = vector.shape_cast %298 : vector<16xf32> to vector<16x1xf32>
    %cst_111 = arith.constant 3.200000e+01 : f32
    %300 = vector.broadcast %cst_111 : f32 to vector<16x1xf32>
    %301 = arith.divf %299, %300 : vector<16x1xf32>
    %302 = vector.broadcast %301 : vector<16x1xf32> to vector<16x32xf32>
    %303 = arith.subf %295, %302 : vector<16x32xf32>
    %304 = arith.mulf %303, %303 : vector<16x32xf32>
    %cst_112 = arith.constant dense<0.000000e+00> : vector<16xf32>
    %305 = vector.multi_reduction <add>, %304, %cst_112 [1] : vector<16x32xf32> to vector<16xf32>
    %306 = vector.shape_cast %305 : vector<16xf32> to vector<16x1xf32>
    %cst_113 = arith.constant 3.200000e+01 : f32
    %307 = vector.broadcast %cst_113 : f32 to vector<16x1xf32>
    %308 = arith.divf %306, %307 : vector<16x1xf32>
    %cst_114 = arith.constant 9.99999974E-6 : f32
    %309 = vector.broadcast %cst_114 : f32 to vector<16x1xf32>
    %310 = arith.addf %308, %309 : vector<16x1xf32>
    %311 = math.rsqrt %310 : vector<16x1xf32>
    %312 = vector.broadcast %311 : vector<16x1xf32> to vector<16x32xf32>
    %313 = arith.mulf %303, %312 : vector<16x32xf32>
    %314 = vector.broadcast %296 : vector<1x32xf32> to vector<16x32xf32>
    %315 = arith.mulf %313, %314 : vector<16x32xf32>
    %316 = vector.broadcast %297 : vector<1x32xf32> to vector<16x32xf32>
    %317 = arith.addf %315, %316 : vector<16x32xf32>
    %c360 = arith.constant 360 : index
    %c0_115 = arith.constant 0 : index
    %318 = vector.load %arg1[%c360, %c0_115] : memref<760x128xf32, #tpu.memory_space<vmem>>, vector<32x32xf32>
    %c360_116 = arith.constant 360 : index
    %c32_117 = arith.constant 32 : index
    %319 = vector.load %arg1[%c360_116, %c32_117] : memref<760x128xf32, #tpu.memory_space<vmem>>, vector<32x32xf32>
    %c360_118 = arith.constant 360 : index
    %c64_119 = arith.constant 64 : index
    %320 = vector.load %arg1[%c360_118, %c64_119] : memref<760x128xf32, #tpu.memory_space<vmem>>, vector<32x32xf32>
    %c360_120 = arith.constant 360 : index
    %c96_121 = arith.constant 96 : index
    %321 = vector.load %arg1[%c360_120, %c96_121] : memref<760x128xf32, #tpu.memory_space<vmem>>, vector<32x32xf32>
    %cst_122 = arith.constant dense<0.000000e+00> : vector<16x32xf32>
    %322 = tpu.matmul %317, %318, %cst_122 {dimension_numbers = #tpu.dot_dimension_numbers<[1], [0], [0], [1], [0, 0, 1, 1], [], []>} : vector<16x32xf32>, vector<32x32xf32>, vector<16x32xf32> -> vector<16x32xf32>
    %cst_123 = arith.constant dense<0.000000e+00> : vector<16x32xf32>
    %323 = tpu.matmul %261, %319, %cst_123 {dimension_numbers = #tpu.dot_dimension_numbers<[1], [0], [0], [1], [0, 0, 1, 1], [], []>} : vector<16x32xf32>, vector<32x32xf32>, vector<16x32xf32> -> vector<16x32xf32>
    %cst_124 = arith.constant dense<0.000000e+00> : vector<16x32xf32>
    %324 = tpu.matmul %261, %320, %cst_124 {dimension_numbers = #tpu.dot_dimension_numbers<[1], [0], [0], [1], [0, 0, 1, 1], [], []>} : vector<16x32xf32>, vector<32x32xf32>, vector<16x32xf32> -> vector<16x32xf32>
    %325 = tpu.concatenate %322, %322, %322, %322 in 0 : vector<16x32xf32>, vector<16x32xf32>, vector<16x32xf32>, vector<16x32xf32> -> vector<64x32xf32>
    %326 = arith.mulf %325, %29 : vector<64x32xf32>
    %cst_125 = arith.constant dense<0.000000e+00> : vector<64x16xf32>
    %327 = tpu.matmul %326, %323, %cst_125 {dimension_numbers = #tpu.dot_dimension_numbers<[1], [1], [0], [0], [0, 0, 1, 0], [], []>} : vector<64x32xf32>, vector<16x32xf32>, vector<64x16xf32> -> vector<64x16xf32>
    %cst_126 = arith.constant 0.176776692 : f32
    %328 = vector.broadcast %cst_126 : f32 to vector<64x16xf32>
    %329 = arith.mulf %327, %328 : vector<64x16xf32>
    %330 = arith.addf %329, %77 : vector<64x16xf32>
    %cst_127 = arith.constant dense<0xFF800000> : vector<64xf32>
    %331 = vector.multi_reduction <maximumf>, %330, %cst_127 [1] : vector<64x16xf32> to vector<64xf32>
    %332 = vector.shape_cast %331 : vector<64xf32> to vector<64x1xf32>
    %333 = vector.broadcast %332 : vector<64x1xf32> to vector<64x16xf32>
    %334 = arith.subf %330, %333 : vector<64x16xf32>
    %335 = math.exp %334 : vector<64x16xf32>
    %cst_128 = arith.constant dense<0.000000e+00> : vector<64xf32>
    %336 = vector.multi_reduction <add>, %335, %cst_128 [1] : vector<64x16xf32> to vector<64xf32>
    %337 = vector.shape_cast %336 : vector<64xf32> to vector<64x1xf32>
    %338 = vector.broadcast %337 : vector<64x1xf32> to vector<64x16xf32>
    %339 = arith.divf %335, %338 : vector<64x16xf32>
    %cst_129 = arith.constant dense<0.000000e+00> : vector<64x32xf32>
    %340 = tpu.matmul %339, %324, %cst_129 {dimension_numbers = #tpu.dot_dimension_numbers<[1], [0], [0], [1], [0, 0, 1, 1], [], []>} : vector<64x16xf32>, vector<16x32xf32>, vector<64x32xf32> -> vector<64x32xf32>
    %341 = arith.mulf %340, %29 : vector<64x32xf32>
    %342 = vector.extract_strided_slice %341 {offsets = [0, 0], sizes = [16, 32], strides = [1, 1]} : vector<64x32xf32> to vector<16x32xf32>
    %343 = vector.extract_strided_slice %341 {offsets = [16, 0], sizes = [16, 32], strides = [1, 1]} : vector<64x32xf32> to vector<16x32xf32>
    %344 = arith.addf %342, %343 : vector<16x32xf32>
    %345 = vector.extract_strided_slice %341 {offsets = [32, 0], sizes = [16, 32], strides = [1, 1]} : vector<64x32xf32> to vector<16x32xf32>
    %346 = arith.addf %344, %345 : vector<16x32xf32>
    %347 = vector.extract_strided_slice %341 {offsets = [48, 0], sizes = [16, 32], strides = [1, 1]} : vector<64x32xf32> to vector<16x32xf32>
    %348 = arith.addf %346, %347 : vector<16x32xf32>
    %cst_130 = arith.constant dense<0.000000e+00> : vector<16x32xf32>
    %349 = tpu.matmul %348, %321, %cst_130 {dimension_numbers = #tpu.dot_dimension_numbers<[1], [0], [0], [1], [0, 0, 1, 1], [], []>} : vector<16x32xf32>, vector<32x32xf32>, vector<16x32xf32> -> vector<16x32xf32>
    %350 = arith.addf %317, %349 : vector<16x32xf32>
    %c392 = arith.constant 392 : index
    %c0_131 = arith.constant 0 : index
    %351 = vector.load %arg1[%c392, %c0_131] : memref<760x128xf32, #tpu.memory_space<vmem>>, vector<1x32xf32>
    %c393 = arith.constant 393 : index
    %c0_132 = arith.constant 0 : index
    %352 = vector.load %arg1[%c393, %c0_132] : memref<760x128xf32, #tpu.memory_space<vmem>>, vector<1x32xf32>
    %cst_133 = arith.constant dense<0.000000e+00> : vector<16xf32>
    %353 = vector.multi_reduction <add>, %350, %cst_133 [1] : vector<16x32xf32> to vector<16xf32>
    %354 = vector.shape_cast %353 : vector<16xf32> to vector<16x1xf32>
    %cst_134 = arith.constant 3.200000e+01 : f32
    %355 = vector.broadcast %cst_134 : f32 to vector<16x1xf32>
    %356 = arith.divf %354, %355 : vector<16x1xf32>
    %357 = vector.broadcast %356 : vector<16x1xf32> to vector<16x32xf32>
    %358 = arith.subf %350, %357 : vector<16x32xf32>
    %359 = arith.mulf %358, %358 : vector<16x32xf32>
    %cst_135 = arith.constant dense<0.000000e+00> : vector<16xf32>
    %360 = vector.multi_reduction <add>, %359, %cst_135 [1] : vector<16x32xf32> to vector<16xf32>
    %361 = vector.shape_cast %360 : vector<16xf32> to vector<16x1xf32>
    %cst_136 = arith.constant 3.200000e+01 : f32
    %362 = vector.broadcast %cst_136 : f32 to vector<16x1xf32>
    %363 = arith.divf %361, %362 : vector<16x1xf32>
    %cst_137 = arith.constant 9.99999974E-6 : f32
    %364 = vector.broadcast %cst_137 : f32 to vector<16x1xf32>
    %365 = arith.addf %363, %364 : vector<16x1xf32>
    %366 = math.rsqrt %365 : vector<16x1xf32>
    %367 = vector.broadcast %366 : vector<16x1xf32> to vector<16x32xf32>
    %368 = arith.mulf %358, %367 : vector<16x32xf32>
    %369 = vector.broadcast %351 : vector<1x32xf32> to vector<16x32xf32>
    %370 = arith.mulf %368, %369 : vector<16x32xf32>
    %371 = vector.broadcast %352 : vector<1x32xf32> to vector<16x32xf32>
    %372 = arith.addf %370, %371 : vector<16x32xf32>
    %c400 = arith.constant 400 : index
    %c0_138 = arith.constant 0 : index
    %373 = vector.load %arg1[%c400, %c0_138] : memref<760x128xf32, #tpu.memory_space<vmem>>, vector<32x64xf32>
    %c432 = arith.constant 432 : index
    %c0_139 = arith.constant 0 : index
    %374 = vector.load %arg1[%c432, %c0_139] : memref<760x128xf32, #tpu.memory_space<vmem>>, vector<1x64xf32>
    %c440 = arith.constant 440 : index
    %c0_140 = arith.constant 0 : index
    %375 = vector.load %arg1[%c440, %c0_140] : memref<760x128xf32, #tpu.memory_space<vmem>>, vector<64x32xf32>
    %c504 = arith.constant 504 : index
    %c0_141 = arith.constant 0 : index
    %376 = vector.load %arg1[%c504, %c0_141] : memref<760x128xf32, #tpu.memory_space<vmem>>, vector<1x32xf32>
    %cst_142 = arith.constant dense<0.000000e+00> : vector<16x64xf32>
    %377 = tpu.matmul %372, %373, %cst_142 {dimension_numbers = #tpu.dot_dimension_numbers<[1], [0], [0], [1], [0, 0, 1, 1], [], []>} : vector<16x32xf32>, vector<32x64xf32>, vector<16x64xf32> -> vector<16x64xf32>
    %378 = vector.broadcast %374 : vector<1x64xf32> to vector<16x64xf32>
    %379 = arith.addf %377, %378 : vector<16x64xf32>
    %cst_143 = arith.constant 0.000000e+00 : f32
    %380 = vector.broadcast %cst_143 : f32 to vector<16x64xf32>
    %381 = arith.maximumf %379, %380 : vector<16x64xf32>
    %cst_144 = arith.constant dense<0.000000e+00> : vector<16x32xf32>
    %382 = tpu.matmul %381, %375, %cst_144 {dimension_numbers = #tpu.dot_dimension_numbers<[1], [0], [0], [1], [0, 0, 1, 1], [], []>} : vector<16x64xf32>, vector<64x32xf32>, vector<16x32xf32> -> vector<16x32xf32>
    %383 = vector.broadcast %376 : vector<1x32xf32> to vector<16x32xf32>
    %384 = arith.addf %382, %383 : vector<16x32xf32>
    %385 = arith.addf %372, %384 : vector<16x32xf32>
    %c512 = arith.constant 512 : index
    %c0_145 = arith.constant 0 : index
    %386 = vector.load %arg1[%c512, %c0_145] : memref<760x128xf32, #tpu.memory_space<vmem>>, vector<1x32xf32>
    %c513 = arith.constant 513 : index
    %c0_146 = arith.constant 0 : index
    %387 = vector.load %arg1[%c513, %c0_146] : memref<760x128xf32, #tpu.memory_space<vmem>>, vector<1x32xf32>
    %cst_147 = arith.constant dense<0.000000e+00> : vector<16xf32>
    %388 = vector.multi_reduction <add>, %385, %cst_147 [1] : vector<16x32xf32> to vector<16xf32>
    %389 = vector.shape_cast %388 : vector<16xf32> to vector<16x1xf32>
    %cst_148 = arith.constant 3.200000e+01 : f32
    %390 = vector.broadcast %cst_148 : f32 to vector<16x1xf32>
    %391 = arith.divf %389, %390 : vector<16x1xf32>
    %392 = vector.broadcast %391 : vector<16x1xf32> to vector<16x32xf32>
    %393 = arith.subf %385, %392 : vector<16x32xf32>
    %394 = arith.mulf %393, %393 : vector<16x32xf32>
    %cst_149 = arith.constant dense<0.000000e+00> : vector<16xf32>
    %395 = vector.multi_reduction <add>, %394, %cst_149 [1] : vector<16x32xf32> to vector<16xf32>
    %396 = vector.shape_cast %395 : vector<16xf32> to vector<16x1xf32>
    %cst_150 = arith.constant 3.200000e+01 : f32
    %397 = vector.broadcast %cst_150 : f32 to vector<16x1xf32>
    %398 = arith.divf %396, %397 : vector<16x1xf32>
    %cst_151 = arith.constant 9.99999974E-6 : f32
    %399 = vector.broadcast %cst_151 : f32 to vector<16x1xf32>
    %400 = arith.addf %398, %399 : vector<16x1xf32>
    %401 = math.rsqrt %400 : vector<16x1xf32>
    %402 = vector.broadcast %401 : vector<16x1xf32> to vector<16x32xf32>
    %403 = arith.mulf %393, %402 : vector<16x32xf32>
    %404 = vector.broadcast %386 : vector<1x32xf32> to vector<16x32xf32>
    %405 = arith.mulf %403, %404 : vector<16x32xf32>
    %406 = vector.broadcast %387 : vector<1x32xf32> to vector<16x32xf32>
    %407 = arith.addf %405, %406 : vector<16x32xf32>
    %c520 = arith.constant 520 : index
    %c0_152 = arith.constant 0 : index
    %408 = vector.load %arg1[%c520, %c0_152] : memref<760x128xf32, #tpu.memory_space<vmem>>, vector<32x32xf32>
    %c520_153 = arith.constant 520 : index
    %c32_154 = arith.constant 32 : index
    %409 = vector.load %arg1[%c520_153, %c32_154] : memref<760x128xf32, #tpu.memory_space<vmem>>, vector<32x32xf32>
    %c520_155 = arith.constant 520 : index
    %c64_156 = arith.constant 64 : index
    %410 = vector.load %arg1[%c520_155, %c64_156] : memref<760x128xf32, #tpu.memory_space<vmem>>, vector<32x32xf32>
    %c520_157 = arith.constant 520 : index
    %c96_158 = arith.constant 96 : index
    %411 = vector.load %arg1[%c520_157, %c96_158] : memref<760x128xf32, #tpu.memory_space<vmem>>, vector<32x32xf32>
    %cst_159 = arith.constant dense<0.000000e+00> : vector<16x32xf32>
    %412 = tpu.matmul %407, %408, %cst_159 {dimension_numbers = #tpu.dot_dimension_numbers<[1], [0], [0], [1], [0, 0, 1, 1], [], []>} : vector<16x32xf32>, vector<32x32xf32>, vector<16x32xf32> -> vector<16x32xf32>
    %cst_160 = arith.constant dense<0.000000e+00> : vector<16x32xf32>
    %413 = tpu.matmul %407, %409, %cst_160 {dimension_numbers = #tpu.dot_dimension_numbers<[1], [0], [0], [1], [0, 0, 1, 1], [], []>} : vector<16x32xf32>, vector<32x32xf32>, vector<16x32xf32> -> vector<16x32xf32>
    %cst_161 = arith.constant dense<0.000000e+00> : vector<16x32xf32>
    %414 = tpu.matmul %407, %410, %cst_161 {dimension_numbers = #tpu.dot_dimension_numbers<[1], [0], [0], [1], [0, 0, 1, 1], [], []>} : vector<16x32xf32>, vector<32x32xf32>, vector<16x32xf32> -> vector<16x32xf32>
    %415 = tpu.concatenate %412, %412, %412, %412 in 0 : vector<16x32xf32>, vector<16x32xf32>, vector<16x32xf32>, vector<16x32xf32> -> vector<64x32xf32>
    %416 = arith.mulf %415, %29 : vector<64x32xf32>
    %cst_162 = arith.constant dense<0.000000e+00> : vector<64x16xf32>
    %417 = tpu.matmul %416, %413, %cst_162 {dimension_numbers = #tpu.dot_dimension_numbers<[1], [1], [0], [0], [0, 0, 1, 0], [], []>} : vector<64x32xf32>, vector<16x32xf32>, vector<64x16xf32> -> vector<64x16xf32>
    %cst_163 = arith.constant 0.176776692 : f32
    %418 = vector.broadcast %cst_163 : f32 to vector<64x16xf32>
    %419 = arith.mulf %417, %418 : vector<64x16xf32>
    %420 = arith.mulf %419, %78 : vector<64x16xf32>
    %421 = arith.addf %420, %77 : vector<64x16xf32>
    %cst_164 = arith.constant dense<0xFF800000> : vector<64xf32>
    %422 = vector.multi_reduction <maximumf>, %421, %cst_164 [1] : vector<64x16xf32> to vector<64xf32>
    %423 = vector.shape_cast %422 : vector<64xf32> to vector<64x1xf32>
    %424 = vector.broadcast %423 : vector<64x1xf32> to vector<64x16xf32>
    %425 = arith.subf %421, %424 : vector<64x16xf32>
    %426 = math.exp %425 : vector<64x16xf32>
    %cst_165 = arith.constant dense<0.000000e+00> : vector<64xf32>
    %427 = vector.multi_reduction <add>, %426, %cst_165 [1] : vector<64x16xf32> to vector<64xf32>
    %428 = vector.shape_cast %427 : vector<64xf32> to vector<64x1xf32>
    %429 = vector.broadcast %428 : vector<64x1xf32> to vector<64x16xf32>
    %430 = arith.divf %426, %429 : vector<64x16xf32>
    %cst_166 = arith.constant dense<0.000000e+00> : vector<64x32xf32>
    %431 = tpu.matmul %430, %414, %cst_166 {dimension_numbers = #tpu.dot_dimension_numbers<[1], [0], [0], [1], [0, 0, 1, 1], [], []>} : vector<64x16xf32>, vector<16x32xf32>, vector<64x32xf32> -> vector<64x32xf32>
    %432 = arith.mulf %431, %29 : vector<64x32xf32>
    %433 = vector.extract_strided_slice %432 {offsets = [0, 0], sizes = [16, 32], strides = [1, 1]} : vector<64x32xf32> to vector<16x32xf32>
    %434 = vector.extract_strided_slice %432 {offsets = [16, 0], sizes = [16, 32], strides = [1, 1]} : vector<64x32xf32> to vector<16x32xf32>
    %435 = arith.addf %433, %434 : vector<16x32xf32>
    %436 = vector.extract_strided_slice %432 {offsets = [32, 0], sizes = [16, 32], strides = [1, 1]} : vector<64x32xf32> to vector<16x32xf32>
    %437 = arith.addf %435, %436 : vector<16x32xf32>
    %438 = vector.extract_strided_slice %432 {offsets = [48, 0], sizes = [16, 32], strides = [1, 1]} : vector<64x32xf32> to vector<16x32xf32>
    %439 = arith.addf %437, %438 : vector<16x32xf32>
    %cst_167 = arith.constant dense<0.000000e+00> : vector<16x32xf32>
    %440 = tpu.matmul %439, %411, %cst_167 {dimension_numbers = #tpu.dot_dimension_numbers<[1], [0], [0], [1], [0, 0, 1, 1], [], []>} : vector<16x32xf32>, vector<32x32xf32>, vector<16x32xf32> -> vector<16x32xf32>
    %441 = arith.addf %407, %440 : vector<16x32xf32>
    %c552 = arith.constant 552 : index
    %c0_168 = arith.constant 0 : index
    %442 = vector.load %arg1[%c552, %c0_168] : memref<760x128xf32, #tpu.memory_space<vmem>>, vector<1x32xf32>
    %c553 = arith.constant 553 : index
    %c0_169 = arith.constant 0 : index
    %443 = vector.load %arg1[%c553, %c0_169] : memref<760x128xf32, #tpu.memory_space<vmem>>, vector<1x32xf32>
    %cst_170 = arith.constant dense<0.000000e+00> : vector<16xf32>
    %444 = vector.multi_reduction <add>, %441, %cst_170 [1] : vector<16x32xf32> to vector<16xf32>
    %445 = vector.shape_cast %444 : vector<16xf32> to vector<16x1xf32>
    %cst_171 = arith.constant 3.200000e+01 : f32
    %446 = vector.broadcast %cst_171 : f32 to vector<16x1xf32>
    %447 = arith.divf %445, %446 : vector<16x1xf32>
    %448 = vector.broadcast %447 : vector<16x1xf32> to vector<16x32xf32>
    %449 = arith.subf %441, %448 : vector<16x32xf32>
    %450 = arith.mulf %449, %449 : vector<16x32xf32>
    %cst_172 = arith.constant dense<0.000000e+00> : vector<16xf32>
    %451 = vector.multi_reduction <add>, %450, %cst_172 [1] : vector<16x32xf32> to vector<16xf32>
    %452 = vector.shape_cast %451 : vector<16xf32> to vector<16x1xf32>
    %cst_173 = arith.constant 3.200000e+01 : f32
    %453 = vector.broadcast %cst_173 : f32 to vector<16x1xf32>
    %454 = arith.divf %452, %453 : vector<16x1xf32>
    %cst_174 = arith.constant 9.99999974E-6 : f32
    %455 = vector.broadcast %cst_174 : f32 to vector<16x1xf32>
    %456 = arith.addf %454, %455 : vector<16x1xf32>
    %457 = math.rsqrt %456 : vector<16x1xf32>
    %458 = vector.broadcast %457 : vector<16x1xf32> to vector<16x32xf32>
    %459 = arith.mulf %449, %458 : vector<16x32xf32>
    %460 = vector.broadcast %442 : vector<1x32xf32> to vector<16x32xf32>
    %461 = arith.mulf %459, %460 : vector<16x32xf32>
    %462 = vector.broadcast %443 : vector<1x32xf32> to vector<16x32xf32>
    %463 = arith.addf %461, %462 : vector<16x32xf32>
    %c560 = arith.constant 560 : index
    %c0_175 = arith.constant 0 : index
    %464 = vector.load %arg1[%c560, %c0_175] : memref<760x128xf32, #tpu.memory_space<vmem>>, vector<32x32xf32>
    %c560_176 = arith.constant 560 : index
    %c32_177 = arith.constant 32 : index
    %465 = vector.load %arg1[%c560_176, %c32_177] : memref<760x128xf32, #tpu.memory_space<vmem>>, vector<32x32xf32>
    %c560_178 = arith.constant 560 : index
    %c64_179 = arith.constant 64 : index
    %466 = vector.load %arg1[%c560_178, %c64_179] : memref<760x128xf32, #tpu.memory_space<vmem>>, vector<32x32xf32>
    %c560_180 = arith.constant 560 : index
    %c96_181 = arith.constant 96 : index
    %467 = vector.load %arg1[%c560_180, %c96_181] : memref<760x128xf32, #tpu.memory_space<vmem>>, vector<32x32xf32>
    %cst_182 = arith.constant dense<0.000000e+00> : vector<16x32xf32>
    %468 = tpu.matmul %463, %464, %cst_182 {dimension_numbers = #tpu.dot_dimension_numbers<[1], [0], [0], [1], [0, 0, 1, 1], [], []>} : vector<16x32xf32>, vector<32x32xf32>, vector<16x32xf32> -> vector<16x32xf32>
    %cst_183 = arith.constant dense<0.000000e+00> : vector<16x32xf32>
    %469 = tpu.matmul %261, %465, %cst_183 {dimension_numbers = #tpu.dot_dimension_numbers<[1], [0], [0], [1], [0, 0, 1, 1], [], []>} : vector<16x32xf32>, vector<32x32xf32>, vector<16x32xf32> -> vector<16x32xf32>
    %cst_184 = arith.constant dense<0.000000e+00> : vector<16x32xf32>
    %470 = tpu.matmul %261, %466, %cst_184 {dimension_numbers = #tpu.dot_dimension_numbers<[1], [0], [0], [1], [0, 0, 1, 1], [], []>} : vector<16x32xf32>, vector<32x32xf32>, vector<16x32xf32> -> vector<16x32xf32>
    %471 = tpu.concatenate %468, %468, %468, %468 in 0 : vector<16x32xf32>, vector<16x32xf32>, vector<16x32xf32>, vector<16x32xf32> -> vector<64x32xf32>
    %472 = arith.mulf %471, %29 : vector<64x32xf32>
    %cst_185 = arith.constant dense<0.000000e+00> : vector<64x16xf32>
    %473 = tpu.matmul %472, %469, %cst_185 {dimension_numbers = #tpu.dot_dimension_numbers<[1], [1], [0], [0], [0, 0, 1, 0], [], []>} : vector<64x32xf32>, vector<16x32xf32>, vector<64x16xf32> -> vector<64x16xf32>
    %cst_186 = arith.constant 0.176776692 : f32
    %474 = vector.broadcast %cst_186 : f32 to vector<64x16xf32>
    %475 = arith.mulf %473, %474 : vector<64x16xf32>
    %476 = arith.addf %475, %77 : vector<64x16xf32>
    %cst_187 = arith.constant dense<0xFF800000> : vector<64xf32>
    %477 = vector.multi_reduction <maximumf>, %476, %cst_187 [1] : vector<64x16xf32> to vector<64xf32>
    %478 = vector.shape_cast %477 : vector<64xf32> to vector<64x1xf32>
    %479 = vector.broadcast %478 : vector<64x1xf32> to vector<64x16xf32>
    %480 = arith.subf %476, %479 : vector<64x16xf32>
    %481 = math.exp %480 : vector<64x16xf32>
    %cst_188 = arith.constant dense<0.000000e+00> : vector<64xf32>
    %482 = vector.multi_reduction <add>, %481, %cst_188 [1] : vector<64x16xf32> to vector<64xf32>
    %483 = vector.shape_cast %482 : vector<64xf32> to vector<64x1xf32>
    %484 = vector.broadcast %483 : vector<64x1xf32> to vector<64x16xf32>
    %485 = arith.divf %481, %484 : vector<64x16xf32>
    %cst_189 = arith.constant dense<0.000000e+00> : vector<64x32xf32>
    %486 = tpu.matmul %485, %470, %cst_189 {dimension_numbers = #tpu.dot_dimension_numbers<[1], [0], [0], [1], [0, 0, 1, 1], [], []>} : vector<64x16xf32>, vector<16x32xf32>, vector<64x32xf32> -> vector<64x32xf32>
    %487 = arith.mulf %486, %29 : vector<64x32xf32>
    %488 = vector.extract_strided_slice %487 {offsets = [0, 0], sizes = [16, 32], strides = [1, 1]} : vector<64x32xf32> to vector<16x32xf32>
    %489 = vector.extract_strided_slice %487 {offsets = [16, 0], sizes = [16, 32], strides = [1, 1]} : vector<64x32xf32> to vector<16x32xf32>
    %490 = arith.addf %488, %489 : vector<16x32xf32>
    %491 = vector.extract_strided_slice %487 {offsets = [32, 0], sizes = [16, 32], strides = [1, 1]} : vector<64x32xf32> to vector<16x32xf32>
    %492 = arith.addf %490, %491 : vector<16x32xf32>
    %493 = vector.extract_strided_slice %487 {offsets = [48, 0], sizes = [16, 32], strides = [1, 1]} : vector<64x32xf32> to vector<16x32xf32>
    %494 = arith.addf %492, %493 : vector<16x32xf32>
    %cst_190 = arith.constant dense<0.000000e+00> : vector<16x32xf32>
    %495 = tpu.matmul %494, %467, %cst_190 {dimension_numbers = #tpu.dot_dimension_numbers<[1], [0], [0], [1], [0, 0, 1, 1], [], []>} : vector<16x32xf32>, vector<32x32xf32>, vector<16x32xf32> -> vector<16x32xf32>
    %496 = arith.addf %463, %495 : vector<16x32xf32>
    %c592 = arith.constant 592 : index
    %c0_191 = arith.constant 0 : index
    %497 = vector.load %arg1[%c592, %c0_191] : memref<760x128xf32, #tpu.memory_space<vmem>>, vector<1x32xf32>
    %c593 = arith.constant 593 : index
    %c0_192 = arith.constant 0 : index
    %498 = vector.load %arg1[%c593, %c0_192] : memref<760x128xf32, #tpu.memory_space<vmem>>, vector<1x32xf32>
    %cst_193 = arith.constant dense<0.000000e+00> : vector<16xf32>
    %499 = vector.multi_reduction <add>, %496, %cst_193 [1] : vector<16x32xf32> to vector<16xf32>
    %500 = vector.shape_cast %499 : vector<16xf32> to vector<16x1xf32>
    %cst_194 = arith.constant 3.200000e+01 : f32
    %501 = vector.broadcast %cst_194 : f32 to vector<16x1xf32>
    %502 = arith.divf %500, %501 : vector<16x1xf32>
    %503 = vector.broadcast %502 : vector<16x1xf32> to vector<16x32xf32>
    %504 = arith.subf %496, %503 : vector<16x32xf32>
    %505 = arith.mulf %504, %504 : vector<16x32xf32>
    %cst_195 = arith.constant dense<0.000000e+00> : vector<16xf32>
    %506 = vector.multi_reduction <add>, %505, %cst_195 [1] : vector<16x32xf32> to vector<16xf32>
    %507 = vector.shape_cast %506 : vector<16xf32> to vector<16x1xf32>
    %cst_196 = arith.constant 3.200000e+01 : f32
    %508 = vector.broadcast %cst_196 : f32 to vector<16x1xf32>
    %509 = arith.divf %507, %508 : vector<16x1xf32>
    %cst_197 = arith.constant 9.99999974E-6 : f32
    %510 = vector.broadcast %cst_197 : f32 to vector<16x1xf32>
    %511 = arith.addf %509, %510 : vector<16x1xf32>
    %512 = math.rsqrt %511 : vector<16x1xf32>
    %513 = vector.broadcast %512 : vector<16x1xf32> to vector<16x32xf32>
    %514 = arith.mulf %504, %513 : vector<16x32xf32>
    %515 = vector.broadcast %497 : vector<1x32xf32> to vector<16x32xf32>
    %516 = arith.mulf %514, %515 : vector<16x32xf32>
    %517 = vector.broadcast %498 : vector<1x32xf32> to vector<16x32xf32>
    %518 = arith.addf %516, %517 : vector<16x32xf32>
    %c600 = arith.constant 600 : index
    %c0_198 = arith.constant 0 : index
    %519 = vector.load %arg1[%c600, %c0_198] : memref<760x128xf32, #tpu.memory_space<vmem>>, vector<32x64xf32>
    %c632 = arith.constant 632 : index
    %c0_199 = arith.constant 0 : index
    %520 = vector.load %arg1[%c632, %c0_199] : memref<760x128xf32, #tpu.memory_space<vmem>>, vector<1x64xf32>
    %c640 = arith.constant 640 : index
    %c0_200 = arith.constant 0 : index
    %521 = vector.load %arg1[%c640, %c0_200] : memref<760x128xf32, #tpu.memory_space<vmem>>, vector<64x32xf32>
    %c704 = arith.constant 704 : index
    %c0_201 = arith.constant 0 : index
    %522 = vector.load %arg1[%c704, %c0_201] : memref<760x128xf32, #tpu.memory_space<vmem>>, vector<1x32xf32>
    %cst_202 = arith.constant dense<0.000000e+00> : vector<16x64xf32>
    %523 = tpu.matmul %518, %519, %cst_202 {dimension_numbers = #tpu.dot_dimension_numbers<[1], [0], [0], [1], [0, 0, 1, 1], [], []>} : vector<16x32xf32>, vector<32x64xf32>, vector<16x64xf32> -> vector<16x64xf32>
    %524 = vector.broadcast %520 : vector<1x64xf32> to vector<16x64xf32>
    %525 = arith.addf %523, %524 : vector<16x64xf32>
    %cst_203 = arith.constant 0.000000e+00 : f32
    %526 = vector.broadcast %cst_203 : f32 to vector<16x64xf32>
    %527 = arith.maximumf %525, %526 : vector<16x64xf32>
    %cst_204 = arith.constant dense<0.000000e+00> : vector<16x32xf32>
    %528 = tpu.matmul %527, %521, %cst_204 {dimension_numbers = #tpu.dot_dimension_numbers<[1], [0], [0], [1], [0, 0, 1, 1], [], []>} : vector<16x64xf32>, vector<64x32xf32>, vector<16x32xf32> -> vector<16x32xf32>
    %529 = vector.broadcast %522 : vector<1x32xf32> to vector<16x32xf32>
    %530 = arith.addf %528, %529 : vector<16x32xf32>
    %531 = arith.addf %518, %530 : vector<16x32xf32>
    %c712 = arith.constant 712 : index
    %c0_205 = arith.constant 0 : index
    %532 = vector.load %arg1[%c712, %c0_205] : memref<760x128xf32, #tpu.memory_space<vmem>>, vector<1x32xf32>
    %c713 = arith.constant 713 : index
    %c0_206 = arith.constant 0 : index
    %533 = vector.load %arg1[%c713, %c0_206] : memref<760x128xf32, #tpu.memory_space<vmem>>, vector<1x32xf32>
    %cst_207 = arith.constant dense<0.000000e+00> : vector<16xf32>
    %534 = vector.multi_reduction <add>, %531, %cst_207 [1] : vector<16x32xf32> to vector<16xf32>
    %535 = vector.shape_cast %534 : vector<16xf32> to vector<16x1xf32>
    %cst_208 = arith.constant 3.200000e+01 : f32
    %536 = vector.broadcast %cst_208 : f32 to vector<16x1xf32>
    %537 = arith.divf %535, %536 : vector<16x1xf32>
    %538 = vector.broadcast %537 : vector<16x1xf32> to vector<16x32xf32>
    %539 = arith.subf %531, %538 : vector<16x32xf32>
    %540 = arith.mulf %539, %539 : vector<16x32xf32>
    %cst_209 = arith.constant dense<0.000000e+00> : vector<16xf32>
    %541 = vector.multi_reduction <add>, %540, %cst_209 [1] : vector<16x32xf32> to vector<16xf32>
    %542 = vector.shape_cast %541 : vector<16xf32> to vector<16x1xf32>
    %cst_210 = arith.constant 3.200000e+01 : f32
    %543 = vector.broadcast %cst_210 : f32 to vector<16x1xf32>
    %544 = arith.divf %542, %543 : vector<16x1xf32>
    %cst_211 = arith.constant 9.99999974E-6 : f32
    %545 = vector.broadcast %cst_211 : f32 to vector<16x1xf32>
    %546 = arith.addf %544, %545 : vector<16x1xf32>
    %547 = math.rsqrt %546 : vector<16x1xf32>
    %548 = vector.broadcast %547 : vector<16x1xf32> to vector<16x32xf32>
    %549 = arith.mulf %539, %548 : vector<16x32xf32>
    %550 = vector.broadcast %532 : vector<1x32xf32> to vector<16x32xf32>
    %551 = arith.mulf %549, %550 : vector<16x32xf32>
    %552 = vector.broadcast %533 : vector<1x32xf32> to vector<16x32xf32>
    %553 = arith.addf %551, %552 : vector<16x32xf32>
    %c720 = arith.constant 720 : index
    %c0_212 = arith.constant 0 : index
    %554 = vector.load %arg1[%c720, %c0_212] : memref<760x128xf32, #tpu.memory_space<vmem>>, vector<32x128xf32>
    %c752 = arith.constant 752 : index
    %c0_213 = arith.constant 0 : index
    %555 = vector.load %arg1[%c752, %c0_213] : memref<760x128xf32, #tpu.memory_space<vmem>>, vector<1x128xf32>
    %cst_214 = arith.constant dense<0.000000e+00> : vector<16x128xf32>
    %556 = tpu.matmul %553, %554, %cst_214 {dimension_numbers = #tpu.dot_dimension_numbers<[1], [0], [0], [1], [0, 0, 1, 1], [], []>} : vector<16x32xf32>, vector<32x128xf32>, vector<16x128xf32> -> vector<16x128xf32>
    %557 = vector.broadcast %555 : vector<1x128xf32> to vector<16x128xf32>
    %558 = arith.addf %556, %557 : vector<16x128xf32>
    %c0_215 = arith.constant 0 : index
    %c0_216 = arith.constant 0 : index
    %559 = vector.load %arg2[%c0_215, %c0_216] : memref<16x128xf32, #tpu.memory_space<vmem>>, vector<16x128xf32>
    tpu.vector_store %arg2[%c0_215, %c0_216], %558 {strides = array<i32>} : memref<16x128xf32, #tpu.memory_space<vmem>>, vector<16x128xf32>,
    return
  }
}

</mosaic_0001>

<bundles_post_ra>
// kernel: slr_transformer_forward.1
= control target key start
LH: loop header
LB: loop body
LE: loop exit
PB: predicated region body
PF: predicated region fallthrough
CT: control target
= control target key end

     0   :  { %7 = vsyncpa [#allocation3], 0  ;;  %s8647_s0 = inlined_call_operand.vmem [shape: f32[32,32], index: 0, kind: input, shape index: {}]   ;;  %s8648_s1 = inlined_call_operand.hbm [shape: f32[760,128], index: 1, kind: input, shape index: {}]   ;;  %s8649_s2 = inlined_call_operand.hbm [shape: f32[16,128], index: 2, kind: output, shape index: {}]  }
   0x1   :  { %8 = vsyncpa [#allocation4], 0  ;;  %s7821_s9 = smov [#allocation2]   ;;  %s7773_s13 = scalar_lea.hbm %s8648_s1, 12160 }
   0x2   :  { %s16_s10 = sshll.u32 %s7821_s9, 4  ;;  %p7774_p0 = scmp.ne.s32.totalorder %s8648_s1, %s7773_s13  ;;  %s17_s10 = int_to_ptr.vmem [resolvable:$true] %s16_s10 }
   0x3   :  { %p7777_p1 = scmp.lt.u32.totalorder %s7773_s13, %s8648_s1 }
   0x5   :  { %p7779_p2 = pnand %p7777_p1, %p7774_p0 }
   0x7   :  { %7782 = shalt.err (!%p7779_p2)
}
   0x8   :  { %s7783_s18 = scalar_lea.vmem %s17_s10, 12160  ;;  %p7788_p4 = scmp.lt.s32.totalorder %s17_s10, %s17_s10 }
   0x9   :  { %p7784_p3 = scmp.ne.s32.totalorder %s17_s10, %s7783_s18  ;;  %p7789_p5 = scmp.lt.s32.totalorder %s7783_s18, %s7783_s18 }
   0xb   :  { %p7790_p6 = por %p7789_p5, %p7788_p4 }
   0xd   :  { %p7791_p7 = pnand %p7790_p6, %p7784_p3 }
   0xf   :  { %7794 = shalt.err (!%p7791_p7)
}
  0x10   :  { %s7822_s19 = smov 128   ;;  %s7823_s20 = smov 8  }
  0x11   :  { %22 = dma.hbm_to_vmem [thread:$0]  %s8648_s1, 12160, %s17_s10, [#allocation3], %s7822_s19, %s7822_s19, %s7823_s20  }
  0x12   :  { %7817 = dma.done.wait [#allocation3], 12160  }
  0x13   :  { %7818 = vsyncadd [#allocation3], 4294955136  ;;  %vm93_vm0 = vcmask 261120   ;;  %v89_v0 = vld [vmem:[#allocation2] sm:$0xff]  ;;  %v90_v1 = vld [vmem:[#allocation2 + $0x8] sm:$0xff]  ;;  %s7824_s1 = smov 96   ;;  %v26_v18 = vlaneseq }
  0x14   :  { %v91_v2 = vld [vmem:[#allocation2 + $0x10] sm:$0xff]  ;;  %v7860_v3 = vpack.i.bf16 %v90_v1, %v89_v0  ;;  %v92_v4 = vld [vmem:[#allocation2 + $0x18] sm:$0xff]  ;;  %v6996_v5 = vpack.c.bf16 %v90_v1, %v89_v0  ;;  %v7865_v6 = vld [vmem:[%s8647_s0] sm:$0xff]  ;;  %v7825_v20 = vmov 0.0   ;;  %s7826_s27 = smov 64   ;;  %vm512_vm12 = vcmask 130048  }
  0x15   :  { %6428 = vmatprep.mubr.msk.f32.mxu1 %vm93_vm0, %v7865_v6  ;;  %v7000_v7 = vpack.c.bf16 %v92_v4, %v91_v2  ;;  %6417 = vmatprep.mubr.msk.f32.mxu0 %vm93_vm0, %v7865_v6  ;;  %v7873_v8 = vpack.i.bf16 %v92_v4, %v91_v2  ;;  %v7880_v9 = vld [vmem:[%s8647_s0 + $0x8] sm:$0xff]  ;;  %v7889_v19 = vand.u32 127, %v26_v18  ;;  %vm7905_vm2 = vmpackc.low %vm93_vm0, %vm93_vm0  ;;  %v7827_v49 = vmov -1e+30   ;;  %s7828_s28 = smov 32  }
  0x16   :  { %7362 = vrot.lane.b32.xlu0 %v7860_v3, %s7824_s1  ;;  %6997 = vmatprep.subr.bf16.mxu0 %v6996_v5  ;;  %vm985_vm13 = vcmask 523264  }
  0x17   :  { %6999 = vmatpush3.bf16.msra.mxu0 %v6996_v5  ;;  %vm29_vm1 = vcmp.lt.s32.totalorder %v7889_v19, 8  ;;  %7372 = vrot.lane.b32.xlu1 %v7860_v3, %s7826_s27  ;;  %vm33_vm3 = vcmp.ge.s32.totalorder %v7889_v19, 8  ;;  %vm34_vm4 = vcmp.lt.s32.totalorder %v7889_v19, 16  ;;  %vm38_vm6 = vcmp.ge.s32.totalorder %v7889_v19, 16 }
  0x18   :  { %7001 = vmatprep.subr.bf16.mxu0 %v7000_v7  ;;  %v7895_v21 = vsel %vm29_vm1, 1.0, %v7825_v20  ;;  %vm7915_vm5 = vmand %vm33_vm3, %vm34_vm4  ;;  %vm39_vm7 = vcmp.lt.s32.totalorder %v7889_v19, 24  ;;  %vm43_vm9 = vcmp.ge.s32.totalorder %v7889_v19, 24  ;;  %vm44_vm10 = vcmp.lt.s32.totalorder %v7889_v19, 32 }
  0x19   :  { %v7924_v30 = vsel %vm7915_vm5, 1.0, %v7825_v20  ;;  %vm40_vm8 = vmand %vm38_vm6, %vm39_vm7  ;;  %v7952_v50 = vsel %vm7915_vm5, 0.0, %v7827_v49  ;;  %v7956_v53 = vsel %vm29_vm1, 0.0, %v7827_v49 }
  0x1a   :  { %7367 = vrot.lane.b32.xlu0 %v7873_v8, %s7824_s1  ;;  %v7931_v33 = vsel %vm40_vm8, 1.0, %v7825_v20  ;;  %vm45_vm11 = vmand %vm43_vm9, %vm44_vm10 }
  0x1b   :  { %7003 = vmatpush3.bf16.msra.mxu0 %v7000_v7  ;;  %7377 = vrot.lane.b32.xlu1 %v7873_v8, %s7826_s27  ;;  %v7938_v36 = vsel %vm45_vm11, 1.0, %v7825_v20 }
  0x1e   :  { %6418 = vmatmul.mubr.msk.f32.vlgmr.msra.gmra.mrb[0].mxu0 %vm93_vm0, %v7880_v9 }
  0x1f   :  { %6439 = vmatprep.mubr.msk.f32.mxu0 %vm93_vm0, %v7865_v6 }
  0x88   :  { %v7363_v10 = vpop.permute.xlu0 %7362 }
  0x89   :  { %v7365_v11 = vunpack.i.h.bf16 %v7363_v10  ;;  %v7364_v12 = vunpack.i.l.bf16 %v7363_v10  ;;  %v7373_v40 = vpop.permute.xlu1 %7372 }
  0x8a   :  { %v7375_v41 = vunpack.i.h.bf16 %v7373_v40  ;;  %v7374_v42 = vunpack.i.l.bf16 %v7373_v40 }
  0x8b   :  { %v7004_v13 = vpack.c.bf16 %v7365_v11, %v7364_v12 }
  0x8c   :  { %v7368_v14 = vpop.permute.xlu0 %7367  ;;  %v7012_v43 = vpack.c.bf16 %v7375_v41, %v7374_v42 }
  0x8d   :  { %v7370_v15 = vunpack.i.h.bf16 %v7368_v14  ;;  %v7369_v16 = vunpack.i.l.bf16 %v7368_v14  ;;  %7005 = vmatprep.subr.bf16.mxu1 %v7004_v13  ;;  %v7378_v44 = vpop.permute.xlu1 %7377 }
  0x8e   :  { %7007 = vmatpush3.bf16.msra.mxu1 %v7004_v13  ;;  %v7380_v45 = vunpack.i.h.bf16 %v7378_v44  ;;  %v7379_v46 = vunpack.i.l.bf16 %v7378_v44  ;;  %7013 = vmatprep.subr.bf16.mxu0 %v7012_v43 }
  0x8f   :  { %v7008_v17 = vpack.c.bf16 %v7370_v15, %v7369_v16  ;;  %7015 = vmatpush3.bf16.msra.mxu0 %v7012_v43 }
  0x90   :  { %v7016_v47 = vpack.c.bf16 %v7380_v45, %v7379_v46 }
  0x91   :  { %7009 = vmatprep.subr.bf16.mxu1 %v7008_v17 }
  0x92   :  { %7011 = vmatpush3.bf16.msra.mxu1 %v7008_v17  ;;  %7017 = vmatprep.subr.bf16.mxu0 %v7016_v47 }
  0x93   :  { %7019 = vmatpush3.bf16.msra.mxu0 %v7016_v47 }
  0x95   :  { %6429 = vmatmul.mubr.msk.f32.vlgmr.msra.gmra.mrb[0].mxu1 %vm93_vm0, %v7880_v9 }
  0x96   :  { %6440 = vmatmul.mubr.msk.f32.vlgmr.msra.gmra.mrb[2].mxu0 %vm93_vm0, %v7880_v9 }
  0xf1   :  { %v6419_v22 = vpop.f32.mrb[0].mxu0 }
  0xf2   :  { %v166_v23 = vpop.f32.mrb[1].mxu0  ;;  %v354_v31 = vmul.f32 %v6419_v22, %v7895_v21  ;;  %v356_v34 = vmul.f32 %v6419_v22, %v7924_v30  ;;  %v358_v37 = vmul.f32 %v6419_v22, %v7931_v33  ;;  %v360_v39 = vmul.f32 %v6419_v22, %v7938_v36 }
  0xf3   :  { %v353_v24 = vmul.f32 %v7895_v21, %v166_v23  ;;  %v355_v32 = vmul.f32 %v7924_v30, %v166_v23  ;;  %v357_v35 = vmul.f32 %v7931_v33, %v166_v23  ;;  %v359_v38 = vmul.f32 %v7938_v36, %v166_v23 }
  0xf5   :  { %6446 = vmatprep.mubr.msk.f32.mxu1 %vm93_vm0, %v353_v24 }
 0x168   :  { %v6430_v25 = vpop.f32.mrb[0].mxu1 }
 0x169   :  { %v257_v26 = vpop.f32.mrb[1].mxu1 }
 0x16a   :  { %v7020_v28 = vpack.c.bf16 %v6430_v25, %v257_v26 }
 0x16c   :  { %7022 = vmatprep.subr.msk.bf16.mxu1 %vm7905_vm2, %v7020_v28 }
 0x16d   :  { %7025 = vmatpush3.bf16.xpose.msk.msra.mxu1 %vm7905_vm2, %v7020_v28 }
 0x174   :  { %6447 = vmatmul.mubr.msk.f32.vlgmr.msra.gmra.mrb[2].mxu1 %vm93_vm0, %v354_v31 }
 0x175   :  { %6449 = vmatprep.mubr.msk.f32.mxu1 %vm93_vm0, %v355_v32 }
 0x178   :  { %6450 = vmatmul.mubr.msk.f32.gmra.mrb[4].mxu1 %vm93_vm0, %v356_v34 }
 0x179   :  { %6452 = vmatprep.mubr.msk.f32.mxu1 %vm93_vm0, %v357_v35 }
 0x17c   :  { %6453 = vmatmul.mubr.msk.f32.gmra.mrb[6].mxu1 %vm93_vm0, %v358_v37 }
 0x17d   :  { %6455 = vmatprep.mubr.msk.f32.mxu1 %vm93_vm0, %v359_v38 }
 0x180   :  { %6456 = vmatmul.mubr.msk.f32.gmra.mrb[8].mxu1 %vm93_vm0, %v360_v39 }
 0x247   :  { %v6448_v48 = vpop.f32.mrb[2].mxu1 }
 0x248   :  { %v497_v51 = vmul.f32 0.17677669, %v6448_v48  ;;  %v457_v52 = vpop.f32.mrb[3].mxu1 }
 0x249   :  { %v496_v54 = vmul.f32 0.17677669, %v457_v52 }
 0x24a   :  { %v505_v55 = vadd.f32 %v497_v51, %v7952_v50 }
 0x24b   :  { %v6451_v56 = vpop.f32.mrb[4].mxu1  ;;  %v504_v57 = vadd.f32 %v496_v54, %v7956_v53 }
 0x24c   :  { %v499_v58 = vmul.f32 0.17677669, %v6451_v56  ;;  %v467_v59 = vpop.f32.mrb[5].mxu1  ;;  %v516_v60 = vsel %vm512_vm12, %v505_v55, -inf }
 0x24d   :  { %v498_v61 = vmul.f32 0.17677669, %v467_v59  ;;  %517 = vmax.xlane.f32.xlu1 %v516_v60  ;;  %v513_v62 = vsel %vm512_vm12, %v504_v57, -inf }
 0x24e   :  { %514 = vmax.xlane.f32.xlu0 %v513_v62  ;;  %v507_v2 = vadd.f32 %v499_v58, %v7952_v50 }
 0x24f   :  { %v6454_v63 = vpop.f32.mrb[6].mxu1  ;;  %v506_v0 = vadd.f32 %v498_v61, %v7956_v53 }
 0x250   :  { %v477_v1 = vpop.f32.mrb[7].mxu1  ;;  %v501_v4 = vmul.f32 0.17677669, %v6454_v63  ;;  %v522_v13 = vsel %vm512_vm12, %v507_v2, -inf }
 0x251   :  { %v500_v5 = vmul.f32 0.17677669, %v477_v1  ;;  %v519_v7 = vsel %vm512_vm12, %v506_v0, -inf }
 0x252   :  { %520 = vmax.xlane.f32.xlu0 %v519_v7  ;;  %v509_v17 = vadd.f32 %v501_v4, %v7952_v50 }
 0x253   :  { %v6457_v10 = vpop.f32.mrb[8].mxu1  ;;  %v508_v11 = vadd.f32 %v500_v5, %v7956_v53 }
 0x254   :  { %v487_v12 = vpop.f32.mrb[9].mxu1  ;;  %v503_v14 = vmul.f32 0.17677669, %v6457_v10  ;;  %v528_v23 = vsel %vm512_vm12, %v509_v17, -inf }
 0x255   :  { %v502_v15 = vmul.f32 0.17677669, %v487_v12  ;;  %v525_v16 = vsel %vm512_vm12, %v508_v11, -inf }
 0x256   :  { %523 = vmax.xlane.f32.xlu0 %v522_v13  ;;  %526 = vmax.xlane.f32.xlu1 %v525_v16  ;;  %v511_v25 = vadd.f32 %v503_v14, %v7952_v50  ;;  %v6441_v14 = vpop.f32.mrb[2].mxu0 }
 0x257   :  { %v510_v22 = vadd.f32 %v502_v15, %v7956_v53  ;;  %v344_v15 = vpop.f32.mrb[3].mxu0 }
 0x258   :  { %v534_v26 = vsel %vm512_vm12, %v511_v25, -inf  ;;  %v7026_v16 = vpack.c.bf16 %v6441_v14, %v344_v15 }
 0x259   :  { %v531_v24 = vsel %vm512_vm12, %v510_v22, -inf }
 0x25a   :  { %529 = vmax.xlane.f32.xlu0 %v528_v23  ;;  %532 = vmax.xlane.f32.xlu1 %v531_v24 }
 0x25b   :  { %7027 = vmatprep.subr.bf16.mxu0 %v7026_v16 }
 0x25c   :  { %7029 = vmatpush3.bf16.msra.mxu0 %v7026_v16 }
 0x25e   :  { %535 = vmax.xlane.f32.xlu0 %v534_v26 }
 0x2da   :  { %v518_v28 = vpop.xlane.xlu1 %517 }
 0x2db   :  { %v538_v31 = vsub.f32 %v505_v55, %v518_v28  ;;  %v515_v32 = vpop.xlane.xlu0 %514 }
 0x2dc   :  { %v537_v34 = vsub.f32 %v504_v57, %v515_v32 }
 0x2dd   :  { %v547_v35 = vmul.f32 1.442695, %v538_v31 }
 0x2de   :  { %v545_v37 = vmul.f32 1.442695, %v537_v34 }
 0x2df   :  { %7541 = vpow2.f32 %v547_v35  ;;  %v521_v38 = vpop.xlane.xlu0 %520 }
 0x2e0   :  { %7543 = vpow2.f32 %v545_v37  ;;  %v539_v39 = vsub.f32 %v506_v0, %v521_v38 }
 0x2e2   :  { %v549_v40 = vmul.f32 1.442695, %v539_v39 }
 0x2e3   :  { %v524_v41 = vpop.xlane.xlu0 %523  ;;  %v527_v42 = vpop.xlane.xlu1 %526 }
 0x2e4   :  { %7545 = vpow2.f32 %v549_v40  ;;  %v540_v43 = vsub.f32 %v507_v2, %v524_v41  ;;  %v541_v44 = vsub.f32 %v508_v11, %v527_v42 }
 0x2e6   :  { %v551_v45 = vmul.f32 1.442695, %v540_v43  ;;  %v553_v46 = vmul.f32 1.442695, %v541_v44 }
 0x2e7   :  { %v530_v47 = vpop.xlane.xlu0 %529  ;;  %v533_v48 = vpop.xlane.xlu1 %532 }
 0x2e8   :  { %7547 = vpow2.f32 %v551_v45  ;;  %v542_v49 = vsub.f32 %v509_v17, %v530_v47  ;;  %v543_v51 = vsub.f32 %v510_v22, %v533_v48 }
 0x2e9   :  { %v7542_v52 = vpop.eup %7541  ;;  %7549 = vpow2.f32 %v553_v46 }
 0x2ea   :  { %v7544_v54 = vpop.eup %7543  ;;  %v555_v55 = vmul.f32 1.442695, %v542_v49  ;;  %v557_v56 = vmul.f32 1.442695, %v543_v51  ;;  %v564_v57 = vsel %vm512_vm12, %v7542_v52, 0.0 }
 0x2eb   :  { %565 = vadd.xlane.f32.xlu0 %v564_v57  ;;  %v536_v58 = vpop.xlane.xlu0 %535  ;;  %v561_v59 = vsel %vm512_vm12, %v7544_v54, 0.0 }
 0x2ec   :  { %7551 = vpow2.f32 %v555_v55  ;;  %v544_v60 = vsub.f32 %v511_v25, %v536_v58  ;;  %562 = vadd.xlane.f32.xlu1 %v561_v59 }
 0x2ed   :  { %7553 = vpow2.f32 %v557_v56 }
 0x2ee   :  { %v7546_v61 = vpop.eup %7545  ;;  %v559_v62 = vmul.f32 1.442695, %v544_v60 }
 0x2ef   :  { %v567_v63 = vsel %vm512_vm12, %v7546_v61, 0.0 }
 0x2f0   :  { %7555 = vpow2.f32 %v559_v62  ;;  %568 = vadd.xlane.f32.xlu1 %v567_v63 }
 0x2f2   :  { %v7548_v0 = vpop.eup %7547 }
 0x2f3   :  { %v7550_v1 = vpop.eup %7549  ;;  %v570_v2 = vsel %vm512_vm12, %v7548_v0, 0.0 }
 0x2f4   :  { %571 = vadd.xlane.f32.xlu0 %v570_v2  ;;  %v573_v4 = vsel %vm512_vm12, %v7550_v1, 0.0 }
 0x2f5   :  { %574 = vadd.xlane.f32.xlu1 %v573_v4 }
 0x2f6   :  { %v7552_v5 = vpop.eup %7551 }
 0x2f7   :  { %v7554_v7 = vpop.eup %7553  ;;  %v576_v10 = vsel %vm512_vm12, %v7552_v5, 0.0 }
 0x2f8   :  { %577 = vadd.xlane.f32.xlu0 %v576_v10  ;;  %v579_v11 = vsel %vm512_vm12, %v7554_v7, 0.0 }
 0x2f9   :  { %580 = vadd.xlane.f32.xlu1 %v579_v11 }
 0x2fa   :  { %v7556_v12 = vpop.eup %7555 }
 0x2fb   :  { %v582_v13 = vsel %vm512_vm12, %v7556_v12, 0.0 }
 0x2fc   :  { %583 = vadd.xlane.f32.xlu0 %v582_v13 }
 0x30a   :  { %7382 = vrot.lane.b32.xlu1 %v7860_v3, %s7828_s28 }
 0x312   :  { %7387 = vrot.lane.b32.xlu0 %v7873_v8, %s7828_s28 }
 0x378   :  { %v566_v17 = vpop.xlane.xlu0 %565 }
 0x379   :  { %7557 = vrcp.f32 %v566_v17  ;;  %v563_v22 = vpop.xlane.xlu1 %562 }
 0x37a   :  { %7559 = vrcp.f32 %v563_v22 }
 0x37d   :  { %v569_v23 = vpop.xlane.xlu1 %568 }
 0x37e   :  { %7561 = vrcp.f32 %v569_v23 }
 0x381   :  { %v572_v24 = vpop.xlane.xlu0 %571 }
 0x382   :  { %7563 = vrcp.f32 %v572_v24  ;;  %v575_v25 = vpop.xlane.xlu1 %574 }
 0x383   :  { %v7558_v26 = vpop.eup %7557  ;;  %7565 = vrcp.f32 %v575_v25 }
 0x384   :  { %v7560_v28 = vpop.eup %7559  ;;  %v588_v3 = vmul.f32 %v7558_v26, %v7542_v52 }
 0x385   :  { %v578_v31 = vpop.xlane.xlu0 %577  ;;  %v586_v32 = vmul.f32 %v7560_v28, %v7544_v54 }
 0x386   :  { %7567 = vrcp.f32 %v578_v31  ;;  %v581_v34 = vpop.xlane.xlu1 %580 }
 0x387   :  { %7569 = vrcp.f32 %v581_v34  ;;  %6462 = vmatprep.mubr.msk.f32.mxu0 %vm512_vm12, %v586_v32 }
 0x388   :  { %v7562_v8 = vpop.eup %7561  ;;  %6463 = vmatmul.mubr.msk.f32.vlgmr.msra.gmra.mrb[4].mxu0 %vm512_vm12, %v588_v3 }
 0x389   :  { %v584_v35 = vpop.xlane.xlu0 %583  ;;  %v590_v37 = vmul.f32 %v7562_v8, %v7546_v61 }
 0x38a   :  { %7571 = vrcp.f32 %v584_v35  ;;  %v7383_v48 = vpop.permute.xlu1 %7382 }
 0x38b   :  { %6465 = vmatprep.mubr.msk.f32.mxu0 %vm512_vm12, %v590_v37  ;;  %v7385_v49 = vunpack.i.h.bf16 %v7383_v48  ;;  %v7384_v51 = vunpack.i.l.bf16 %v7383_v48  ;;  %v886_v48 = vld [vmem:[#allocation2 + $0x58] sm:$0xff] }
 0x38c   :  { %v7564_v38 = vpop.eup %7563 }
 0x38d   :  { %v7566_v39 = vpop.eup %7565  ;;  %v592_v40 = vmul.f32 %v7564_v38, %v7548_v0  ;;  %v7030_v52 = vpack.c.bf16 %v7385_v49, %v7384_v51  ;;  %v7388_v54 = vpop.permute.xlu0 %7387  ;;  %v887_v49 = vld [vmem:[#allocation2 + $0x60] sm:$0xff] }
 0x38e   :  { %v594_v41 = vmul.f32 %v7566_v39, %v7550_v1  ;;  %v7390_v55 = vunpack.i.h.bf16 %v7388_v54  ;;  %v7389_v56 = vunpack.i.l.bf16 %v7388_v54 }
 0x38f   :  { %6466 = vmatmul.mubr.msk.f32.gmra.mrb[6].mxu0 %vm512_vm12, %v592_v40  ;;  %7031 = vmatprep.subr.bf16.mxu1 %v7030_v52 }
 0x390   :  { %v7568_v42 = vpop.eup %7567  ;;  %6468 = vmatprep.mubr.msk.f32.mxu0 %vm512_vm12, %v594_v41  ;;  %7033 = vmatpush3.bf16.msra.mxu1 %v7030_v52  ;;  %v7034_v57 = vpack.c.bf16 %v7390_v55, %v7389_v56  ;;  %v888_v52 = vld [vmem:[#allocation2 + $0x68] sm:$0xff]  ;;  %v889_v55 = vld [vmem:[#allocation2 + $0x70] sm:$0xff]  ;;  %v890_v56 = vld [vmem:[#allocation2 + $0x78] sm:$0xff] }
 0x391   :  { %v7570_v43 = vpop.eup %7569  ;;  %v596_v44 = vmul.f32 %v7568_v42, %v7552_v5  ;;  %v881_v42 = vld [vmem:[#allocation2 + $0x30] sm:$0xff]  ;;  %v7050_v54 = vpack.c.bf16 %v888_v52, %v887_v49  ;;  %v1110_v49 = vld [vmem:[#allocation2 + $0xa8] sm:$0xff] }
 0x392   :  { %v598_v45 = vmul.f32 %v7570_v43, %v7554_v7  ;;  %7035 = vmatprep.subr.bf16.mxu1 %v7034_v57  ;;  %v882_v43 = vld [vmem:[#allocation2 + $0x38] sm:$0xff]  ;;  %v1111_v52 = vld [vmem:[#allocation2 + $0xb0] sm:$0xff] }
 0x393   :  { %6469 = vmatmul.mubr.msk.f32.gmra.mrb[8].mxu0 %vm512_vm12, %v596_v44 }
 0x394   :  { %v7572_v46 = vpop.eup %7571  ;;  %6471 = vmatprep.mubr.msk.f32.mxu0 %vm512_vm12, %v598_v45  ;;  %7037 = vmatpush3.bf16.msra.mxu1 %v7034_v57  ;;  %v883_v45 = vld [vmem:[#allocation2 + $0x40] sm:$0xff]  ;;  %v7054_v57 = vpack.c.bf16 %v890_v56, %v889_v55 }
 0x395   :  { %v600_v47 = vmul.f32 %v7572_v46, %v7556_v12  ;;  %v7042_v46 = vpack.c.bf16 %v883_v45, %v882_v43 }
 0x397   :  { %6472 = vmatmul.mubr.msk.f32.gmra.mrb[10].mxu0 %vm512_vm12, %v600_v47  ;;  %v885_v47 = vld [vmem:[#allocation2 + $0x50] sm:$0xff] }
 0x398   :  { %v7046_v51 = vpack.c.bf16 %v886_v48, %v885_v47  ;;  %v1109_v48 = vld [vmem:[#allocation2 + $0xa0] sm:$0xff] }
 0x399   :  { %v7062_v56 = vpack.c.bf16 %v1110_v49, %v1109_v48 }
 0x39a   :  { %7047 = vmatprep.subr.bf16.mxu1 %v7046_v51 }
 0x45b   :  { %v6464_v58 = vpop.f32.mrb[4].mxu0 }
 0x45c   :  { %v691_v59 = vpop.f32.mrb[5].mxu0  ;;  %v731_v61 = vmul.f32 %v6464_v58, %v7895_v21 }
 0x45d   :  { %v730_v0 = vmul.f32 %v7895_v21, %v691_v59 }
 0x462   :  { %v6467_v60 = vpop.f32.mrb[6].mxu0 }
 0x463   :  { %v733_v62 = vmul.f32 %v6467_v60, %v7924_v30  ;;  %v701_v63 = vpop.f32.mrb[7].mxu0 }
 0x464   :  { %v732_v1 = vmul.f32 %v7924_v30, %v701_v63 }
 0x465   :  { %v739_v2 = vadd.f32 %v733_v62, %v731_v61 }
 0x466   :  { %v738_v4 = vadd.f32 %v732_v1, %v730_v0  ;;  %v6470_v5 = vpop.f32.mrb[8].mxu0  ;;  %v5898_v1 = vld [vmem:[#allocation2 + $0x20] ss:$0 sm:$0xff] }
 0x467   :  { %v735_v7 = vmul.f32 %v6470_v5, %v7931_v33  ;;  %v711_v10 = vpop.f32.mrb[9].mxu0 }
 0x468   :  { %v734_v11 = vmul.f32 %v7931_v33, %v711_v10 }
 0x469   :  { %v741_v12 = vadd.f32 %v739_v2, %v735_v7  ;;  %v5899_v7 = vld [vmem:[#allocation2 + $0x21] ss:$0 sm:$0xff] }
 0x46a   :  { %v740_v13 = vadd.f32 %v738_v4, %v734_v11  ;;  %v6473_v14 = vpop.f32.mrb[10].mxu0 }
 0x46b   :  { %v737_v15 = vmul.f32 %v6473_v14, %v7938_v36  ;;  %v721_v16 = vpop.f32.mrb[11].mxu0  ;;  %v891_v14 = vld [vmem:[#allocation2 + $0x80] sm:$0xff] }
 0x46c   :  { %v736_v17 = vmul.f32 %v7938_v36, %v721_v16 }
 0x46d   :  { %v743_v22 = vadd.f32 %v741_v12, %v737_v15  ;;  %v892_v15 = vld [vmem:[#allocation2 + $0x88] sm:$0xff] }
 0x46e   :  { %v742_v23 = vadd.f32 %v740_v13, %v736_v17  ;;  %v7058_v16 = vpack.c.bf16 %v892_v15, %v891_v14  ;;  %v5900_v17 = vld [vmem:[#allocation2 + $0x48] ss:$0 sm:$0xff] }
 0x470   :  { %6482 = vmatprep.mubr.msk.f32.mxu1 %vm93_vm0, %v742_v23 }
 0x471   :  { %6483 = vmatmul.mubr.msk.f32.vlgmr.msra.gmra.mrb[10].mxu1 %vm93_vm0, %v743_v22 }
 0x472   :  { %7049 = vmatpush3.bf16.msra.mxu1 %v7046_v51  ;;  %v8018_v51 = vpack.i.bf16 %v1110_v49, %v1109_v48 }
 0x473   :  { %7051 = vmatprep.subr.bf16.mxu1 %v7050_v54 }
 0x476   :  { %7053 = vmatpush3.bf16.msra.mxu1 %v7050_v54  ;;  %v1112_v54 = vld [vmem:[#allocation2 + $0xb8] sm:$0xff] }
 0x477   :  { %7055 = vmatprep.subr.bf16.mxu1 %v7054_v57  ;;  %v8022_v55 = vpack.i.bf16 %v1112_v54, %v1111_v52 }
 0x47a   :  { %7057 = vmatpush3.bf16.msra.mxu1 %v7054_v57  ;;  %v7066_v57 = vpack.c.bf16 %v1112_v54, %v1111_v52 }
 0x47b   :  { %7059 = vmatprep.subr.bf16.mxu1 %v7058_v16 }
 0x47e   :  { %7061 = vmatpush3.bf16.msra.mxu1 %v7058_v16 }
 0x544   :  { %v6484_v24 = vpop.f32.mrb[10].mxu1 }
 0x545   :  { %v838_v25 = vadd.f32 %v6484_v24, %v7880_v9  ;;  %v828_v26 = vpop.f32.mrb[11].mxu1 }
 0x546   :  { %v837_v28 = vadd.f32 %v828_v26, %v7865_v6  ;;  %v880_v6 = vld [vmem:[#allocation2 + $0x28] sm:$0xff] }
 0x547   :  { %v844_v31 = vsel %vm93_vm0, %v838_v25, 0.0  ;;  %v7038_v44 = vpack.c.bf16 %v881_v42, %v880_v6 }
 0x548   :  { %845 = vadd.xlane.f32.xlu0 %v844_v31  ;;  %v841_v32 = vsel %vm93_vm0, %v837_v28, 0.0  ;;  %v5903_v31 = vld [vmem:[#allocation2 + $0x90] ss:$0 sm:$0xff] }
 0x549   :  { %842 = vadd.xlane.f32.xlu1 %v841_v32  ;;  %7039 = vmatprep.subr.bf16.mxu0 %v7038_v44 }
 0x54a   :  { %7041 = vmatpush3.bf16.msra.mxu0 %v7038_v44 }
 0x54b   :  { %7043 = vmatprep.subr.bf16.mxu0 %v7042_v46 }
 0x54e   :  { %7045 = vmatpush3.bf16.msra.mxu0 %v7042_v46 }
 0x54f   :  { %7063 = vmatprep.subr.bf16.mxu0 %v7062_v56 }
 0x5d5   :  { %v846_v34 = vpop.xlane.xlu0 %845 }
 0x5d6   :  { %v849_v3 = vmul.f32 0.03125, %v846_v34  ;;  %v843_v8 = vpop.xlane.xlu1 %842 }
 0x5d7   :  { %v848_v35 = vmul.f32 0.03125, %v843_v8 }
 0x5d8   :  { %v851_v37 = vsub.f32 %v838_v25, %v849_v3 }
 0x5d9   :  { %v850_v38 = vsub.f32 %v837_v28, %v848_v35 }
 0x5da   :  { %v853_v39 = vmul.f32 %v851_v37, %v851_v37 }
 0x5db   :  { %v852_v40 = vmul.f32 %v850_v38, %v850_v38 }
 0x5dc   :  { %v857_v41 = vsel %vm93_vm0, %v853_v39, 0.0 }
 0x5dd   :  { %858 = vadd.xlane.f32.xlu0 %v857_v41  ;;  %v854_v9 = vsel %vm93_vm0, %v852_v40, 0.0 }
 0x5de   :  { %855 = vadd.xlane.f32.xlu1 %v854_v9 }
 0x66a   :  { %v859_v58 = vpop.xlane.xlu0 %858 }
 0x66b   :  { %v861_v59 = vmul.f32 0.03125, %v859_v58  ;;  %v856_v60 = vpop.xlane.xlu1 %855 }
 0x66c   :  { %v860_v61 = vmul.f32 0.03125, %v856_v60 }
 0x66d   :  { %v863_v62 = vadd.f32 1e-05, %v861_v59 }
 0x66e   :  { %v862_v63 = vadd.f32 1e-05, %v860_v61 }
 0x66f   :  { %7573 = vrsqrt.f32 %v863_v62 }
 0x670   :  { %7575 = vrsqrt.f32 %v862_v63 }
 0x679   :  { %v7574_v0 = vpop.eup %7573 }
 0x67a   :  { %v7576_v2 = vpop.eup %7575  ;;  %v867_v4 = vmul.f32 %v7574_v0, %v851_v37 }
 0x67b   :  { %v866_v5 = vmul.f32 %v7576_v2, %v850_v38 }
 0x67c   :  { %v873_v10 = vmul.f32 %v5898_v1, %v867_v4 }
 0x67d   :  { %v872_v11 = vmul.f32 %v5898_v1, %v866_v5 }
 0x67e   :  { %v879_v13 = vadd.f32 %v5899_v7, %v873_v10 }
 0x67f   :  { %v878_v12 = vadd.f32 %v5899_v7, %v872_v11 }
 0x681   :  { %6493 = vmatprep.mubr.msk.f32.mxu0 %vm93_vm0, %v878_v12 }
 0x682   :  { %6494 = vmatmul.mubr.msk.f32.vlgmr.msra.gmra.mrb[12].mxu0 %vm93_vm0, %v879_v13 }
 0x683   :  { %7065 = vmatpush3.bf16.msra.mxu0 %v7062_v56 }
 0x684   :  { %7067 = vmatprep.subr.bf16.mxu0 %v7066_v57 }
 0x687   :  { %7069 = vmatpush3.bf16.msra.mxu0 %v7066_v57 }
 0x755   :  { %v6495_v22 = vpop.f32.mrb[12].mxu0 }
 0x756   :  { %v976_v23 = vadd.f32 %v6495_v22, %v5900_v17  ;;  %v970_v24 = vpop.f32.mrb[13].mxu0 }
 0x757   :  { %v971_v25 = vadd.f32 %v5900_v17, %v970_v24  ;;  %v5906_v17 = vld [vmem:[#allocation2 + $0x98] ss:$0 sm:$0xff] }
 0x758   :  { %v980_v28 = vmax.f32 %v976_v23, 0.0 }
 0x759   :  { %v979_v26 = vmax.f32 %v971_v25, 0.0 }
 0x75b   :  { %6512 = vmatprep.mubr.msk.f32.mxu1 %vm985_vm13, %v979_v26 }
 0x75c   :  { %6513 = vmatmul.mubr.msk.f32.vlgmr.msra.gmra.mrb[12].mxu1 %vm985_vm13, %v980_v28 }
 0x82f   :  { %v6514_v32 = vpop.f32.mrb[12].mxu1 }
 0x830   :  { %v1064_v34 = vadd.f32 %v6514_v32, %v5903_v31  ;;  %v1058_v3 = vpop.f32.mrb[13].mxu1 }
 0x831   :  { %v1059_v8 = vadd.f32 %v5903_v31, %v1058_v3  ;;  %v5907_v31 = vld [vmem:[#allocation2 + $0x99] ss:$0 sm:$0xff] }
 0x832   :  { %v1068_v35 = vadd.f32 %v1064_v34, %v879_v13 }
 0x833   :  { %v1067_v37 = vadd.f32 %v1059_v8, %v878_v12 }
 0x834   :  { %v1074_v38 = vsel %vm93_vm0, %v1068_v35, 0.0 }
 0x835   :  { %1075 = vadd.xlane.f32.xlu0 %v1074_v38  ;;  %v1071_v39 = vsel %vm93_vm0, %v1067_v37, 0.0 }
 0x836   :  { %1072 = vadd.xlane.f32.xlu1 %v1071_v39 }
 0x8c2   :  { %v1076_v40 = vpop.xlane.xlu0 %1075 }
 0x8c3   :  { %v1078_v41 = vmul.f32 0.03125, %v1076_v40  ;;  %v1073_v9 = vpop.xlane.xlu1 %1072 }
 0x8c4   :  { %v1077_v6 = vmul.f32 0.03125, %v1073_v9 }
 0x8c5   :  { %v1080_v42 = vsub.f32 %v1068_v35, %v1078_v41 }
 0x8c6   :  { %v1079_v43 = vsub.f32 %v1067_v37, %v1077_v6 }
 0x8c7   :  { %v1082_v44 = vmul.f32 %v1080_v42, %v1080_v42 }
 0x8c8   :  { %v1081_v45 = vmul.f32 %v1079_v43, %v1079_v43 }
 0x8c9   :  { %v1086_v46 = vsel %vm93_vm0, %v1082_v44, 0.0 }
 0x8ca   :  { %1087 = vadd.xlane.f32.xlu0 %v1086_v46  ;;  %v1083_v47 = vsel %vm93_vm0, %v1081_v45, 0.0 }
 0x8cb   :  { %1084 = vadd.xlane.f32.xlu1 %v1083_v47 }
 0x8dc   :  { %7392 = vrot.lane.b32.xlu1 %v8018_v51, %s7824_s1 }
 0x8e0   :  { %7402 = vrot.lane.b32.xlu1 %v8018_v51, %s7826_s27  ;;  %7397 = vrot.lane.b32.xlu0 %v8022_v55, %s7824_s1 }
 0x8e4   :  { %7407 = vrot.lane.b32.xlu1 %v8022_v55, %s7826_s27 }
 0x957   :  { %v1088_v58 = vpop.xlane.xlu0 %1087 }
 0x958   :  { %v1090_v59 = vmul.f32 0.03125, %v1088_v58  ;;  %v1085_v60 = vpop.xlane.xlu1 %1084 }
 0x959   :  { %v1089_v61 = vmul.f32 0.03125, %v1085_v60 }
 0x95a   :  { %v1092_v62 = vadd.f32 1e-05, %v1090_v59 }
 0x95b   :  { %v1091_v63 = vadd.f32 1e-05, %v1089_v61  ;;  %v7398_v16 = vpop.permute.xlu0 %7397 }
 0x95c   :  { %7577 = vrsqrt.f32 %v1092_v62  ;;  %v7393_v0 = vpop.permute.xlu1 %7392  ;;  %v7400_v26 = vunpack.i.h.bf16 %v7398_v16  ;;  %v7399_v28 = vunpack.i.l.bf16 %v7398_v16 }
 0x95d   :  { %7579 = vrsqrt.f32 %v1091_v63  ;;  %v7395_v1 = vunpack.i.h.bf16 %v7393_v0  ;;  %v7394_v2 = vunpack.i.l.bf16 %v7393_v0 }
 0x95e   :  { %v7074_v35 = vpack.c.bf16 %v7400_v26, %v7399_v28 }
 0x95f   :  { %v7070_v4 = vpack.c.bf16 %v7395_v1, %v7394_v2 }
 0x960   :  { %v7403_v5 = vpop.permute.xlu1 %7402 }
 0x961   :  { %v7405_v7 = vunpack.i.h.bf16 %v7403_v5  ;;  %v7404_v10 = vunpack.i.l.bf16 %v7403_v5  ;;  %7071 = vmatprep.subr.bf16.mxu0 %v7070_v4 }
 0x963   :  { %v7078_v11 = vpack.c.bf16 %v7405_v7, %v7404_v10 }
 0x964   :  { %v7408_v12 = vpop.permute.xlu1 %7407 }
 0x965   :  { %v7410_v13 = vunpack.i.h.bf16 %v7408_v12  ;;  %v7409_v14 = vunpack.i.l.bf16 %v7408_v12  ;;  %7079 = vmatprep.subr.bf16.mxu1 %v7078_v11 }
 0x966   :  { %v7578_v15 = vpop.eup %7577  ;;  %7081 = vmatpush3.bf16.msra.mxu1 %v7078_v11 }
 0x967   :  { %v7580_v22 = vpop.eup %7579  ;;  %v7082_v23 = vpack.c.bf16 %v7410_v13, %v7409_v14  ;;  %v1096_v24 = vmul.f32 %v7578_v15, %v1080_v42 }
 0x968   :  { %v1095_v25 = vmul.f32 %v7580_v22, %v1079_v43 }
 0x969   :  { %7083 = vmatprep.subr.bf16.mxu1 %v7082_v23  ;;  %v1102_v32 = vmul.f32 %v5906_v17, %v1096_v24 }
 0x96a   :  { %7085 = vmatpush3.bf16.msra.mxu1 %v7082_v23  ;;  %v1101_v34 = vmul.f32 %v5906_v17, %v1095_v25 }
 0x96b   :  { %v8032_v8 = vadd.f32 %v5907_v31, %v1102_v32 }
 0x96c   :  { %v8030_v3 = vadd.f32 %v5907_v31, %v1101_v34 }
 0x96e   :  { %6523 = vmatprep.mubr.msk.f32.mxu0 %vm93_vm0, %v8030_v3  ;;  %6545 = vmatprep.mubr.msk.f32.mxu1 %vm93_vm0, %v8030_v3 }
 0x96f   :  { %6524 = vmatmul.mubr.msk.f32.vlgmr.msra.gmra.mrb[14].mxu0 %vm93_vm0, %v8032_v8  ;;  %6546 = vmatmul.mubr.msk.f32.vlgmr.msra.gmra.mrb[14].mxu1 %vm93_vm0, %v8032_v8 }
 0x970   :  { %7073 = vmatpush3.bf16.msra.mxu0 %v7070_v4  ;;  %6534 = vmatprep.mubr.msk.f32.mxu0 %vm93_vm0, %v8030_v3 }
 0x971   :  { %7075 = vmatprep.subr.bf16.mxu0 %v7074_v35 }
 0x974   :  { %7077 = vmatpush3.bf16.msra.mxu0 %v7074_v35 }
 0x977   :  { %6535 = vmatmul.mubr.msk.f32.vlgmr.msra.gmra.mrb[16].mxu0 %vm93_vm0, %v8032_v8 }
 0xa42   :  { %v6525_v37 = vpop.f32.mrb[14].mxu0  ;;  %v6547_v38 = vpop.f32.mrb[14].mxu1 }
 0xa43   :  { %v1185_v39 = vpop.f32.mrb[15].mxu0  ;;  %v1363_v40 = vpop.f32.mrb[15].mxu1  ;;  %v1373_v44 = vmul.f32 %v6525_v37, %v7895_v21  ;;  %v1375_v46 = vmul.f32 %v6525_v37, %v7924_v30  ;;  %v1377_v48 = vmul.f32 %v6525_v37, %v7931_v33  ;;  %v1379_v52 = vmul.f32 %v6525_v37, %v7938_v36 }
 0xa44   :  { %v1372_v41 = vmul.f32 %v7895_v21, %v1185_v39  ;;  %v7092_v9 = vpack.c.bf16 %v6547_v38, %v1363_v40  ;;  %v1374_v45 = vmul.f32 %v7924_v30, %v1185_v39  ;;  %v1376_v47 = vmul.f32 %v7931_v33, %v1185_v39 }
 0xa45   :  { %v1378_v49 = vmul.f32 %v7938_v36, %v1185_v39 }
 0xa46   :  { %6552 = vmatprep.mubr.msk.f32.mxu0 %vm93_vm0, %v1372_v41  ;;  %7093 = vmatprep.subr.bf16.mxu1 %v7092_v9 }
 0xa47   :  { %7095 = vmatpush3.bf16.msra.mxu1 %v7092_v9 }
 0xa4a   :  { %v6536_v6 = vpop.f32.mrb[16].mxu0 }
 0xa4b   :  { %v1276_v42 = vpop.f32.mrb[17].mxu0 }
 0xa4c   :  { %v7086_v43 = vpack.c.bf16 %v6536_v6, %v1276_v42 }
 0xa4e   :  { %7088 = vmatprep.subr.msk.bf16.mxu0 %vm7905_vm2, %v7086_v43 }
 0xa4f   :  { %7091 = vmatpush3.bf16.xpose.msk.msra.mxu0 %vm7905_vm2, %v7086_v43 }
 0xa56   :  { %6553 = vmatmul.mubr.msk.f32.vlgmr.msra.gmra.mrb[18].mxu0 %vm93_vm0, %v1373_v44 }
 0xa57   :  { %6555 = vmatprep.mubr.msk.f32.mxu0 %vm93_vm0, %v1374_v45 }
 0xa5a   :  { %6556 = vmatmul.mubr.msk.f32.gmra.mrb[20].mxu0 %vm93_vm0, %v1375_v46 }
 0xa5b   :  { %6558 = vmatprep.mubr.msk.f32.mxu0 %vm93_vm0, %v1376_v47 }
 0xa5e   :  { %6559 = vmatmul.mubr.msk.f32.gmra.mrb[22].mxu0 %vm93_vm0, %v1377_v48 }
 0xa5f   :  { %6561 = vmatprep.mubr.msk.f32.mxu0 %vm93_vm0, %v1378_v49 }
 0xa62   :  { %6562 = vmatmul.mubr.msk.f32.gmra.mrb[24].mxu0 %vm93_vm0, %v1379_v52 }
 0xb29   :  { %v6554_v54 = vpop.f32.mrb[18].mxu0 }
 0xb2a   :  { %v1516_v56 = vmul.f32 0.17677669, %v6554_v54  ;;  %v1476_v57 = vpop.f32.mrb[19].mxu0 }
 0xb2b   :  { %v1515_v58 = vmul.f32 0.17677669, %v1476_v57 }
 0xb2c   :  { %v1524_v59 = vadd.f32 %v1516_v56, %v7952_v50 }
 0xb2d   :  { %v6557_v60 = vpop.f32.mrb[20].mxu0  ;;  %v1523_v61 = vadd.f32 %v1515_v58, %v7956_v53 }
 0xb2e   :  { %v1518_v62 = vmul.f32 0.17677669, %v6557_v60  ;;  %v1486_v63 = vpop.f32.mrb[21].mxu0  ;;  %v1534_v0 = vsel %vm512_vm12, %v1524_v59, -inf }
 0xb2f   :  { %v1517_v1 = vmul.f32 0.17677669, %v1486_v63  ;;  %1535 = vmax.xlane.f32.xlu1 %v1534_v0  ;;  %v1531_v2 = vsel %vm512_vm12, %v1523_v61, -inf }
 0xb30   :  { %1532 = vmax.xlane.f32.xlu0 %v1531_v2  ;;  %v1526_v10 = vadd.f32 %v1518_v62, %v7952_v50 }
 0xb31   :  { %v6560_v4 = vpop.f32.mrb[22].mxu0  ;;  %v1525_v5 = vadd.f32 %v1517_v1, %v7956_v53 }
 0xb32   :  { %v1496_v7 = vpop.f32.mrb[23].mxu0  ;;  %v1520_v11 = vmul.f32 0.17677669, %v6560_v4  ;;  %v1540_v17 = vsel %vm512_vm12, %v1526_v10, -inf }
 0xb33   :  { %v1519_v12 = vmul.f32 0.17677669, %v1496_v7  ;;  %v1537_v13 = vsel %vm512_vm12, %v1525_v5, -inf }
 0xb34   :  { %1538 = vmax.xlane.f32.xlu0 %v1537_v13  ;;  %v1528_v25 = vadd.f32 %v1520_v11, %v7952_v50 }
 0xb35   :  { %v6563_v14 = vpop.f32.mrb[24].mxu0  ;;  %v1527_v15 = vadd.f32 %v1519_v12, %v7956_v53 }
 0xb36   :  { %v1506_v16 = vpop.f32.mrb[25].mxu0  ;;  %v1522_v22 = vmul.f32 0.17677669, %v6563_v14  ;;  %v1546_v28 = vsel %vm512_vm12, %v1528_v25, -inf }
 0xb37   :  { %v1521_v23 = vmul.f32 0.17677669, %v1506_v16  ;;  %v1543_v24 = vsel %vm512_vm12, %v1527_v15, -inf }
 0xb38   :  { %1541 = vmax.xlane.f32.xlu0 %v1540_v17  ;;  %1544 = vmax.xlane.f32.xlu1 %v1543_v24  ;;  %v1530_v32 = vadd.f32 %v1522_v22, %v7952_v50 }
 0xb39   :  { %v1529_v26 = vadd.f32 %v1521_v23, %v7956_v53 }
 0xb3a   :  { %v1552_v34 = vsel %vm512_vm12, %v1530_v32, -inf }
 0xb3b   :  { %v1549_v31 = vsel %vm512_vm12, %v1529_v26, -inf }
 0xb3c   :  { %1547 = vmax.xlane.f32.xlu0 %v1546_v28  ;;  %1550 = vmax.xlane.f32.xlu1 %v1549_v31 }
 0xb40   :  { %1553 = vmax.xlane.f32.xlu0 %v1552_v34 }
 0xbbc   :  { %v1536_v35 = vpop.xlane.xlu1 %1535 }
 0xbbd   :  { %v1556_v37 = vsub.f32 %v1524_v59, %v1536_v35  ;;  %v1533_v38 = vpop.xlane.xlu0 %1532 }
 0xbbe   :  { %v1555_v39 = vsub.f32 %v1523_v61, %v1533_v38 }
 0xbbf   :  { %v1565_v40 = vmul.f32 1.442695, %v1556_v37 }
 0xbc0   :  { %v1563_v41 = vmul.f32 1.442695, %v1555_v39 }
 0xbc1   :  { %7581 = vpow2.f32 %v1565_v40  ;;  %v1539_v9 = vpop.xlane.xlu0 %1538 }
 0xbc2   :  { %7583 = vpow2.f32 %v1563_v41  ;;  %v1557_v6 = vsub.f32 %v1525_v5, %v1539_v9 }
 0xbc4   :  { %v1567_v42 = vmul.f32 1.442695, %v1557_v6 }
 0xbc5   :  { %v1542_v43 = vpop.xlane.xlu0 %1541  ;;  %v1545_v44 = vpop.xlane.xlu1 %1544 }
 0xbc6   :  { %7585 = vpow2.f32 %v1567_v42  ;;  %v1558_v45 = vsub.f32 %v1526_v10, %v1542_v43  ;;  %v1559_v46 = vsub.f32 %v1527_v15, %v1545_v44 }
 0xbc8   :  { %v1569_v47 = vmul.f32 1.442695, %v1558_v45  ;;  %v1571_v48 = vmul.f32 1.442695, %v1559_v46 }
 0xbc9   :  { %v1548_v49 = vpop.xlane.xlu0 %1547  ;;  %v1551_v52 = vpop.xlane.xlu1 %1550 }
 0xbca   :  { %7587 = vpow2.f32 %v1569_v47  ;;  %v1560_v54 = vsub.f32 %v1528_v25, %v1548_v49  ;;  %v1561_v56 = vsub.f32 %v1529_v26, %v1551_v52 }
 0xbcb   :  { %v7582_v57 = vpop.eup %7581  ;;  %7589 = vpow2.f32 %v1571_v48 }
 0xbcc   :  { %v7584_v58 = vpop.eup %7583  ;;  %v1573_v59 = vmul.f32 1.442695, %v1560_v54  ;;  %v1575_v60 = vmul.f32 1.442695, %v1561_v56  ;;  %v1582_v61 = vsel %vm512_vm12, %v7582_v57, 0.0 }
 0xbcd   :  { %1583 = vadd.xlane.f32.xlu0 %v1582_v61  ;;  %v1554_v62 = vpop.xlane.xlu0 %1553  ;;  %v1579_v63 = vsel %vm512_vm12, %v7584_v58, 0.0 }
 0xbce   :  { %7591 = vpow2.f32 %v1573_v59  ;;  %v1562_v0 = vsub.f32 %v1530_v32, %v1554_v62  ;;  %1580 = vadd.xlane.f32.xlu1 %v1579_v63 }
 0xbcf   :  { %7593 = vpow2.f32 %v1575_v60 }
 0xbd0   :  { %v7586_v1 = vpop.eup %7585  ;;  %v1577_v2 = vmul.f32 1.442695, %v1562_v0 }
 0xbd1   :  { %v1585_v4 = vsel %vm512_vm12, %v7586_v1, 0.0 }
 0xbd2   :  { %7595 = vpow2.f32 %v1577_v2  ;;  %1586 = vadd.xlane.f32.xlu1 %v1585_v4 }
 0xbd4   :  { %v7588_v5 = vpop.eup %7587 }
 0xbd5   :  { %v7590_v7 = vpop.eup %7589  ;;  %v1588_v10 = vsel %vm512_vm12, %v7588_v5, 0.0 }
 0xbd6   :  { %1589 = vadd.xlane.f32.xlu0 %v1588_v10  ;;  %v1591_v11 = vsel %vm512_vm12, %v7590_v7, 0.0 }
 0xbd7   :  { %1592 = vadd.xlane.f32.xlu1 %v1591_v11 }
 0xbd8   :  { %v7592_v12 = vpop.eup %7591 }
 0xbd9   :  { %v7594_v13 = vpop.eup %7593  ;;  %v1594_v14 = vsel %vm512_vm12, %v7592_v12, 0.0 }
 0xbda   :  { %1595 = vadd.xlane.f32.xlu0 %v1594_v14  ;;  %v1597_v15 = vsel %vm512_vm12, %v7594_v13, 0.0 }
 0xbdb   :  { %1598 = vadd.xlane.f32.xlu1 %v1597_v15 }
 0xbdc   :  { %v7596_v16 = vpop.eup %7595 }
 0xbdd   :  { %v1600_v17 = vsel %vm512_vm12, %v7596_v16, 0.0 }
 0xbde   :  { %1601 = vadd.xlane.f32.xlu0 %v1600_v17 }
 0xbec   :  { %7412 = vrot.lane.b32.xlu1 %v8018_v51, %s7828_s28 }
 0xbf4   :  { %7417 = vrot.lane.b32.xlu0 %v8022_v55, %s7828_s28 }
 0xc5a   :  { %v1584_v22 = vpop.xlane.xlu0 %1583 }
 0xc5b   :  { %7597 = vrcp.f32 %v1584_v22  ;;  %v1581_v23 = vpop.xlane.xlu1 %1580 }
 0xc5c   :  { %7599 = vrcp.f32 %v1581_v23 }
 0xc5f   :  { %v1587_v24 = vpop.xlane.xlu1 %1586 }
 0xc60   :  { %7601 = vrcp.f32 %v1587_v24 }
 0xc63   :  { %v1590_v25 = vpop.xlane.xlu0 %1589 }
 0xc64   :  { %7603 = vrcp.f32 %v1590_v25  ;;  %v1593_v26 = vpop.xlane.xlu1 %1592 }
 0xc65   :  { %v7598_v28 = vpop.eup %7597  ;;  %7605 = vrcp.f32 %v1593_v26 }
 0xc66   :  { %v7600_v31 = vpop.eup %7599  ;;  %v1606_v51 = vmul.f32 %v7598_v28, %v7582_v57 }
 0xc67   :  { %v1596_v32 = vpop.xlane.xlu0 %1595  ;;  %v1604_v34 = vmul.f32 %v7600_v31, %v7584_v58 }
 0xc68   :  { %7607 = vrcp.f32 %v1596_v32  ;;  %v1599_v35 = vpop.xlane.xlu1 %1598 }
 0xc69   :  { %7609 = vrcp.f32 %v1599_v35  ;;  %6568 = vmatprep.mubr.msk.f32.mxu1 %vm512_vm12, %v1604_v34 }
 0xc6a   :  { %v7602_v55 = vpop.eup %7601  ;;  %6569 = vmatmul.mubr.msk.f32.vlgmr.msra.gmra.mrb[16].mxu1 %vm512_vm12, %v1606_v51 }
 0xc6b   :  { %v1602_v37 = vpop.xlane.xlu0 %1601  ;;  %v1608_v38 = vmul.f32 %v7602_v55, %v7586_v1 }
 0xc6c   :  { %7611 = vrcp.f32 %v1602_v37  ;;  %v7413_v47 = vpop.permute.xlu1 %7412 }
 0xc6d   :  { %6571 = vmatprep.mubr.msk.f32.mxu1 %vm512_vm12, %v1608_v38  ;;  %v7415_v48 = vunpack.i.h.bf16 %v7413_v47  ;;  %v7414_v49 = vunpack.i.l.bf16 %v7413_v47  ;;  %v1898_v47 = vld [vmem:[#allocation2 + $0xd0] sm:$0xff] }
 0xc6e   :  { %v7604_v39 = vpop.eup %7603 }
 0xc6f   :  { %v7606_v40 = vpop.eup %7605  ;;  %v1610_v41 = vmul.f32 %v7604_v39, %v7588_v5  ;;  %v7096_v52 = vpack.c.bf16 %v7415_v48, %v7414_v49  ;;  %v7418_v54 = vpop.permute.xlu0 %7417  ;;  %v1899_v48 = vld [vmem:[#allocation2 + $0xd8] sm:$0xff] }
 0xc70   :  { %v1612_v9 = vmul.f32 %v7606_v40, %v7590_v7  ;;  %v7420_v56 = vunpack.i.h.bf16 %v7418_v54  ;;  %v7419_v57 = vunpack.i.l.bf16 %v7418_v54 }
 0xc71   :  { %6572 = vmatmul.mubr.msk.f32.gmra.mrb[18].mxu1 %vm512_vm12, %v1610_v41  ;;  %7097 = vmatprep.subr.bf16.mxu0 %v7096_v52 }
 0xc72   :  { %v7608_v6 = vpop.eup %7607  ;;  %6574 = vmatprep.mubr.msk.f32.mxu1 %vm512_vm12, %v1612_v9  ;;  %7099 = vmatpush3.bf16.msra.mxu0 %v7096_v52  ;;  %v7100_v58 = vpack.c.bf16 %v7420_v56, %v7419_v57  ;;  %v1900_v52 = vld [vmem:[#allocation2 + $0xe0] sm:$0xff]  ;;  %v1902_v57 = vld [vmem:[#allocation2 + $0xf0] sm:$0xff] }
 0xc73   :  { %v7610_v42 = vpop.eup %7609  ;;  %v1614_v43 = vmul.f32 %v7608_v6, %v7592_v12  ;;  %v2126_v6 = vld [vmem:[#allocation2 + $0x148] sm:$0xff]  ;;  %v7108_v54 = vpack.c.bf16 %v1900_v52, %v1899_v48 }
 0xc74   :  { %v1616_v44 = vmul.f32 %v7610_v42, %v7594_v13  ;;  %7101 = vmatprep.subr.bf16.mxu0 %v7100_v58 }
 0xc75   :  { %6575 = vmatmul.mubr.msk.f32.gmra.mrb[20].mxu1 %vm512_vm12, %v1614_v43  ;;  %v2127_v43 = vld [vmem:[#allocation2 + $0x150] sm:$0xff] }
 0xc76   :  { %v7612_v45 = vpop.eup %7611  ;;  %6577 = vmatprep.mubr.msk.f32.mxu1 %vm512_vm12, %v1616_v44  ;;  %7103 = vmatpush3.bf16.msra.mxu0 %v7100_v58  ;;  %v2128_v44 = vld [vmem:[#allocation2 + $0x158] sm:$0xff] }
 0xc77   :  { %v1618_v46 = vmul.f32 %v7612_v45, %v7596_v16  ;;  %v8122_v45 = vpack.i.bf16 %v2128_v44, %v2127_v43  ;;  %v1903_v58 = vld [vmem:[#allocation2 + $0xf8] sm:$0xff] }
 0xc79   :  { %6578 = vmatmul.mubr.msk.f32.gmra.mrb[22].mxu1 %vm512_vm12, %v1618_v46  ;;  %v1897_v46 = vld [vmem:[#allocation2 + $0xc8] sm:$0xff] }
 0xc7a   :  { %v7104_v49 = vpack.c.bf16 %v1898_v47, %v1897_v46 }
 0xc7c   :  { %7105 = vmatprep.subr.bf16.mxu1 %v7104_v49 }
 0xc7d   :  { %7107 = vmatpush3.bf16.msra.mxu1 %v7104_v49 }
 0xc7e   :  { %7109 = vmatprep.subr.bf16.mxu1 %v7108_v54 }
 0xc81   :  { %7111 = vmatpush3.bf16.msra.mxu1 %v7108_v54 }
 0xd3d   :  { %v6570_v59 = vpop.f32.mrb[16].mxu1 }
 0xd3e   :  { %v1709_v60 = vpop.f32.mrb[17].mxu1  ;;  %v1749_v62 = vmul.f32 %v6570_v59, %v7895_v21  ;;  %v1904_v59 = vld [vmem:[#allocation2 + $0x100] sm:$0xff] }
 0xd3f   :  { %v1748_v1 = vmul.f32 %v7895_v21, %v1709_v60  ;;  %v7112_v60 = vpack.c.bf16 %v1903_v58, %v1902_v57 }
 0xd41   :  { %7113 = vmatprep.subr.bf16.mxu0 %v7112_v60 }
 0xd44   :  { %v6573_v61 = vpop.f32.mrb[18].mxu1 }
 0xd45   :  { %v1751_v63 = vmul.f32 %v6573_v61, %v7924_v30  ;;  %v1719_v0 = vpop.f32.mrb[19].mxu1  ;;  %v1905_v61 = vld [vmem:[#allocation2 + $0x108] sm:$0xff] }
 0xd46   :  { %v1750_v2 = vmul.f32 %v7924_v30, %v1719_v0  ;;  %v1907_v0 = vld [vmem:[#allocation2 + $0x118] sm:$0xff] }
 0xd47   :  { %v1757_v4 = vadd.f32 %v1751_v63, %v1749_v62  ;;  %v7116_v62 = vpack.c.bf16 %v1905_v61, %v1904_v59  ;;  %v1906_v63 = vld [vmem:[#allocation2 + $0x110] sm:$0xff] }
 0xd48   :  { %v1756_v5 = vadd.f32 %v1750_v2, %v1748_v1  ;;  %v6576_v7 = vpop.f32.mrb[20].mxu1  ;;  %v7120_v1 = vpack.c.bf16 %v1907_v0, %v1906_v63 }
 0xd49   :  { %v1753_v10 = vmul.f32 %v6576_v7, %v7931_v33  ;;  %v1729_v11 = vpop.f32.mrb[21].mxu1 }
 0xd4a   :  { %v1752_v12 = vmul.f32 %v7931_v33, %v1729_v11 }
 0xd4b   :  { %v1759_v13 = vadd.f32 %v1757_v4, %v1753_v10 }
 0xd4c   :  { %v1758_v14 = vadd.f32 %v1756_v5, %v1752_v12  ;;  %v6579_v15 = vpop.f32.mrb[22].mxu1 }
 0xd4d   :  { %v1755_v16 = vmul.f32 %v6579_v15, %v7938_v36  ;;  %v1739_v17 = vpop.f32.mrb[23].mxu1 }
 0xd4e   :  { %v1754_v22 = vmul.f32 %v7938_v36, %v1739_v17  ;;  %v5935_v17 = vld [vmem:[#allocation2 + $0xc1] ss:$0 sm:$0xff] }
 0xd4f   :  { %v1761_v23 = vadd.f32 %v1759_v13, %v1755_v16  ;;  %v5934_v13 = vld [vmem:[#allocation2 + $0xc0] ss:$0 sm:$0xff] }
 0xd50   :  { %v1760_v24 = vadd.f32 %v1758_v14, %v1754_v22 }
 0xd52   :  { %6588 = vmatprep.mubr.msk.f32.mxu0 %vm93_vm0, %v1760_v24 }
 0xd53   :  { %6589 = vmatmul.mubr.msk.f32.vlgmr.msra.gmra.mrb[26].mxu0 %vm93_vm0, %v1761_v23 }
 0xd54   :  { %7115 = vmatpush3.bf16.msra.mxu0 %v7112_v60 }
 0xd55   :  { %7117 = vmatprep.subr.bf16.mxu0 %v7116_v62 }
 0xd58   :  { %7119 = vmatpush3.bf16.msra.mxu0 %v7116_v62 }
 0xd59   :  { %7121 = vmatprep.subr.bf16.mxu0 %v7120_v1 }
 0xd5c   :  { %7123 = vmatpush3.bf16.msra.mxu0 %v7120_v1 }
 0xe26   :  { %v6590_v25 = vpop.f32.mrb[26].mxu0 }
 0xe27   :  { %v1856_v26 = vadd.f32 %v6590_v25, %v8032_v8  ;;  %v1846_v28 = vpop.f32.mrb[27].mxu0 }
 0xe28   :  { %v1855_v31 = vadd.f32 %v1846_v28, %v8030_v3  ;;  %v2125_v3 = vld [vmem:[#allocation2 + $0x140] sm:$0xff] }
 0xe29   :  { %v1862_v32 = vsel %vm93_vm0, %v1856_v26, 0.0  ;;  %v8118_v42 = vpack.i.bf16 %v2126_v6, %v2125_v3  ;;  %v7128_v56 = vpack.c.bf16 %v2126_v6, %v2125_v3 }
 0xe2a   :  { %1863 = vadd.xlane.f32.xlu0 %v1862_v32  ;;  %v1859_v34 = vsel %vm93_vm0, %v1855_v31, 0.0  ;;  %v7132_v32 = vpack.c.bf16 %v2128_v44, %v2127_v43 }
 0xe2b   :  { %1860 = vadd.xlane.f32.xlu1 %v1859_v34  ;;  %7129 = vmatprep.subr.bf16.mxu1 %v7128_v56  ;;  %v8133_v34 = vld [vmem:[%s8647_s0 + $0x10] sm:$0xff] }
 0xeb7   :  { %v1864_v35 = vpop.xlane.xlu0 %1863 }
 0xeb8   :  { %v1866_v51 = vmul.f32 0.03125, %v1864_v35  ;;  %v1861_v55 = vpop.xlane.xlu1 %1860 }
 0xeb9   :  { %v1865_v37 = vmul.f32 0.03125, %v1861_v55 }
 0xeba   :  { %v1868_v38 = vsub.f32 %v1856_v26, %v1866_v51 }
 0xebb   :  { %v1867_v39 = vsub.f32 %v1855_v31, %v1865_v37 }
 0xebc   :  { %v1870_v40 = vmul.f32 %v1868_v38, %v1868_v38 }
 0xebd   :  { %v1869_v41 = vmul.f32 %v1867_v39, %v1867_v39 }
 0xebe   :  { %v1874_v9 = vsel %vm93_vm0, %v1870_v40, 0.0  ;;  %v1908_v40 = vld [vmem:[#allocation2 + $0x120] sm:$0xff] }
 0xebf   :  { %1875 = vadd.xlane.f32.xlu0 %v1874_v9  ;;  %v1871_v8 = vsel %vm93_vm0, %v1869_v41, 0.0  ;;  %v1909_v41 = vld [vmem:[#allocation2 + $0x128] sm:$0xff] }
 0xec0   :  { %1872 = vadd.xlane.f32.xlu1 %v1871_v8  ;;  %v7124_v9 = vpack.c.bf16 %v1909_v41, %v1908_v40  ;;  %v5936_v8 = vld [vmem:[#allocation2 + $0xe8] ss:$0 sm:$0xff] }
 0xec2   :  { %7125 = vmatprep.subr.bf16.mxu0 %v7124_v9 }
 0xec3   :  { %7127 = vmatpush3.bf16.msra.mxu0 %v7124_v9 }
 0xed1   :  { %7422 = vrot.lane.b32.xlu1 %v8118_v42, %s7824_s1 }
 0xed5   :  { %7427 = vrot.lane.b32.xlu0 %v8122_v45, %s7824_s1  ;;  %7432 = vrot.lane.b32.xlu1 %v8118_v42, %s7826_s27 }
 0xed9   :  { %7437 = vrot.lane.b32.xlu1 %v8122_v45, %s7826_s27 }
 0xf4c   :  { %v1876_v2 = vpop.xlane.xlu0 %1875 }
 0xf4d   :  { %v1878_v4 = vmul.f32 0.03125, %v1876_v2  ;;  %v1873_v5 = vpop.xlane.xlu1 %1872 }
 0xf4e   :  { %v1877_v7 = vmul.f32 0.03125, %v1873_v5 }
 0xf4f   :  { %v1880_v10 = vadd.f32 1e-05, %v1878_v4 }
 0xf50   :  { %v1879_v11 = vadd.f32 1e-05, %v1877_v7  ;;  %v7428_v35 = vpop.permute.xlu0 %7427 }
 0xf51   :  { %7613 = vrsqrt.f32 %v1880_v10  ;;  %v7423_v24 = vpop.permute.xlu1 %7422  ;;  %v7430_v51 = vunpack.i.h.bf16 %v7428_v35  ;;  %v7429_v55 = vunpack.i.l.bf16 %v7428_v35 }
 0xf52   :  { %7615 = vrsqrt.f32 %v1879_v11  ;;  %v7425_v28 = vunpack.i.h.bf16 %v7423_v24  ;;  %v7424_v31 = vunpack.i.l.bf16 %v7423_v24 }
 0xf54   :  { %v7136_v37 = vpack.c.bf16 %v7425_v28, %v7424_v31 }
 0xf55   :  { %v7433_v1 = vpop.permute.xlu1 %7432 }
 0xf56   :  { %v7435_v2 = vunpack.i.h.bf16 %v7433_v1  ;;  %v7434_v4 = vunpack.i.l.bf16 %v7433_v1 }
 0xf58   :  { %v7144_v5 = vpack.c.bf16 %v7435_v2, %v7434_v4 }
 0xf59   :  { %v7438_v7 = vpop.permute.xlu1 %7437 }
 0xf5a   :  { %v7440_v10 = vunpack.i.h.bf16 %v7438_v7  ;;  %v7439_v11 = vunpack.i.l.bf16 %v7438_v7  ;;  %7145 = vmatprep.subr.bf16.mxu0 %v7144_v5 }
 0xf5b   :  { %v7614_v12 = vpop.eup %7613 }
 0xf5c   :  { %v7616_v14 = vpop.eup %7615  ;;  %v1884_v15 = vmul.f32 %v7614_v12, %v1868_v38  ;;  %v8144_v38 = vld [vmem:[%s8647_s0 + $0x18] sm:$0xff]  ;;  %v7148_v12 = vpack.c.bf16 %v7440_v10, %v7439_v11  ;;  %s7829_s0 = smov [#allocation5]  }
 0xf5d   :  { %v1883_v16 = vmul.f32 %v7616_v14, %v1867_v39  ;;  %v7140_v39 = vpack.c.bf16 %v7430_v51, %v7429_v55  ;;  %s5852_s5 = sshll.u32 %s7829_s0, 4  ;;  %s5853_s5 = int_to_ptr.vmem [resolvable:$true] %s5852_s5 }
 0xf5e   :  { %v1890_v22 = vmul.f32 %v5934_v13, %v1884_v15  ;;  %v5869_v15 = vadd.s32 4294967288, %v7889_v19  ;;  %s7795_s6 = scalar_lea.vmem %s5853_s5, 256  ;;  %p7800_p9 = scmp.lt.s32.totalorder %s5853_s5, %s5853_s5 }
 0xf5f   :  { %v1889_v23 = vmul.f32 %v5934_v13, %v1883_v16  ;;  %v61_v16 = vsel %vm29_vm1, %v7889_v19, 0  ;;  %p7796_p8 = scmp.ne.s32.totalorder %s5853_s5, %s7795_s6  ;;  %p7801_p10 = scmp.lt.s32.totalorder %s7795_s6, %s7795_s6 }
 0xf60   :  { %v8128_v26 = vadd.f32 %v5935_v17, %v1890_v22  ;;  %v76_v22 = vsel %vm7915_vm5, %v5869_v15, %v61_v16 }
 0xf61   :  { %v8126_v25 = vadd.f32 %v5935_v17, %v1889_v23  ;;  %v49_v17 = vshrl.u32 %v26_v18, 7  ;;  %p7802_p11 = por %p7801_p10, %p7800_p9 }
 0xf63   :  { %6599 = vmatprep.mubr.msk.f32.mxu1 %vm93_vm0, %v8126_v25  ;;  %vm79_vm14 = vcmp.ge.s32.totalorder %v49_v17, %v76_v22  ;;  %p7803_p12 = pnand %p7802_p11, %p7796_p8 }
 0xf64   :  { %6600 = vmatmul.mubr.msk.f32.vlgmr.msra.gmra.mrb[24].mxu1 %vm93_vm0, %v8128_v26  ;;  %v8194_v23 = vsel %vm79_vm14, 1.0, %v7825_v20 }
 0xf65   :  { %7131 = vmatpush3.bf16.msra.mxu1 %v7128_v56  ;;  %6629 = vmatprep.mubr.msk.f32.mxu1 %vm93_vm0, %v8133_v34 }
 0xf66   :  { %7133 = vmatprep.subr.bf16.mxu1 %v7132_v32 }
 0xf69   :  { %7135 = vmatpush3.bf16.msra.mxu1 %v7132_v32 }
 0xf6a   :  { %7137 = vmatprep.subr.bf16.mxu1 %v7136_v37 }
 0xf6c   :  { %6630 = vmatmul.mubr.msk.f32.vlgmr.msra.gmra.mrb[26].mxu1 %vm93_vm0, %v8144_v38 }
 0xf6d   :  { %7139 = vmatpush3.bf16.msra.mxu1 %v7136_v37  ;;  %6640 = vmatprep.mubr.msk.f32.mxu1 %vm93_vm0, %v8133_v34 }
 0xf6e   :  { %7141 = vmatprep.subr.bf16.mxu1 %v7140_v39 }
 0xf71   :  { %7143 = vmatpush3.bf16.msra.mxu1 %v7140_v39 }
 0xf74   :  { %6641 = vmatmul.mubr.msk.f32.vlgmr.msra.gmra.mrb[28].mxu1 %vm93_vm0, %v8144_v38 }
0x1037   :  { %v6601_v3 = vpop.f32.mrb[24].mxu1 }
0x1038   :  { %v1993_v6 = vadd.f32 %v6601_v3, %v5936_v8  ;;  %v1987_v43 = vpop.f32.mrb[25].mxu1 }
0x1039   :  { %v1988_v44 = vadd.f32 %v5936_v8, %v1987_v43 }
0x103a   :  { %v1997_v47 = vmax.f32 %v1993_v6, 0.0 }
0x103b   :  { %v1996_v46 = vmax.f32 %v1988_v44, 0.0 }
0x103d   :  { %6618 = vmatprep.mubr.msk.f32.mxu0 %vm985_vm13, %v1996_v46 }
0x103e   :  { %6619 = vmatmul.mubr.msk.f32.vlgmr.msra.gmra.mrb[28].mxu0 %vm985_vm13, %v1997_v47 }
0x103f   :  { %v6631_v48 = vpop.f32.mrb[26].mxu1  ;;  %6651 = vmatprep.mubr.msk.f32.mxu0 %vm93_vm0, %v8133_v34  ;;  %7147 = vmatpush3.bf16.msra.mxu0 %v7144_v5 }
0x1040   :  { %v2201_v49 = vpop.f32.mrb[27].mxu1  ;;  %v2389_v58 = vmul.f32 %v6631_v48, %v7895_v21  ;;  %v2391_v60 = vmul.f32 %v6631_v48, %v7924_v30  ;;  %v2393_v62 = vmul.f32 %v6631_v48, %v7931_v33  ;;  %v2395_v0 = vmul.f32 %v6631_v48, %v7938_v36  ;;  %7149 = vmatprep.subr.bf16.mxu0 %v7148_v12 }
0x1041   :  { %v2388_v52 = vmul.f32 %v7895_v21, %v2201_v49  ;;  %v2390_v59 = vmul.f32 %v7924_v30, %v2201_v49  ;;  %v2392_v61 = vmul.f32 %v7931_v33, %v2201_v49  ;;  %v2394_v63 = vmul.f32 %v7938_v36, %v2201_v49 }
0x1043   :  { %6658 = vmatprep.mubr.msk.f32.mxu1 %vm93_vm0, %v2388_v52  ;;  %7151 = vmatpush3.bf16.msra.mxu0 %v7148_v12 }
0x1046   :  { %6652 = vmatmul.mubr.msk.f32.vlgmr.msra.gmra.mrb[30].mxu0 %vm93_vm0, %v8144_v38 }
0x1047   :  { %v6642_v54 = vpop.f32.mrb[28].mxu1 }
0x1048   :  { %v2292_v56 = vpop.f32.mrb[29].mxu1 }
0x1049   :  { %v7152_v57 = vpack.c.bf16 %v6642_v54, %v2292_v56 }
0x104b   :  { %7154 = vmatprep.subr.msk.bf16.mxu1 %vm7905_vm2, %v7152_v57 }
0x104c   :  { %7157 = vmatpush3.bf16.xpose.msk.msra.mxu1 %vm7905_vm2, %v7152_v57 }
0x1053   :  { %6659 = vmatmul.mubr.msk.f32.vlgmr.msra.gmra.mrb[30].mxu1 %vm93_vm0, %v2389_v58 }
0x1054   :  { %6661 = vmatprep.mubr.msk.f32.mxu1 %vm93_vm0, %v2390_v59 }
0x1057   :  { %6662 = vmatmul.mubr.msk.f32.gmra.mrb[32].mxu1 %vm93_vm0, %v2391_v60 }
0x1058   :  { %6664 = vmatprep.mubr.msk.f32.mxu1 %vm93_vm0, %v2392_v61 }
0x105b   :  { %6665 = vmatmul.mubr.msk.f32.gmra.mrb[34].mxu1 %vm93_vm0, %v2393_v62 }
0x105c   :  { %6667 = vmatprep.mubr.msk.f32.mxu1 %vm93_vm0, %v2394_v63 }
0x105f   :  { %6668 = vmatmul.mubr.msk.f32.gmra.mrb[36].mxu1 %vm93_vm0, %v2395_v0 }
0x1111   :  { %v8182_v13 = vpop.f32.mrb[28].mxu0 }
0x1112   :  { %v8184_v14 = vpop.f32.mrb[29].mxu0 }
0x1126   :  { %v6660_v24 = vpop.f32.mrb[30].mxu1 }
0x1127   :  { %v2532_v28 = vmul.f32 0.17677669, %v6660_v24  ;;  %v2492_v31 = vpop.f32.mrb[31].mxu1 }
0x1128   :  { %v2531_v32 = vmul.f32 0.17677669, %v2492_v31 }
0x1129   :  { %v2540_v35 = vmul.f32 %v8194_v23, %v2532_v28 }
0x112a   :  { %v2539_v51 = vmul.f32 %v8194_v23, %v2531_v32  ;;  %v6663_v55 = vpop.f32.mrb[32].mxu1 }
0x112b   :  { %v2534_v37 = vmul.f32 0.17677669, %v6663_v55  ;;  %v2502_v19 = vpop.f32.mrb[33].mxu1  ;;  %v2548_v18 = vadd.f32 %v2540_v35, %v7952_v50 }
0x112c   :  { %v2533_v39 = vmul.f32 0.17677669, %v2502_v19  ;;  %v2547_v29 = vadd.f32 %v2539_v51, %v7956_v53 }
0x112d   :  { %v2542_v40 = vmul.f32 %v8194_v23, %v2534_v37  ;;  %v2558_v20 = vsel %vm512_vm12, %v2548_v18, -inf }
0x112e   :  { %v2541_v41 = vmul.f32 %v8194_v23, %v2533_v39  ;;  %2559 = vmax.xlane.f32.xlu1 %v2558_v20  ;;  %v6666_v9 = vpop.f32.mrb[34].mxu1  ;;  %v2555_v8 = vsel %vm512_vm12, %v2547_v29, -inf }
0x112f   :  { %v2536_v3 = vmul.f32 0.17677669, %v6666_v9  ;;  %2556 = vmax.xlane.f32.xlu0 %v2555_v8  ;;  %v2512_v6 = vpop.f32.mrb[35].mxu1  ;;  %v2550_v46 = vadd.f32 %v2542_v40, %v7952_v50 }
0x1130   :  { %v2535_v43 = vmul.f32 0.17677669, %v2512_v6  ;;  %v2549_v44 = vadd.f32 %v2541_v41, %v7956_v53 }
0x1131   :  { %v2544_v47 = vmul.f32 %v8194_v23, %v2536_v3  ;;  %v2564_v59 = vsel %vm512_vm12, %v2550_v46, -inf }
0x1132   :  { %v2543_v48 = vmul.f32 %v8194_v23, %v2535_v43  ;;  %v6669_v49 = vpop.f32.mrb[36].mxu1  ;;  %v2561_v52 = vsel %vm512_vm12, %v2549_v44, -inf }
0x1133   :  { %v2538_v54 = vmul.f32 0.17677669, %v6669_v49  ;;  %2562 = vmax.xlane.f32.xlu0 %v2561_v52  ;;  %v2522_v56 = vpop.f32.mrb[37].mxu1  ;;  %v2552_v63 = vadd.f32 %v2544_v47, %v7952_v50 }
0x1134   :  { %v2537_v57 = vmul.f32 0.17677669, %v2522_v56  ;;  %v2551_v58 = vadd.f32 %v2543_v48, %v7956_v53 }
0x1135   :  { %v2546_v60 = vmul.f32 %v8194_v23, %v2538_v54  ;;  %v2570_v1 = vsel %vm512_vm12, %v2552_v63, -inf }
0x1136   :  { %v2545_v61 = vmul.f32 %v8194_v23, %v2537_v57  ;;  %v2567_v62 = vsel %vm512_vm12, %v2551_v58, -inf }
0x1137   :  { %2565 = vmax.xlane.f32.xlu0 %v2564_v59  ;;  %2568 = vmax.xlane.f32.xlu1 %v2567_v62  ;;  %v2554_v4 = vadd.f32 %v2546_v60, %v7952_v50 }
0x1138   :  { %v2553_v0 = vadd.f32 %v2545_v61, %v7956_v53  ;;  %v6653_v61 = vpop.f32.mrb[30].mxu0 }
0x1139   :  { %v2576_v5 = vsel %vm512_vm12, %v2554_v4, -inf  ;;  %v2379_v62 = vpop.f32.mrb[31].mxu0 }
0x113a   :  { %v2573_v2 = vsel %vm512_vm12, %v2553_v0, -inf }
0x113b   :  { %2571 = vmax.xlane.f32.xlu0 %v2570_v1  ;;  %2574 = vmax.xlane.f32.xlu1 %v2573_v2 }
0x113f   :  { %2577 = vmax.xlane.f32.xlu0 %v2576_v5 }
0x11bb   :  { %v2560_v7 = vpop.xlane.xlu1 %2559 }
0x11bc   :  { %v2580_v10 = vsub.f32 %v2548_v18, %v2560_v7  ;;  %v2557_v11 = vpop.xlane.xlu0 %2556 }
0x11bd   :  { %v2579_v12 = vsub.f32 %v2547_v29, %v2557_v11 }
0x11be   :  { %v2589_v15 = vmul.f32 1.442695, %v2580_v10 }
0x11bf   :  { %v2587_v16 = vmul.f32 1.442695, %v2579_v12 }
0x11c0   :  { %7617 = vpow2.f32 %v2589_v15  ;;  %v2563_v17 = vpop.xlane.xlu0 %2562 }
0x11c1   :  { %7619 = vpow2.f32 %v2587_v16  ;;  %v2581_v22 = vsub.f32 %v2549_v44, %v2563_v17 }
0x11c3   :  { %v2591_v24 = vmul.f32 1.442695, %v2581_v22 }
0x11c4   :  { %v2566_v28 = vpop.xlane.xlu0 %2565  ;;  %v2569_v31 = vpop.xlane.xlu1 %2568 }
0x11c5   :  { %7621 = vpow2.f32 %v2591_v24  ;;  %v2582_v32 = vsub.f32 %v2550_v46, %v2566_v28  ;;  %v2583_v35 = vsub.f32 %v2551_v58, %v2569_v31 }
0x11c7   :  { %v2593_v51 = vmul.f32 1.442695, %v2582_v32  ;;  %v2595_v55 = vmul.f32 1.442695, %v2583_v35 }
0x11c8   :  { %v2572_v37 = vpop.xlane.xlu0 %2571  ;;  %v2575_v19 = vpop.xlane.xlu1 %2574 }
0x11c9   :  { %7623 = vpow2.f32 %v2593_v51  ;;  %v2584_v18 = vsub.f32 %v2552_v63, %v2572_v37  ;;  %v2585_v39 = vsub.f32 %v2553_v0, %v2575_v19  ;;  %v7158_v63 = vpack.c.bf16 %v6653_v61, %v2379_v62  ;;  %v5939_v0 = vld [vmem:[#allocation2 + $0x130] ss:$0 sm:$0xff] }
0x11ca   :  { %v8220_v29 = vpop.eup %7617  ;;  %7625 = vpow2.f32 %v2595_v55  ;;  %v2075_v1 = vadd.f32 %v5939_v0, %v8184_v14  ;;  %v2080_v2 = vadd.f32 %v8182_v13, %v5939_v0 }
0x11cb   :  { %v7620_v40 = vpop.eup %7619  ;;  %v2597_v20 = vmul.f32 1.442695, %v2584_v18  ;;  %v2599_v41 = vmul.f32 1.442695, %v2585_v39  ;;  %v2606_v9 = vsel %vm512_vm12, %v8220_v29, 0.0  ;;  %7159 = vmatprep.subr.bf16.mxu0 %v7158_v63 }
0x11cc   :  { %2607 = vadd.xlane.f32.xlu0 %v2606_v9  ;;  %v2578_v8 = vpop.xlane.xlu0 %2577  ;;  %v2603_v3 = vsel %vm512_vm12, %v7620_v40, 0.0  ;;  %7161 = vmatpush3.bf16.msra.mxu0 %v7158_v63  ;;  %v8253_v5 = vadd.f32 %v2080_v2, %v8128_v26 }
0x11cd   :  { %7627 = vpow2.f32 %v2597_v20  ;;  %v2586_v6 = vsub.f32 %v2554_v4, %v2578_v8  ;;  %2604 = vadd.xlane.f32.xlu1 %v2603_v3  ;;  %v8250_v4 = vadd.f32 %v2075_v1, %v8126_v25 }
0x11ce   :  { %7629 = vpow2.f32 %v2599_v41 }
0x11cf   :  { %v7622_v43 = vpop.eup %7621  ;;  %v2601_v44 = vmul.f32 1.442695, %v2586_v6  ;;  %v2087_v7 = vsel %vm93_vm0, %v8250_v4, 0.0 }
0x11d0   :  { %v2609_v46 = vsel %vm512_vm12, %v7622_v43, 0.0 }
0x11d1   :  { %7631 = vpow2.f32 %v2601_v44  ;;  %2610 = vadd.xlane.f32.xlu1 %v2609_v46 }
0x11d3   :  { %v7624_v47 = vpop.eup %7623 }
0x11d4   :  { %v8226_v48 = vpop.eup %7625  ;;  %v2612_v49 = vsel %vm512_vm12, %v7624_v47, 0.0 }
0x11d5   :  { %2613 = vadd.xlane.f32.xlu0 %v2612_v49  ;;  %v2615_v52 = vsel %vm512_vm12, %v8226_v48, 0.0 }
0x11d6   :  { %2616 = vadd.xlane.f32.xlu1 %v2615_v52 }
0x11d7   :  { %v8231_v54 = vpop.eup %7627 }
0x11d8   :  { %v8233_v56 = vpop.eup %7629  ;;  %v2618_v57 = vsel %vm512_vm12, %v8231_v54, 0.0 }
0x11d9   :  { %2619 = vadd.xlane.f32.xlu0 %v2618_v57  ;;  %v2621_v58 = vsel %vm512_vm12, %v8233_v56, 0.0 }
0x11da   :  { %2622 = vadd.xlane.f32.xlu1 %v2621_v58 }
0x11db   :  { %v8239_v59 = vpop.eup %7631 }
0x11dc   :  { %v2624_v60 = vsel %vm512_vm12, %v8239_v59, 0.0 }
0x11dd   :  { %2625 = vadd.xlane.f32.xlu0 %v2624_v60 }
0x11eb   :  { %7442 = vrot.lane.b32.xlu1 %v8118_v42, %s7828_s28  ;;  %v2090_v42 = vsel %vm93_vm0, %v8253_v5, 0.0 }
0x11f3   :  { %7447 = vrot.lane.b32.xlu0 %v8122_v45, %s7828_s28 }
0x120f   :  { %2088 = vadd.xlane.f32.xlu1 %v2087_v7 }
0x1212   :  { %2091 = vadd.xlane.f32.xlu0 %v2090_v42 }
0x1259   :  { %v2608_v45 = vpop.xlane.xlu0 %2607 }
0x125a   :  { %7633 = vrcp.f32 %v2608_v45  ;;  %v2605_v10 = vpop.xlane.xlu1 %2604 }
0x125b   :  { %7635 = vrcp.f32 %v2605_v10 }
0x125e   :  { %v2611_v14 = vpop.xlane.xlu1 %2610 }
0x125f   :  { %7637 = vrcp.f32 %v2611_v14 }
0x1262   :  { %v2614_v13 = vpop.xlane.xlu0 %2613 }
0x1263   :  { %7639 = vrcp.f32 %v2614_v13  ;;  %v2617_v25 = vpop.xlane.xlu1 %2616 }
0x1264   :  { %v7634_v11 = vpop.eup %7633  ;;  %7641 = vrcp.f32 %v2617_v25 }
0x1265   :  { %v7636_v26 = vpop.eup %7635  ;;  %v2630_v17 = vmul.f32 %v7634_v11, %v8220_v29 }
0x1266   :  { %v2620_v12 = vpop.xlane.xlu0 %2619  ;;  %v2628_v15 = vmul.f32 %v7636_v26, %v7620_v40 }
0x1267   :  { %7643 = vrcp.f32 %v2620_v12  ;;  %v2623_v16 = vpop.xlane.xlu1 %2622 }
0x1268   :  { %7645 = vrcp.f32 %v2623_v16  ;;  %6674 = vmatprep.mubr.msk.f32.mxu0 %vm512_vm12, %v2628_v15 }
0x1269   :  { %v7638_v22 = vpop.eup %7637  ;;  %6675 = vmatmul.mubr.msk.f32.vlgmr.msra.gmra.mrb[32].mxu0 %vm512_vm12, %v2630_v17 }
0x126a   :  { %v2626_v24 = vpop.xlane.xlu0 %2625  ;;  %v2632_v28 = vmul.f32 %v7638_v22, %v7622_v43 }
0x126b   :  { %7647 = vrcp.f32 %v2626_v24  ;;  %v7443_v31 = vpop.permute.xlu1 %7442 }
0x126c   :  { %6677 = vmatprep.mubr.msk.f32.mxu0 %vm512_vm12, %v2632_v28  ;;  %v7445_v32 = vunpack.i.h.bf16 %v7443_v31  ;;  %v7444_v35 = vunpack.i.l.bf16 %v7443_v31 }
0x126d   :  { %v7640_v51 = vpop.eup %7639 }
0x126e   :  { %v7642_v55 = vpop.eup %7641  ;;  %v2634_v37 = vmul.f32 %v7640_v51, %v7624_v47  ;;  %v7162_v19 = vpack.c.bf16 %v7445_v32, %v7444_v35  ;;  %v7448_v18 = vpop.permute.xlu0 %7447 }
0x126f   :  { %v2636_v39 = vmul.f32 %v7642_v55, %v8226_v48  ;;  %v7450_v29 = vunpack.i.h.bf16 %v7448_v18  ;;  %v7449_v40 = vunpack.i.l.bf16 %v7448_v18 }
0x1270   :  { %6678 = vmatmul.mubr.msk.f32.gmra.mrb[34].mxu0 %vm512_vm12, %v2634_v37  ;;  %7163 = vmatprep.subr.bf16.mxu1 %v7162_v19 }
0x1271   :  { %v7644_v20 = vpop.eup %7643  ;;  %6680 = vmatprep.mubr.msk.f32.mxu0 %vm512_vm12, %v2636_v39  ;;  %v7166_v41 = vpack.c.bf16 %v7450_v29, %v7449_v40  ;;  %7165 = vmatpush3.bf16.msra.mxu1 %v7162_v19 }
0x1272   :  { %v7646_v9 = vpop.eup %7645  ;;  %v2638_v8 = vmul.f32 %v7644_v20, %v8231_v54 }
0x1273   :  { %v2640_v3 = vmul.f32 %v7646_v9, %v8233_v56  ;;  %7167 = vmatprep.subr.bf16.mxu1 %v7166_v41 }
0x1274   :  { %6681 = vmatmul.mubr.msk.f32.gmra.mrb[36].mxu0 %vm512_vm12, %v2638_v8 }
0x1275   :  { %v7648_v6 = vpop.eup %7647  ;;  %6683 = vmatprep.mubr.msk.f32.mxu0 %vm512_vm12, %v2640_v3  ;;  %7169 = vmatpush3.bf16.msra.mxu1 %v7166_v41 }
0x1276   :  { %v2642_v43 = vmul.f32 %v7648_v6, %v8239_v59 }
0x1278   :  { %6684 = vmatmul.mubr.msk.f32.gmra.mrb[38].mxu0 %vm512_vm12, %v2642_v43  ;;  %v5942_v43 = vld [vmem:[#allocation2 + $0x138] ss:$0 sm:$0xff] }
0x129c   :  { %v2089_v13 = vpop.xlane.xlu1 %2088 }
0x129d   :  { %v2093_v11 = vmul.f32 0.03125, %v2089_v13 }
0x129f   :  { %v2092_v14 = vpop.xlane.xlu0 %2091  ;;  %v2095_v12 = vsub.f32 %v8250_v4, %v2093_v11 }
0x12a0   :  { %v2094_v25 = vmul.f32 0.03125, %v2092_v14 }
0x12a1   :  { %v2097_v32 = vmul.f32 %v2095_v12, %v2095_v12 }
0x12a2   :  { %v2096_v26 = vsub.f32 %v8253_v5, %v2094_v25 }
0x12a3   :  { %v2099_v5 = vsel %vm93_vm0, %v2097_v32, 0.0 }
0x12a4   :  { %v2098_v28 = vmul.f32 %v2096_v26, %v2096_v26 }
0x12a6   :  { %v2102_v35 = vsel %vm93_vm0, %v2098_v28, 0.0 }
0x133c   :  { %v6676_v44 = vpop.f32.mrb[32].mxu0 }
0x133d   :  { %v2733_v46 = vpop.f32.mrb[33].mxu0  ;;  %v2773_v48 = vmul.f32 %v6676_v44, %v7895_v21  ;;  %v2921_v44 = vld [vmem:[#allocation2 + $0x168] sm:$0xff] }
0x133e   :  { %v2772_v54 = vmul.f32 %v7895_v21, %v2733_v46  ;;  %v2922_v46 = vld [vmem:[#allocation2 + $0x170] sm:$0xff] }
0x1343   :  { %v6679_v47 = vpop.f32.mrb[34].mxu0 }
0x1344   :  { %v2775_v49 = vmul.f32 %v6679_v47, %v7924_v30  ;;  %v2743_v52 = vpop.f32.mrb[35].mxu0 }
0x1345   :  { %v2774_v56 = vmul.f32 %v7924_v30, %v2743_v52 }
0x1346   :  { %v2781_v57 = vadd.f32 %v2775_v49, %v2773_v48  ;;  %v5943_v49 = vld [vmem:[#allocation2 + $0x139] ss:$0 sm:$0xff] }
0x1347   :  { %v2780_v58 = vadd.f32 %v2774_v56, %v2772_v54  ;;  %v6682_v60 = vpop.f32.mrb[36].mxu0  ;;  %v8300_v56 = vpack.i.bf16 %v2922_v46, %v2921_v44 }
0x1348   :  { %v2777_v61 = vmul.f32 %v6682_v60, %v7931_v33  ;;  %v2753_v59 = vpop.f32.mrb[37].mxu0  ;;  %v2924_v60 = vld [vmem:[#allocation2 + $0x180] sm:$0xff] }
0x1349   :  { %v2776_v62 = vmul.f32 %v7931_v33, %v2753_v59 }
0x134a   :  { %v2783_v63 = vadd.f32 %v2781_v57, %v2777_v61 }
0x134b   :  { %v2782_v0 = vadd.f32 %v2780_v58, %v2776_v62  ;;  %v6685_v1 = vpop.f32.mrb[38].mxu0  ;;  %v2923_v58 = vld [vmem:[#allocation2 + $0x178] sm:$0xff] }
0x134c   :  { %v2779_v2 = vmul.f32 %v6685_v1, %v7938_v36  ;;  %v2763_v7 = vpop.f32.mrb[39].mxu0  ;;  %v8308_v62 = vpack.i.bf16 %v2924_v60, %v2923_v58 }
0x134d   :  { %v2778_v42 = vmul.f32 %v7938_v36, %v2763_v7 }
0x134e   :  { %v2785_v45 = vadd.f32 %v2783_v63, %v2779_v2  ;;  %v7170_v63 = vpack.c.bf16 %v2922_v46, %v2921_v44 }
0x134f   :  { %v2784_v10 = vadd.f32 %v2782_v0, %v2778_v42  ;;  %v7174_v0 = vpack.c.bf16 %v2924_v60, %v2923_v58 }
0x1350   :  { %7171 = vmatprep.subr.bf16.mxu0 %v7170_v63 }
0x1351   :  { %6694 = vmatprep.mubr.msk.f32.mxu1 %vm93_vm0, %v2784_v10  ;;  %7173 = vmatpush3.bf16.msra.mxu0 %v7170_v63 }
0x1352   :  { %6695 = vmatmul.mubr.msk.f32.vlgmr.msra.gmra.mrb[38].mxu1 %vm93_vm0, %v2785_v45  ;;  %7175 = vmatprep.subr.bf16.mxu0 %v7174_v0 }
0x1355   :  { %7177 = vmatpush3.bf16.msra.mxu0 %v7174_v0 }
0x1425   :  { %v6696_v15 = vpop.f32.mrb[38].mxu1 }
0x1426   :  { %v2880_v16 = vadd.f32 %v6696_v15, %v8144_v38  ;;  %v2870_v17 = vpop.f32.mrb[39].mxu1 }
0x1427   :  { %v2879_v22 = vadd.f32 %v2870_v17, %v8133_v34 }
0x1428   :  { %v2886_v24 = vsel %vm93_vm0, %v2880_v16, 0.0 }
0x1429   :  { %2887 = vadd.xlane.f32.xlu0 %v2886_v24  ;;  %v2883_v31 = vsel %vm93_vm0, %v2879_v22, 0.0 }
0x142a   :  { %2884 = vadd.xlane.f32.xlu1 %v2883_v31 }
0x142d   :  { %2103 = vadd.xlane.f32.xlu0 %v2102_v35  ;;  %v5970_v35 = vld [vmem:[#allocation2 + $0x160] ss:$0 sm:$0xff] }
0x142e   :  { %2100 = vadd.xlane.f32.xlu1 %v2099_v5 }
0x14b6   :  { %v2888_v4 = vpop.xlane.xlu0 %2887 }
0x14b7   :  { %v2890_v51 = vmul.f32 0.03125, %v2888_v4  ;;  %v2885_v38 = vpop.xlane.xlu1 %2884 }
0x14b8   :  { %v2889_v55 = vmul.f32 0.03125, %v2885_v38 }
0x14b9   :  { %v8290_v37 = vsub.f32 %v2880_v16, %v2890_v51 }
0x14ba   :  { %v8292_v34 = vsub.f32 %v2879_v22, %v2889_v55  ;;  %v2104_v19 = vpop.xlane.xlu0 %2103 }
0x14bb   :  { %v2106_v18 = vmul.f32 0.03125, %v2104_v19  ;;  %v2101_v39 = vpop.xlane.xlu1 %2100  ;;  %v2894_v29 = vmul.f32 %v8290_v37, %v8290_v37  ;;  %v5971_v19 = vld [vmem:[#allocation2 + $0x161] ss:$0 sm:$0xff] }
0x14bc   :  { %v2105_v40 = vmul.f32 0.03125, %v2101_v39  ;;  %v2893_v20 = vmul.f32 %v8292_v34, %v8292_v34 }
0x14bd   :  { %v2108_v41 = vadd.f32 1e-05, %v2106_v18  ;;  %v2898_v9 = vsel %vm93_vm0, %v2894_v29, 0.0 }
0x14be   :  { %v2107_v8 = vadd.f32 1e-05, %v2105_v40  ;;  %2899 = vadd.xlane.f32.xlu0 %v2898_v9  ;;  %v2895_v3 = vsel %vm93_vm0, %v2893_v20, 0.0 }
0x14bf   :  { %7649 = vrsqrt.f32 %v2108_v41  ;;  %2896 = vadd.xlane.f32.xlu1 %v2895_v3 }
0x14c0   :  { %7651 = vrsqrt.f32 %v2107_v8 }
0x14c9   :  { %v7650_v6 = vpop.eup %7649 }
0x14ca   :  { %v7652_v47 = vpop.eup %7651  ;;  %v2112_v48 = vmul.f32 %v7650_v6, %v2096_v26 }
0x14cb   :  { %v2111_v52 = vmul.f32 %v7652_v47, %v2095_v12 }
0x14cc   :  { %v2118_v54 = vmul.f32 %v5942_v43, %v2112_v48 }
0x14cd   :  { %v2117_v57 = vmul.f32 %v5942_v43, %v2111_v52 }
0x14ce   :  { %v8302_v61 = vadd.f32 %v5943_v49, %v2118_v54 }
0x14cf   :  { %v8304_v59 = vadd.f32 %v5943_v49, %v2117_v57 }
0x14d0   :  { %7452 = vrot.lane.b32.xlu1 %v8300_v56, %s7824_s1 }
0x14d1   :  { %6716 = vmatprep.mubr.msk.f32.mxu1 %vm93_vm0, %v8304_v59 }
0x14d4   :  { %7457 = vrot.lane.b32.xlu0 %v8308_v62, %s7824_s1  ;;  %7462 = vrot.lane.b32.xlu1 %v8300_v56, %s7826_s27 }
0x14d8   :  { %7467 = vrot.lane.b32.xlu1 %v8308_v62, %s7826_s27 }
0x154b   :  { %v2900_v1 = vpop.xlane.xlu0 %2899 }
0x154c   :  { %v2902_v2 = vmul.f32 0.03125, %v2900_v1  ;;  %v2897_v7 = vpop.xlane.xlu1 %2896 }
0x154d   :  { %v2901_v42 = vmul.f32 0.03125, %v2897_v7 }
0x154e   :  { %v2904_v45 = vadd.f32 1e-05, %v2902_v2 }
0x154f   :  { %v2903_v10 = vadd.f32 1e-05, %v2901_v42  ;;  %v7458_v14 = vpop.permute.xlu0 %7457 }
0x1550   :  { %7653 = vrsqrt.f32 %v2904_v45  ;;  %v7453_v13 = vpop.permute.xlu1 %7452  ;;  %v7460_v25 = vunpack.i.h.bf16 %v7458_v14  ;;  %v7459_v11 = vunpack.i.l.bf16 %v7458_v14 }
0x1551   :  { %7655 = vrsqrt.f32 %v2903_v10  ;;  %v7455_v26 = vunpack.i.h.bf16 %v7453_v13  ;;  %v7454_v12 = vunpack.i.l.bf16 %v7453_v13 }
0x1552   :  { %v7182_v16 = vpack.c.bf16 %v7460_v25, %v7459_v11 }
0x1553   :  { %v7178_v15 = vpack.c.bf16 %v7455_v26, %v7454_v12 }
0x1554   :  { %v7463_v17 = vpop.permute.xlu1 %7462 }
0x1555   :  { %7179 = vmatprep.subr.bf16.mxu1 %v7178_v15  ;;  %v7465_v22 = vunpack.i.h.bf16 %v7463_v17  ;;  %v7464_v24 = vunpack.i.l.bf16 %v7463_v17 }
0x1556   :  { %7181 = vmatpush3.bf16.msra.mxu1 %v7178_v15 }
0x1557   :  { %7183 = vmatprep.subr.bf16.mxu1 %v7182_v16  ;;  %v7186_v28 = vpack.c.bf16 %v7465_v22, %v7464_v24 }
0x1558   :  { %v7468_v32 = vpop.permute.xlu1 %7467 }
0x1559   :  { %7187 = vmatprep.subr.bf16.mxu0 %v7186_v28  ;;  %v7470_v38 = vunpack.i.h.bf16 %v7468_v32  ;;  %v7469_v55 = vunpack.i.l.bf16 %v7468_v32 }
0x155a   :  { %v7654_v31 = vpop.eup %7653  ;;  %7185 = vmatpush3.bf16.msra.mxu1 %v7182_v16 }
0x155b   :  { %v7656_v5 = vpop.eup %7655  ;;  %v2908_v4 = vmul.f32 %v7654_v31, %v8290_v37  ;;  %v7190_v40 = vpack.c.bf16 %v7470_v38, %v7469_v55 }
0x155c   :  { %v2907_v51 = vmul.f32 %v7656_v5, %v8292_v34 }
0x155d   :  { %6717 = vmatmul.mubr.msk.f32.vlgmr.msra.gmra.mrb[40].mxu1 %vm93_vm0, %v8302_v61  ;;  %v2914_v18 = vmul.f32 %v5970_v35, %v2908_v4 }
0x155e   :  { %v2913_v39 = vmul.f32 %v5970_v35, %v2907_v51 }
0x155f   :  { %v8324_v20 = vadd.f32 %v5971_v19, %v2914_v18 }
0x1560   :  { %v8322_v29 = vadd.f32 %v5971_v19, %v2913_v39 }
0x1562   :  { %6705 = vmatprep.mubr.msk.f32.mxu0 %vm93_vm0, %v8322_v29 }
0x1563   :  { %6706 = vmatmul.mubr.msk.f32.vlgmr.msra.gmra.mrb[40].mxu0 %vm93_vm0, %v8324_v20 }
0x1564   :  { %7189 = vmatpush3.bf16.msra.mxu0 %v7186_v28  ;;  %6727 = vmatprep.mubr.msk.f32.mxu0 %vm93_vm0, %v8304_v59 }
0x1565   :  { %7191 = vmatprep.subr.bf16.mxu0 %v7190_v40 }
0x1568   :  { %7193 = vmatpush3.bf16.msra.mxu0 %v7190_v40 }
0x156b   :  { %6728 = vmatmul.mubr.msk.f32.vlgmr.msra.gmra.mrb[42].mxu0 %vm93_vm0, %v8302_v61 }
0x1630   :  { %v6718_v37 = vpop.f32.mrb[40].mxu1 }
0x1631   :  { %v3094_v34 = vpop.f32.mrb[41].mxu1 }
0x1632   :  { %v7194_v41 = vpack.c.bf16 %v6718_v37, %v3094_v34 }
0x1634   :  { %7196 = vmatprep.subr.msk.bf16.mxu1 %vm7905_vm2, %v7194_v41 }
0x1635   :  { %7199 = vmatpush3.bf16.xpose.msk.msra.mxu1 %vm7905_vm2, %v7194_v41 }
0x1636   :  { %v6707_v9 = vpop.f32.mrb[40].mxu0 }
0x1637   :  { %v2997_v8 = vpop.f32.mrb[41].mxu0  ;;  %v3191_v6 = vmul.f32 %v6707_v9, %v7895_v21  ;;  %v3193_v44 = vmul.f32 %v6707_v9, %v7924_v30  ;;  %v3195_v52 = vmul.f32 %v6707_v9, %v7931_v33  ;;  %v3197_v57 = vmul.f32 %v6707_v9, %v7938_v36 }
0x1638   :  { %v3190_v3 = vmul.f32 %v7895_v21, %v2997_v8  ;;  %v3192_v43 = vmul.f32 %v7924_v30, %v2997_v8  ;;  %v3194_v47 = vmul.f32 %v7931_v33, %v2997_v8  ;;  %v3196_v54 = vmul.f32 %v7938_v36, %v2997_v8 }
0x163a   :  { %6734 = vmatprep.mubr.msk.f32.mxu1 %vm93_vm0, %v3190_v3 }
0x163c   :  { %6735 = vmatmul.mubr.msk.f32.vlgmr.msra.gmra.mrb[42].mxu1 %vm93_vm0, %v3191_v6 }
0x163d   :  { %6737 = vmatprep.mubr.msk.f32.mxu1 %vm93_vm0, %v3192_v43 }
0x163e   :  { %v6729_v46 = vpop.f32.mrb[42].mxu0 }
0x163f   :  { %v3181_v48 = vpop.f32.mrb[43].mxu0 }
0x1640   :  { %v7200_v49 = vpack.c.bf16 %v6729_v46, %v3181_v48  ;;  %6738 = vmatmul.mubr.msk.f32.gmra.mrb[44].mxu1 %vm93_vm0, %v3193_v44 }
0x1641   :  { %6740 = vmatprep.mubr.msk.f32.mxu1 %vm93_vm0, %v3194_v47 }
0x1642   :  { %7201 = vmatprep.subr.bf16.mxu0 %v7200_v49 }
0x1643   :  { %7203 = vmatpush3.bf16.msra.mxu0 %v7200_v49 }
0x1644   :  { %6741 = vmatmul.mubr.msk.f32.gmra.mrb[46].mxu1 %vm93_vm0, %v3195_v52 }
0x1645   :  { %6743 = vmatprep.mubr.msk.f32.mxu1 %vm93_vm0, %v3196_v54 }
0x1648   :  { %6744 = vmatmul.mubr.msk.f32.gmra.mrb[48].mxu1 %vm93_vm0, %v3197_v57 }
0x170f   :  { %v6736_v58 = vpop.f32.mrb[42].mxu1 }
0x1710   :  { %v3334_v60 = vmul.f32 0.17677669, %v6736_v58  ;;  %v3294_v63 = vpop.f32.mrb[43].mxu1 }
0x1711   :  { %v3333_v0 = vmul.f32 0.17677669, %v3294_v63 }
0x1712   :  { %v3342_v1 = vadd.f32 %v3334_v60, %v7952_v50 }
0x1713   :  { %v6739_v2 = vpop.f32.mrb[44].mxu1  ;;  %v3341_v7 = vadd.f32 %v3333_v0, %v7956_v53 }
0x1714   :  { %v3336_v42 = vmul.f32 0.17677669, %v6739_v2  ;;  %v3304_v45 = vpop.f32.mrb[45].mxu1  ;;  %v3352_v10 = vsel %vm512_vm12, %v3342_v1, -inf }
0x1715   :  { %v3335_v14 = vmul.f32 0.17677669, %v3304_v45  ;;  %3353 = vmax.xlane.f32.xlu1 %v3352_v10  ;;  %v3349_v13 = vsel %vm512_vm12, %v3341_v7, -inf }
0x1716   :  { %3350 = vmax.xlane.f32.xlu0 %v3349_v13  ;;  %v3344_v12 = vadd.f32 %v3336_v42, %v7952_v50 }
0x1717   :  { %v6742_v25 = vpop.f32.mrb[46].mxu1  ;;  %v3343_v11 = vadd.f32 %v3335_v14, %v7956_v53 }
0x1718   :  { %v3314_v26 = vpop.f32.mrb[47].mxu1  ;;  %v3338_v15 = vmul.f32 0.17677669, %v6742_v25  ;;  %v3358_v31 = vsel %vm512_vm12, %v3344_v12, -inf }
0x1719   :  { %v3337_v16 = vmul.f32 0.17677669, %v3314_v26  ;;  %v3355_v17 = vsel %vm512_vm12, %v3343_v11, -inf }
0x171a   :  { %3356 = vmax.xlane.f32.xlu0 %v3355_v17  ;;  %v3346_v4 = vadd.f32 %v3338_v15, %v7952_v50 }
0x171b   :  { %v6745_v22 = vpop.f32.mrb[48].mxu1  ;;  %v3345_v24 = vadd.f32 %v3337_v16, %v7956_v53 }
0x171c   :  { %v3324_v28 = vpop.f32.mrb[49].mxu1  ;;  %v3340_v32 = vmul.f32 0.17677669, %v6745_v22  ;;  %v3364_v55 = vsel %vm512_vm12, %v3346_v4, -inf }
0x171d   :  { %v3339_v35 = vmul.f32 0.17677669, %v3324_v28  ;;  %v3361_v5 = vsel %vm512_vm12, %v3345_v24, -inf }
0x171e   :  { %3359 = vmax.xlane.f32.xlu0 %v3358_v31  ;;  %3362 = vmax.xlane.f32.xlu1 %v3361_v5  ;;  %v3348_v38 = vadd.f32 %v3340_v32, %v7952_v50 }
0x171f   :  { %v3347_v51 = vadd.f32 %v3339_v35, %v7956_v53 }
0x1720   :  { %v3370_v18 = vsel %vm512_vm12, %v3348_v38, -inf }
0x1721   :  { %v3367_v19 = vsel %vm512_vm12, %v3347_v51, -inf }
0x1722   :  { %3365 = vmax.xlane.f32.xlu0 %v3364_v55  ;;  %3368 = vmax.xlane.f32.xlu1 %v3367_v19 }
0x1726   :  { %3371 = vmax.xlane.f32.xlu0 %v3370_v18 }
0x17a2   :  { %v3354_v39 = vpop.xlane.xlu1 %3353 }
0x17a3   :  { %v3374_v40 = vsub.f32 %v3342_v1, %v3354_v39  ;;  %v3351_v37 = vpop.xlane.xlu0 %3350 }
0x17a4   :  { %v3373_v34 = vsub.f32 %v3341_v7, %v3351_v37 }
0x17a5   :  { %v3383_v41 = vmul.f32 1.442695, %v3374_v40 }
0x17a6   :  { %v3381_v9 = vmul.f32 1.442695, %v3373_v34 }
0x17a7   :  { %7657 = vpow2.f32 %v3383_v41  ;;  %v3357_v8 = vpop.xlane.xlu0 %3356 }
0x17a8   :  { %7659 = vpow2.f32 %v3381_v9  ;;  %v3375_v3 = vsub.f32 %v3343_v11, %v3357_v8 }
0x17aa   :  { %v3385_v6 = vmul.f32 1.442695, %v3375_v3 }
0x17ab   :  { %v3360_v43 = vpop.xlane.xlu0 %3359  ;;  %v3363_v44 = vpop.xlane.xlu1 %3362 }
0x17ac   :  { %7661 = vpow2.f32 %v3385_v6  ;;  %v3376_v46 = vsub.f32 %v3344_v12, %v3360_v43  ;;  %v3377_v47 = vsub.f32 %v3345_v24, %v3363_v44 }
0x17ae   :  { %v3387_v48 = vmul.f32 1.442695, %v3376_v46  ;;  %v3389_v49 = vmul.f32 1.442695, %v3377_v47 }
0x17af   :  { %v3366_v52 = vpop.xlane.xlu0 %3365  ;;  %v3369_v54 = vpop.xlane.xlu1 %3368 }
0x17b0   :  { %7663 = vpow2.f32 %v3387_v48  ;;  %v3378_v57 = vsub.f32 %v3346_v4, %v3366_v52  ;;  %v3379_v58 = vsub.f32 %v3347_v51, %v3369_v54 }
0x17b1   :  { %v7658_v60 = vpop.eup %7657  ;;  %7665 = vpow2.f32 %v3389_v49 }
0x17b2   :  { %v7660_v63 = vpop.eup %7659  ;;  %v3391_v0 = vmul.f32 1.442695, %v3378_v57  ;;  %v3393_v1 = vmul.f32 1.442695, %v3379_v58  ;;  %v3400_v2 = vsel %vm512_vm12, %v7658_v60, 0.0 }
0x17b3   :  { %3401 = vadd.xlane.f32.xlu0 %v3400_v2  ;;  %v3372_v7 = vpop.xlane.xlu0 %3371  ;;  %v3397_v42 = vsel %vm512_vm12, %v7660_v63, 0.0 }
0x17b4   :  { %7667 = vpow2.f32 %v3391_v0  ;;  %v3380_v45 = vsub.f32 %v3348_v38, %v3372_v7  ;;  %3398 = vadd.xlane.f32.xlu1 %v3397_v42 }
0x17b5   :  { %7669 = vpow2.f32 %v3393_v1 }
0x17b6   :  { %v7662_v10 = vpop.eup %7661  ;;  %v3395_v14 = vmul.f32 1.442695, %v3380_v45 }
0x17b7   :  { %v3403_v13 = vsel %vm512_vm12, %v7662_v10, 0.0 }
0x17b8   :  { %7671 = vpow2.f32 %v3395_v14  ;;  %3404 = vadd.xlane.f32.xlu1 %v3403_v13 }
0x17ba   :  { %v7664_v25 = vpop.eup %7663 }
0x17bb   :  { %v7666_v11 = vpop.eup %7665  ;;  %v3406_v26 = vsel %vm512_vm12, %v7664_v25, 0.0 }
0x17bc   :  { %3407 = vadd.xlane.f32.xlu0 %v3406_v26  ;;  %v3409_v12 = vsel %vm512_vm12, %v7666_v11, 0.0 }
0x17bd   :  { %3410 = vadd.xlane.f32.xlu1 %v3409_v12 }
0x17be   :  { %v7668_v15 = vpop.eup %7667 }
0x17bf   :  { %v7670_v16 = vpop.eup %7669  ;;  %v3412_v17 = vsel %vm512_vm12, %v7668_v15, 0.0 }
0x17c0   :  { %3413 = vadd.xlane.f32.xlu0 %v3412_v17  ;;  %v3415_v22 = vsel %vm512_vm12, %v7670_v16, 0.0 }
0x17c1   :  { %3416 = vadd.xlane.f32.xlu1 %v3415_v22 }
0x17c2   :  { %v7672_v24 = vpop.eup %7671 }
0x17c3   :  { %v3418_v28 = vsel %vm512_vm12, %v7672_v24, 0.0 }
0x17c4   :  { %3419 = vadd.xlane.f32.xlu0 %v3418_v28 }
0x17d2   :  { %7472 = vrot.lane.b32.xlu1 %v8300_v56, %s7828_s28 }
0x17da   :  { %7477 = vrot.lane.b32.xlu0 %v8308_v62, %s7828_s28 }
0x1840   :  { %v3402_v31 = vpop.xlane.xlu0 %3401 }
0x1841   :  { %7673 = vrcp.f32 %v3402_v31  ;;  %v3399_v32 = vpop.xlane.xlu1 %3398 }
0x1842   :  { %7675 = vrcp.f32 %v3399_v32 }
0x1845   :  { %v3405_v35 = vpop.xlane.xlu1 %3404 }
0x1846   :  { %7677 = vrcp.f32 %v3405_v35 }
0x1849   :  { %v3408_v5 = vpop.xlane.xlu0 %3407 }
0x184a   :  { %7679 = vrcp.f32 %v3408_v5  ;;  %v3411_v4 = vpop.xlane.xlu1 %3410 }
0x184b   :  { %v7674_v51 = vpop.eup %7673  ;;  %7681 = vrcp.f32 %v3411_v4 }
0x184c   :  { %v7676_v38 = vpop.eup %7675  ;;  %v3424_v18 = vmul.f32 %v7674_v51, %v7658_v60 }
0x184d   :  { %v3414_v55 = vpop.xlane.xlu0 %3413  ;;  %v3422_v19 = vmul.f32 %v7676_v38, %v7660_v63 }
0x184e   :  { %7683 = vrcp.f32 %v3414_v55  ;;  %v3417_v56 = vpop.xlane.xlu1 %3416 }
0x184f   :  { %7685 = vrcp.f32 %v3417_v56  ;;  %6750 = vmatprep.mubr.msk.f32.mxu0 %vm512_vm12, %v3422_v19 }
0x1850   :  { %v7678_v62 = vpop.eup %7677  ;;  %6751 = vmatmul.mubr.msk.f32.vlgmr.msra.gmra.mrb[44].mxu0 %vm512_vm12, %v3424_v18 }
0x1851   :  { %v3420_v39 = vpop.xlane.xlu0 %3419  ;;  %v3426_v40 = vmul.f32 %v7678_v62, %v7662_v10 }
0x1852   :  { %7687 = vrcp.f32 %v3420_v39  ;;  %v7473_v37 = vpop.permute.xlu1 %7472 }
0x1853   :  { %6753 = vmatprep.mubr.msk.f32.mxu0 %vm512_vm12, %v3426_v40  ;;  %v7475_v41 = vunpack.i.h.bf16 %v7473_v37  ;;  %v7474_v9 = vunpack.i.l.bf16 %v7473_v37 }
0x1854   :  { %v7680_v34 = vpop.eup %7679 }
0x1855   :  { %v7682_v8 = vpop.eup %7681  ;;  %v3428_v3 = vmul.f32 %v7680_v34, %v7664_v25  ;;  %v7204_v43 = vpack.c.bf16 %v7475_v41, %v7474_v9  ;;  %v7478_v54 = vpop.permute.xlu0 %7477  ;;  %v3716_v9 = vld [vmem:[#allocation2 + $0x198] sm:$0xff] }
0x1856   :  { %v3430_v6 = vmul.f32 %v7682_v8, %v7666_v11  ;;  %v7480_v57 = vunpack.i.h.bf16 %v7478_v54  ;;  %v7479_v58 = vunpack.i.l.bf16 %v7478_v54  ;;  %v3724_v54 = vld [vmem:[#allocation2 + $0x1d8] sm:$0xff] }
0x1857   :  { %6754 = vmatmul.mubr.msk.f32.gmra.mrb[46].mxu0 %vm512_vm12, %v3428_v3  ;;  %7205 = vmatprep.subr.bf16.mxu0 %v7204_v43  ;;  %v3717_v3 = vld [vmem:[#allocation2 + $0x1a0] sm:$0xff] }
0x1858   :  { %v7684_v44 = vpop.eup %7683  ;;  %6756 = vmatprep.mubr.msk.f32.mxu0 %vm512_vm12, %v3430_v6  ;;  %7207 = vmatpush3.bf16.msra.mxu0 %v7204_v43  ;;  %v7208_v60 = vpack.c.bf16 %v7480_v57, %v7479_v58  ;;  %v3718_v6 = vld [vmem:[#allocation2 + $0x1a8] sm:$0xff]  ;;  %v3725_v57 = vld [vmem:[#allocation2 + $0x1e0] sm:$0xff] }
0x1859   :  { %v7686_v46 = vpop.eup %7685  ;;  %v3432_v47 = vmul.f32 %v7684_v44, %v7668_v15  ;;  %v7216_v43 = vpack.c.bf16 %v3718_v6, %v3717_v3  ;;  %v3720_v44 = vld [vmem:[#allocation2 + $0x1b8] sm:$0xff]  ;;  %v7228_v58 = vpack.c.bf16 %v3725_v57, %v3724_v54 }
0x185a   :  { %v3434_v48 = vmul.f32 %v7686_v46, %v7670_v16  ;;  %7209 = vmatprep.subr.bf16.mxu0 %v7208_v60  ;;  %v3721_v46 = vld [vmem:[#allocation2 + $0x1c0] sm:$0xff] }
0x185b   :  { %6757 = vmatmul.mubr.msk.f32.gmra.mrb[48].mxu0 %vm512_vm12, %v3432_v47  ;;  %v3722_v47 = vld [vmem:[#allocation2 + $0x1c8] sm:$0xff] }
0x185c   :  { %v7688_v49 = vpop.eup %7687  ;;  %6759 = vmatprep.mubr.msk.f32.mxu0 %vm512_vm12, %v3434_v48  ;;  %7211 = vmatpush3.bf16.msra.mxu0 %v7208_v60  ;;  %v7220_v48 = vpack.c.bf16 %v3721_v46, %v3720_v44  ;;  %v3943_v44 = vld [vmem:[#allocation2 + $0x208] sm:$0xff]  ;;  %v3944_v46 = vld [vmem:[#allocation2 + $0x210] sm:$0xff] }
0x185d   :  { %v3436_v52 = vmul.f32 %v7688_v49, %v7672_v24  ;;  %v3723_v49 = vld [vmem:[#allocation2 + $0x1d0] sm:$0xff]  ;;  %v7236_v54 = vpack.c.bf16 %v3944_v46, %v3943_v44 }
0x185e   :  { %7221 = vmatprep.subr.bf16.mxu0 %v7220_v48 }
0x185f   :  { %6760 = vmatmul.mubr.msk.f32.gmra.mrb[50].mxu0 %vm512_vm12, %v3436_v52  ;;  %v7224_v52 = vpack.c.bf16 %v3723_v49, %v3722_v47  ;;  %v8414_v47 = vpack.i.bf16 %v3944_v46, %v3943_v44  ;;  %v3946_v49 = vld [vmem:[#allocation2 + $0x220] sm:$0xff] }
0x1923   :  { %v6752_v63 = vpop.f32.mrb[44].mxu0 }
0x1924   :  { %v3527_v0 = vpop.f32.mrb[45].mxu0  ;;  %v3567_v2 = vmul.f32 %v6752_v63, %v7895_v21 }
0x1925   :  { %v3566_v45 = vmul.f32 %v7895_v21, %v3527_v0 }
0x192a   :  { %v6755_v1 = vpop.f32.mrb[46].mxu0 }
0x192b   :  { %v3569_v7 = vmul.f32 %v6755_v1, %v7924_v30  ;;  %v3537_v42 = vpop.f32.mrb[47].mxu0 }
0x192c   :  { %v3568_v10 = vmul.f32 %v7924_v30, %v3537_v42 }
0x192d   :  { %v3575_v14 = vadd.f32 %v3569_v7, %v3567_v2 }
0x192e   :  { %v3574_v13 = vadd.f32 %v3568_v10, %v3566_v45  ;;  %v6758_v25 = vpop.f32.mrb[48].mxu0  ;;  %v5998_v45 = vld [vmem:[#allocation2 + $0x188] ss:$0 sm:$0xff] }
0x192f   :  { %v3571_v11 = vmul.f32 %v6758_v25, %v7931_v33  ;;  %v3547_v26 = vpop.f32.mrb[49].mxu0  ;;  %v5999_v25 = vld [vmem:[#allocation2 + $0x189] ss:$0 sm:$0xff] }
0x1930   :  { %v3570_v12 = vmul.f32 %v7931_v33, %v3547_v26 }
0x1931   :  { %v3577_v15 = vadd.f32 %v3575_v14, %v3571_v11 }
0x1932   :  { %v3576_v16 = vadd.f32 %v3574_v13, %v3570_v12  ;;  %v6761_v17 = vpop.f32.mrb[50].mxu0 }
0x1933   :  { %v3573_v22 = vmul.f32 %v6761_v17, %v7938_v36  ;;  %v3557_v24 = vpop.f32.mrb[51].mxu0  ;;  %v3727_v17 = vld [vmem:[#allocation2 + $0x1f0] sm:$0xff] }
0x1934   :  { %v3572_v28 = vmul.f32 %v7938_v36, %v3557_v24  ;;  %v6000_v24 = vld [vmem:[#allocation2 + $0x1b0] ss:$0 sm:$0xff] }
0x1935   :  { %v3579_v31 = vadd.f32 %v3577_v15, %v3573_v22 }
0x1936   :  { %v3578_v32 = vadd.f32 %v3576_v16, %v3572_v28  ;;  %v3726_v16 = vld [vmem:[#allocation2 + $0x1e8] sm:$0xff] }
0x1937   :  { %v7232_v22 = vpack.c.bf16 %v3727_v17, %v3726_v16 }
0x1938   :  { %6770 = vmatprep.mubr.msk.f32.mxu0 %vm93_vm0, %v3578_v32 }
0x1939   :  { %6771 = vmatmul.mubr.msk.f32.vlgmr.msra.gmra.mrb[52].mxu0 %vm93_vm0, %v3579_v31 }
0x193a   :  { %7223 = vmatpush3.bf16.msra.mxu0 %v7220_v48  ;;  %v3945_v48 = vld [vmem:[#allocation2 + $0x218] sm:$0xff] }
0x193b   :  { %7225 = vmatprep.subr.bf16.mxu0 %v7224_v52  ;;  %v7240_v57 = vpack.c.bf16 %v3946_v49, %v3945_v48 }
0x193e   :  { %7227 = vmatpush3.bf16.msra.mxu0 %v7224_v52  ;;  %v8418_v52 = vpack.i.bf16 %v3946_v49, %v3945_v48 }
0x193f   :  { %7229 = vmatprep.subr.bf16.mxu0 %v7228_v58 }
0x1942   :  { %7231 = vmatpush3.bf16.msra.mxu0 %v7228_v58 }
0x1943   :  { %7233 = vmatprep.subr.bf16.mxu0 %v7232_v22 }
0x1946   :  { %7235 = vmatpush3.bf16.msra.mxu0 %v7232_v22  ;;  %v6006_v22 = vld [vmem:[#allocation2 + $0x200] ss:$0 sm:$0xff] }
0x1a0c   :  { %v6772_v35 = vpop.f32.mrb[52].mxu0 }
0x1a0d   :  { %v3674_v5 = vadd.f32 %v6772_v35, %v8324_v20  ;;  %v3664_v4 = vpop.f32.mrb[53].mxu0 }
0x1a0e   :  { %v3673_v51 = vadd.f32 %v3664_v4, %v8322_v29  ;;  %v3715_v29 = vld [vmem:[#allocation2 + $0x190] sm:$0xff] }
0x1a0f   :  { %v3680_v38 = vsel %vm93_vm0, %v3674_v5, 0.0  ;;  %v7212_v8 = vpack.c.bf16 %v3716_v9, %v3715_v29 }
0x1a10   :  { %3681 = vadd.xlane.f32.xlu0 %v3680_v38  ;;  %v3677_v55 = vsel %vm93_vm0, %v3673_v51, 0.0 }
0x1a11   :  { %3678 = vadd.xlane.f32.xlu1 %v3677_v55  ;;  %7213 = vmatprep.subr.bf16.mxu1 %v7212_v8 }
0x1a12   :  { %7215 = vmatpush3.bf16.msra.mxu1 %v7212_v8 }
0x1a13   :  { %7217 = vmatprep.subr.bf16.mxu1 %v7216_v43 }
0x1a16   :  { %7219 = vmatpush3.bf16.msra.mxu1 %v7216_v43 }
0x1a17   :  { %7237 = vmatprep.subr.bf16.mxu1 %v7236_v54 }
0x1a9d   :  { %v3682_v19 = vpop.xlane.xlu0 %3681 }
0x1a9e   :  { %v3684_v18 = vmul.f32 0.03125, %v3682_v19  ;;  %v3679_v56 = vpop.xlane.xlu1 %3678 }
0x1a9f   :  { %v3683_v62 = vmul.f32 0.03125, %v3679_v56 }
0x1aa0   :  { %v3686_v39 = vsub.f32 %v3674_v5, %v3684_v18 }
0x1aa1   :  { %v3685_v40 = vsub.f32 %v3673_v51, %v3683_v62  ;;  %v6003_v51 = vld [vmem:[#allocation2 + $0x1f8] ss:$0 sm:$0xff] }
0x1aa2   :  { %v3688_v37 = vmul.f32 %v3686_v39, %v3686_v39 }
0x1aa3   :  { %v3687_v34 = vmul.f32 %v3685_v40, %v3685_v40 }
0x1aa4   :  { %v3692_v41 = vsel %vm93_vm0, %v3688_v37, 0.0 }
0x1aa5   :  { %3693 = vadd.xlane.f32.xlu0 %v3692_v41  ;;  %v3689_v20 = vsel %vm93_vm0, %v3687_v34, 0.0 }
0x1aa6   :  { %3690 = vadd.xlane.f32.xlu1 %v3689_v20 }
0x1b32   :  { %v3694_v60 = vpop.xlane.xlu0 %3693 }
0x1b33   :  { %v3696_v63 = vmul.f32 0.03125, %v3694_v60  ;;  %v3691_v0 = vpop.xlane.xlu1 %3690 }
0x1b34   :  { %v3695_v1 = vmul.f32 0.03125, %v3691_v0 }
0x1b35   :  { %v3698_v2 = vadd.f32 1e-05, %v3696_v63 }
0x1b36   :  { %v3697_v7 = vadd.f32 1e-05, %v3695_v1 }
0x1b37   :  { %7689 = vrsqrt.f32 %v3698_v2 }
0x1b38   :  { %7691 = vrsqrt.f32 %v3697_v7 }
0x1b41   :  { %v7690_v42 = vpop.eup %7689 }
0x1b42   :  { %v7692_v10 = vpop.eup %7691  ;;  %v3702_v14 = vmul.f32 %v7690_v42, %v3686_v39 }
0x1b43   :  { %v3701_v13 = vmul.f32 %v7692_v10, %v3685_v40 }
0x1b44   :  { %v3708_v11 = vmul.f32 %v5998_v45, %v3702_v14 }
0x1b45   :  { %v3707_v26 = vmul.f32 %v5998_v45, %v3701_v13 }
0x1b46   :  { %v3714_v15 = vadd.f32 %v5999_v25, %v3708_v11 }
0x1b47   :  { %v3713_v12 = vadd.f32 %v5999_v25, %v3707_v26 }
0x1b49   :  { %6781 = vmatprep.mubr.msk.f32.mxu1 %vm93_vm0, %v3713_v12 }
0x1b4a   :  { %6782 = vmatmul.mubr.msk.f32.vlgmr.msra.gmra.mrb[50].mxu1 %vm93_vm0, %v3714_v15 }
0x1b4b   :  { %7239 = vmatpush3.bf16.msra.mxu1 %v7236_v54 }
0x1b4c   :  { %7241 = vmatprep.subr.bf16.mxu1 %v7240_v57 }
0x1b4f   :  { %7243 = vmatpush3.bf16.msra.mxu1 %v7240_v57 }
0x1c1d   :  { %v6783_v28 = vpop.f32.mrb[50].mxu1 }
0x1c1e   :  { %v3811_v31 = vadd.f32 %v6783_v28, %v6000_v24  ;;  %v3805_v32 = vpop.f32.mrb[51].mxu1 }
0x1c1f   :  { %v3806_v35 = vadd.f32 %v6000_v24, %v3805_v32 }
0x1c20   :  { %v3815_v4 = vmax.f32 %v3811_v31, 0.0 }
0x1c21   :  { %v3814_v5 = vmax.f32 %v3806_v35, 0.0 }
0x1c23   :  { %6800 = vmatprep.mubr.msk.f32.mxu0 %vm985_vm13, %v3814_v5 }
0x1c24   :  { %6801 = vmatmul.mubr.msk.f32.vlgmr.msra.gmra.mrb[54].mxu0 %vm985_vm13, %v3815_v4  ;;  %v6007_v4 = vld [vmem:[#allocation2 + $0x201] ss:$0 sm:$0xff] }
0x1cf7   :  { %v6802_v38 = vpop.f32.mrb[54].mxu0 }
0x1cf8   :  { %v3898_v55 = vadd.f32 %v6802_v38, %v6003_v51  ;;  %v3892_v19 = vpop.f32.mrb[55].mxu0 }
0x1cf9   :  { %v3893_v18 = vadd.f32 %v6003_v51, %v3892_v19 }
0x1cfa   :  { %v3902_v56 = vadd.f32 %v3898_v55, %v3714_v15 }
0x1cfb   :  { %v3901_v62 = vadd.f32 %v3893_v18, %v3713_v12 }
0x1cfc   :  { %v3908_v39 = vsel %vm93_vm0, %v3902_v56, 0.0 }
0x1cfd   :  { %3909 = vadd.xlane.f32.xlu0 %v3908_v39  ;;  %v3905_v40 = vsel %vm93_vm0, %v3901_v62, 0.0 }
0x1cfe   :  { %3906 = vadd.xlane.f32.xlu1 %v3905_v40 }
0x1d8a   :  { %v3910_v37 = vpop.xlane.xlu0 %3909 }
0x1d8b   :  { %v3912_v34 = vmul.f32 0.03125, %v3910_v37  ;;  %v3907_v41 = vpop.xlane.xlu1 %3906 }
0x1d8c   :  { %v3911_v20 = vmul.f32 0.03125, %v3907_v41 }
0x1d8d   :  { %v3914_v29 = vsub.f32 %v3902_v56, %v3912_v34 }
0x1d8e   :  { %v3913_v9 = vsub.f32 %v3901_v62, %v3911_v20 }
0x1d8f   :  { %v3916_v8 = vmul.f32 %v3914_v29, %v3914_v29 }
0x1d90   :  { %v3915_v3 = vmul.f32 %v3913_v9, %v3913_v9 }
0x1d91   :  { %v3920_v6 = vsel %vm93_vm0, %v3916_v8, 0.0 }
0x1d92   :  { %3921 = vadd.xlane.f32.xlu0 %v3920_v6  ;;  %v3917_v43 = vsel %vm93_vm0, %v3915_v3, 0.0 }
0x1d93   :  { %3918 = vadd.xlane.f32.xlu1 %v3917_v43 }
0x1da4   :  { %7482 = vrot.lane.b32.xlu1 %v8414_v47, %s7824_s1 }
0x1da8   :  { %7492 = vrot.lane.b32.xlu1 %v8414_v47, %s7826_s27  ;;  %7487 = vrot.lane.b32.xlu0 %v8418_v52, %s7824_s1 }
0x1dac   :  { %7497 = vrot.lane.b32.xlu1 %v8418_v52, %s7826_s27 }
0x1e1f   :  { %v3922_v58 = vpop.xlane.xlu0 %3921 }
0x1e20   :  { %v3924_v60 = vmul.f32 0.03125, %v3922_v58  ;;  %v3919_v63 = vpop.xlane.xlu1 %3918 }
0x1e21   :  { %v3923_v0 = vmul.f32 0.03125, %v3919_v63 }
0x1e22   :  { %v3926_v1 = vadd.f32 1e-05, %v3924_v60 }
0x1e23   :  { %v3925_v2 = vadd.f32 1e-05, %v3923_v0  ;;  %v7488_v17 = vpop.permute.xlu0 %7487 }
0x1e24   :  { %7693 = vrsqrt.f32 %v3926_v1  ;;  %v7483_v7 = vpop.permute.xlu1 %7482  ;;  %v7490_v35 = vunpack.i.h.bf16 %v7488_v17  ;;  %v7489_v5 = vunpack.i.l.bf16 %v7488_v17 }
0x1e25   :  { %7695 = vrsqrt.f32 %v3925_v2  ;;  %v7485_v42 = vunpack.i.h.bf16 %v7483_v7  ;;  %v7484_v45 = vunpack.i.l.bf16 %v7483_v7 }
0x1e26   :  { %v7248_v19 = vpack.c.bf16 %v7490_v35, %v7489_v5 }
0x1e27   :  { %v7244_v10 = vpack.c.bf16 %v7485_v42, %v7484_v45 }
0x1e28   :  { %v7493_v14 = vpop.permute.xlu1 %7492 }
0x1e29   :  { %v7495_v13 = vunpack.i.h.bf16 %v7493_v14  ;;  %v7494_v25 = vunpack.i.l.bf16 %v7493_v14  ;;  %7245 = vmatprep.subr.bf16.mxu1 %v7244_v10 }
0x1e2b   :  { %v7252_v11 = vpack.c.bf16 %v7495_v13, %v7494_v25 }
0x1e2c   :  { %v7498_v26 = vpop.permute.xlu1 %7497 }
0x1e2d   :  { %v7500_v12 = vunpack.i.h.bf16 %v7498_v26  ;;  %v7499_v15 = vunpack.i.l.bf16 %v7498_v26  ;;  %7253 = vmatprep.subr.bf16.mxu0 %v7252_v11 }
0x1e2e   :  { %v7694_v16 = vpop.eup %7693  ;;  %7255 = vmatpush3.bf16.msra.mxu0 %v7252_v11 }
0x1e2f   :  { %v7696_v24 = vpop.eup %7695  ;;  %v3930_v28 = vmul.f32 %v7694_v16, %v3914_v29  ;;  %v7256_v31 = vpack.c.bf16 %v7500_v12, %v7499_v15 }
0x1e30   :  { %v3929_v32 = vmul.f32 %v7696_v24, %v3913_v9 }
0x1e31   :  { %7257 = vmatprep.subr.bf16.mxu0 %v7256_v31  ;;  %v3936_v51 = vmul.f32 %v6006_v22, %v3930_v28 }
0x1e32   :  { %7259 = vmatpush3.bf16.msra.mxu0 %v7256_v31  ;;  %v3935_v38 = vmul.f32 %v6006_v22, %v3929_v32 }
0x1e33   :  { %v8428_v18 = vadd.f32 %v6007_v4, %v3936_v51 }
0x1e34   :  { %v8426_v55 = vadd.f32 %v6007_v4, %v3935_v38 }
0x1e36   :  { %6811 = vmatprep.mubr.msk.f32.mxu1 %vm93_vm0, %v8426_v55  ;;  %6833 = vmatprep.mubr.msk.f32.mxu0 %vm93_vm0, %v8426_v55 }
0x1e37   :  { %6812 = vmatmul.mubr.msk.f32.vlgmr.msra.gmra.mrb[52].mxu1 %vm93_vm0, %v8428_v18  ;;  %6834 = vmatmul.mubr.msk.f32.vlgmr.msra.gmra.mrb[56].mxu0 %vm93_vm0, %v8428_v18 }
0x1e38   :  { %7247 = vmatpush3.bf16.msra.mxu1 %v7244_v10  ;;  %6822 = vmatprep.mubr.msk.f32.mxu1 %vm93_vm0, %v8426_v55 }
0x1e39   :  { %7249 = vmatprep.subr.bf16.mxu1 %v7248_v19 }
0x1e3c   :  { %7251 = vmatpush3.bf16.msra.mxu1 %v7248_v19 }
0x1e3f   :  { %6823 = vmatmul.mubr.msk.f32.vlgmr.msra.gmra.mrb[54].mxu1 %vm93_vm0, %v8428_v18 }
0x1f0a   :  { %v6813_v56 = vpop.f32.mrb[52].mxu1  ;;  %v6835_v62 = vpop.f32.mrb[56].mxu0 }
0x1f0b   :  { %v4019_v39 = vpop.f32.mrb[53].mxu1  ;;  %v4197_v40 = vpop.f32.mrb[57].mxu0  ;;  %v4207_v9 = vmul.f32 %v6813_v56, %v7895_v21  ;;  %v4209_v3 = vmul.f32 %v6813_v56, %v7924_v30  ;;  %v4211_v43 = vmul.f32 %v6813_v56, %v7931_v33  ;;  %v4213_v46 = vmul.f32 %v6813_v56, %v7938_v36 }
0x1f0c   :  { %v4206_v37 = vmul.f32 %v7895_v21, %v4019_v39  ;;  %v7266_v34 = vpack.c.bf16 %v6835_v62, %v4197_v40  ;;  %v4208_v8 = vmul.f32 %v7924_v30, %v4019_v39  ;;  %v4210_v6 = vmul.f32 %v7931_v33, %v4019_v39 }
0x1f0d   :  { %v4212_v44 = vmul.f32 %v7938_v36, %v4019_v39 }
0x1f0e   :  { %6840 = vmatprep.mubr.msk.f32.mxu1 %vm93_vm0, %v4206_v37  ;;  %7267 = vmatprep.subr.bf16.mxu0 %v7266_v34 }
0x1f0f   :  { %7269 = vmatpush3.bf16.msra.mxu0 %v7266_v34 }
0x1f12   :  { %v6824_v41 = vpop.f32.mrb[54].mxu1 }
0x1f13   :  { %v4110_v20 = vpop.f32.mrb[55].mxu1 }
0x1f14   :  { %v7260_v29 = vpack.c.bf16 %v6824_v41, %v4110_v20 }
0x1f16   :  { %7262 = vmatprep.subr.msk.bf16.mxu1 %vm7905_vm2, %v7260_v29 }
0x1f17   :  { %7265 = vmatpush3.bf16.xpose.msk.msra.mxu1 %vm7905_vm2, %v7260_v29 }
0x1f1e   :  { %6841 = vmatmul.mubr.msk.f32.vlgmr.msra.gmra.mrb[56].mxu1 %vm93_vm0, %v4207_v9 }
0x1f1f   :  { %6843 = vmatprep.mubr.msk.f32.mxu1 %vm93_vm0, %v4208_v8 }
0x1f22   :  { %6844 = vmatmul.mubr.msk.f32.gmra.mrb[58].mxu1 %vm93_vm0, %v4209_v3 }
0x1f23   :  { %6846 = vmatprep.mubr.msk.f32.mxu1 %vm93_vm0, %v4210_v6 }
0x1f26   :  { %6847 = vmatmul.mubr.msk.f32.gmra.mrb[60].mxu1 %vm93_vm0, %v4211_v43 }
0x1f27   :  { %6849 = vmatprep.mubr.msk.f32.mxu1 %vm93_vm0, %v4212_v44 }
0x1f2a   :  { %6850 = vmatmul.mubr.msk.f32.gmra.mrb[62].mxu1 %vm93_vm0, %v4213_v46 }
0x1ff1   :  { %v6842_v48 = vpop.f32.mrb[56].mxu1 }
0x1ff2   :  { %v4350_v49 = vmul.f32 0.17677669, %v6842_v48  ;;  %v4310_v54 = vpop.f32.mrb[57].mxu1 }
0x1ff3   :  { %v4349_v57 = vmul.f32 0.17677669, %v4310_v54 }
0x1ff4   :  { %v4358_v58 = vmul.f32 %v8194_v23, %v4350_v49 }
0x1ff5   :  { %v4357_v60 = vmul.f32 %v8194_v23, %v4349_v57  ;;  %v6845_v63 = vpop.f32.mrb[58].mxu1 }
0x1ff6   :  { %v4352_v0 = vmul.f32 0.17677669, %v6845_v63  ;;  %v4320_v1 = vpop.f32.mrb[59].mxu1  ;;  %v4366_v2 = vadd.f32 %v4358_v58, %v7952_v50 }
0x1ff7   :  { %v4351_v7 = vmul.f32 0.17677669, %v4320_v1  ;;  %v4365_v42 = vadd.f32 %v4357_v60, %v7956_v53 }
0x1ff8   :  { %v4360_v45 = vmul.f32 %v8194_v23, %v4352_v0  ;;  %v4376_v10 = vsel %vm512_vm12, %v4366_v2, -inf }
0x1ff9   :  { %v4359_v14 = vmul.f32 %v8194_v23, %v4351_v7  ;;  %4377 = vmax.xlane.f32.xlu1 %v4376_v10  ;;  %v6848_v13 = vpop.f32.mrb[60].mxu1  ;;  %v4373_v25 = vsel %vm512_vm12, %v4365_v42, -inf }
0x1ffa   :  { %v4354_v11 = vmul.f32 0.17677669, %v6848_v13  ;;  %4374 = vmax.xlane.f32.xlu0 %v4373_v25  ;;  %v4330_v26 = vpop.f32.mrb[61].mxu1  ;;  %v4368_v16 = vadd.f32 %v4360_v45, %v7952_v50 }
0x1ffb   :  { %v4353_v12 = vmul.f32 0.17677669, %v4330_v26  ;;  %v4367_v15 = vadd.f32 %v4359_v14, %v7956_v53 }
0x1ffc   :  { %v4362_v17 = vmul.f32 %v8194_v23, %v4354_v11  ;;  %v4382_v4 = vsel %vm512_vm12, %v4368_v16, -inf }
0x1ffd   :  { %v4361_v22 = vmul.f32 %v8194_v23, %v4353_v12  ;;  %v6851_v24 = vpop.f32.mrb[62].mxu1  ;;  %v4379_v28 = vsel %vm512_vm12, %v4367_v15, -inf }
0x1ffe   :  { %v4356_v31 = vmul.f32 0.17677669, %v6851_v24  ;;  %4380 = vmax.xlane.f32.xlu0 %v4379_v28  ;;  %v4340_v32 = vpop.f32.mrb[63].mxu1  ;;  %v4370_v56 = vadd.f32 %v4362_v17, %v7952_v50 }
0x1fff   :  { %v4355_v35 = vmul.f32 0.17677669, %v4340_v32  ;;  %v4369_v5 = vadd.f32 %v4361_v22, %v7956_v53 }
0x2000   :  { %v4364_v51 = vmul.f32 %v8194_v23, %v4356_v31  ;;  %v4388_v39 = vsel %vm512_vm12, %v4370_v56, -inf }
0x2001   :  { %v4363_v38 = vmul.f32 %v8194_v23, %v4355_v35  ;;  %v4385_v19 = vsel %vm512_vm12, %v4369_v5, -inf }
0x2002   :  { %4383 = vmax.xlane.f32.xlu0 %v4382_v4  ;;  %4386 = vmax.xlane.f32.xlu1 %v4385_v19  ;;  %v4372_v37 = vadd.f32 %v4364_v51, %v7952_v50 }
0x2003   :  { %v4371_v62 = vadd.f32 %v4363_v38, %v7956_v53 }
0x2004   :  { %v4394_v34 = vsel %vm512_vm12, %v4372_v37, -inf }
0x2005   :  { %v4391_v40 = vsel %vm512_vm12, %v4371_v62, -inf }
0x2006   :  { %4389 = vmax.xlane.f32.xlu0 %v4388_v39  ;;  %4392 = vmax.xlane.f32.xlu1 %v4391_v40 }
0x200a   :  { %4395 = vmax.xlane.f32.xlu0 %v4394_v34 }
0x2086   :  { %v4378_v23 = vpop.xlane.xlu1 %4377 }
0x2087   :  { %v4398_v41 = vsub.f32 %v4366_v2, %v4378_v23  ;;  %v4375_v20 = vpop.xlane.xlu0 %4374 }
0x2088   :  { %v4397_v29 = vsub.f32 %v4365_v42, %v4375_v20 }
0x2089   :  { %v4407_v9 = vmul.f32 1.442695, %v4398_v41 }
0x208a   :  { %v4405_v8 = vmul.f32 1.442695, %v4397_v29 }
0x208b   :  { %7697 = vpow2.f32 %v4407_v9  ;;  %v4381_v3 = vpop.xlane.xlu0 %4380 }
0x208c   :  { %7699 = vpow2.f32 %v4405_v8  ;;  %v4399_v6 = vsub.f32 %v4367_v15, %v4381_v3 }
0x208e   :  { %v4409_v43 = vmul.f32 1.442695, %v4399_v6 }
0x208f   :  { %v4384_v44 = vpop.xlane.xlu0 %4383  ;;  %v4387_v46 = vpop.xlane.xlu1 %4386 }
0x2090   :  { %7701 = vpow2.f32 %v4409_v43  ;;  %v4400_v48 = vsub.f32 %v4368_v16, %v4384_v44  ;;  %v4401_v49 = vsub.f32 %v4369_v5, %v4387_v46 }
0x2092   :  { %v4411_v54 = vmul.f32 1.442695, %v4400_v48  ;;  %v4413_v57 = vmul.f32 1.442695, %v4401_v49 }
0x2093   :  { %v4390_v58 = vpop.xlane.xlu0 %4389  ;;  %v4393_v60 = vpop.xlane.xlu1 %4392 }
0x2094   :  { %7703 = vpow2.f32 %v4411_v54  ;;  %v4402_v63 = vsub.f32 %v4370_v56, %v4390_v58  ;;  %v4403_v0 = vsub.f32 %v4371_v62, %v4393_v60 }
0x2095   :  { %v7698_v1 = vpop.eup %7697  ;;  %7705 = vpow2.f32 %v4413_v57 }
0x2096   :  { %v7700_v2 = vpop.eup %7699  ;;  %v4415_v7 = vmul.f32 1.442695, %v4402_v63  ;;  %v4417_v42 = vmul.f32 1.442695, %v4403_v0  ;;  %v4424_v45 = vsel %vm512_vm12, %v7698_v1, 0.0 }
0x2097   :  { %4425 = vadd.xlane.f32.xlu0 %v4424_v45  ;;  %v4396_v10 = vpop.xlane.xlu0 %4395  ;;  %v4421_v14 = vsel %vm512_vm12, %v7700_v2, 0.0 }
0x2098   :  { %7707 = vpow2.f32 %v4415_v7  ;;  %v4404_v13 = vsub.f32 %v4372_v37, %v4396_v10  ;;  %4422 = vadd.xlane.f32.xlu1 %v4421_v14 }
0x2099   :  { %7709 = vpow2.f32 %v4417_v42 }
0x209a   :  { %v7702_v25 = vpop.eup %7701  ;;  %v4419_v11 = vmul.f32 1.442695, %v4404_v13 }
0x209b   :  { %v4427_v26 = vsel %vm512_vm12, %v7702_v25, 0.0 }
0x209c   :  { %7711 = vpow2.f32 %v4419_v11  ;;  %4428 = vadd.xlane.f32.xlu1 %v4427_v26 }
0x209e   :  { %v7704_v12 = vpop.eup %7703 }
0x209f   :  { %v7706_v15 = vpop.eup %7705  ;;  %v4430_v16 = vsel %vm512_vm12, %v7704_v12, 0.0 }
0x20a0   :  { %4431 = vadd.xlane.f32.xlu0 %v4430_v16  ;;  %v4433_v17 = vsel %vm512_vm12, %v7706_v15, 0.0 }
0x20a1   :  { %4434 = vadd.xlane.f32.xlu1 %v4433_v17 }
0x20a2   :  { %v7708_v22 = vpop.eup %7707 }
0x20a3   :  { %v7710_v24 = vpop.eup %7709  ;;  %v4436_v28 = vsel %vm512_vm12, %v7708_v22, 0.0 }
0x20a4   :  { %4437 = vadd.xlane.f32.xlu0 %v4436_v28  ;;  %v4439_v31 = vsel %vm512_vm12, %v7710_v24, 0.0 }
0x20a5   :  { %4440 = vadd.xlane.f32.xlu1 %v4439_v31 }
0x20a6   :  { %v7712_v32 = vpop.eup %7711 }
0x20a7   :  { %v4442_v35 = vsel %vm512_vm12, %v7712_v32, 0.0 }
0x20a8   :  { %4443 = vadd.xlane.f32.xlu0 %v4442_v35 }
0x20b6   :  { %7502 = vrot.lane.b32.xlu1 %v8414_v47, %s7828_s28 }
0x20be   :  { %7507 = vrot.lane.b32.xlu0 %v8418_v52, %s7828_s28 }
0x2124   :  { %v4426_v5 = vpop.xlane.xlu0 %4425 }
0x2125   :  { %7713 = vrcp.f32 %v4426_v5  ;;  %v4423_v4 = vpop.xlane.xlu1 %4422 }
0x2126   :  { %7715 = vrcp.f32 %v4423_v4 }
0x2129   :  { %v4429_v51 = vpop.xlane.xlu1 %4428 }
0x212a   :  { %7717 = vrcp.f32 %v4429_v51 }
0x212d   :  { %v4432_v38 = vpop.xlane.xlu0 %4431 }
0x212e   :  { %7719 = vrcp.f32 %v4432_v38  ;;  %v4435_v19 = vpop.xlane.xlu1 %4434 }
0x212f   :  { %v7714_v56 = vpop.eup %7713  ;;  %7721 = vrcp.f32 %v4435_v19 }
0x2130   :  { %v7716_v62 = vpop.eup %7715  ;;  %v4448_v37 = vmul.f32 %v7714_v56, %v7698_v1 }
0x2131   :  { %v4438_v39 = vpop.xlane.xlu0 %4437  ;;  %v4446_v40 = vmul.f32 %v7716_v62, %v7700_v2 }
0x2132   :  { %7723 = vrcp.f32 %v4438_v39  ;;  %v4441_v47 = vpop.xlane.xlu1 %4440 }
0x2133   :  { %7725 = vrcp.f32 %v4441_v47  ;;  %6856 = vmatprep.mubr.msk.f32.mxu0 %vm512_vm12, %v4446_v40 }
0x2134   :  { %v7718_v52 = vpop.eup %7717  ;;  %6857 = vmatmul.mubr.msk.f32.vlgmr.msra.gmra.mrb[58].mxu0 %vm512_vm12, %v4448_v37 }
0x2135   :  { %v4444_v34 = vpop.xlane.xlu0 %4443  ;;  %v4450_v23 = vmul.f32 %v7718_v52, %v7702_v25 }
0x2136   :  { %7727 = vrcp.f32 %v4444_v34  ;;  %v7503_v41 = vpop.permute.xlu1 %7502 }
0x2137   :  { %6859 = vmatprep.mubr.msk.f32.mxu0 %vm512_vm12, %v4450_v23  ;;  %v7505_v29 = vunpack.i.h.bf16 %v7503_v41  ;;  %v7504_v9 = vunpack.i.l.bf16 %v7503_v41 }
0x2138   :  { %v7720_v20 = vpop.eup %7719 }
0x2139   :  { %v7722_v8 = vpop.eup %7721  ;;  %v4452_v3 = vmul.f32 %v7720_v20, %v7704_v12  ;;  %v7270_v43 = vpack.c.bf16 %v7505_v29, %v7504_v9  ;;  %v7508_v58 = vpop.permute.xlu0 %7507  ;;  %v4740_v29 = vld [vmem:[#allocation2 + $0x238] sm:$0xff] }
0x213a   :  { %v4454_v6 = vmul.f32 %v7722_v8, %v7706_v15  ;;  %v7510_v60 = vunpack.i.h.bf16 %v7508_v58  ;;  %v7509_v63 = vunpack.i.l.bf16 %v7508_v58  ;;  %v4741_v8 = vld [vmem:[#allocation2 + $0x240] sm:$0xff] }
0x213b   :  { %6860 = vmatmul.mubr.msk.f32.gmra.mrb[60].mxu0 %vm512_vm12, %v4452_v3  ;;  %7271 = vmatprep.subr.bf16.mxu1 %v7270_v43  ;;  %v4742_v3 = vld [vmem:[#allocation2 + $0x248] sm:$0xff] }
0x213c   :  { %v7724_v44 = vpop.eup %7723  ;;  %6862 = vmatprep.mubr.msk.f32.mxu0 %vm512_vm12, %v4454_v6  ;;  %7273 = vmatpush3.bf16.msra.mxu1 %v7270_v43  ;;  %v7274_v0 = vpack.c.bf16 %v7510_v60, %v7509_v63  ;;  %v8528_v6 = vpack.i.bf16 %v4742_v3, %v4741_v8 }
0x213d   :  { %v7726_v46 = vpop.eup %7725  ;;  %v4456_v48 = vmul.f32 %v7724_v44, %v7708_v22  ;;  %v7282_v44 = vpack.c.bf16 %v4742_v3, %v4741_v8 }
0x213e   :  { %v4458_v49 = vmul.f32 %v7726_v46, %v7710_v24  ;;  %7275 = vmatprep.subr.bf16.mxu1 %v7274_v0 }
0x213f   :  { %6863 = vmatmul.mubr.msk.f32.gmra.mrb[62].mxu0 %vm512_vm12, %v4456_v48 }
0x2140   :  { %v7728_v54 = vpop.eup %7727  ;;  %6865 = vmatprep.mubr.msk.f32.mxu0 %vm512_vm12, %v4458_v49  ;;  %7277 = vmatpush3.bf16.msra.mxu1 %v7274_v0 }
0x2141   :  { %v4460_v57 = vmul.f32 %v7728_v54, %v7712_v32 }
0x2143   :  { %6866 = vmatmul.mubr.msk.f32.gmra.mrb[64].mxu0 %vm512_vm12, %v4460_v57 }
0x2207   :  { %v6858_v1 = vpop.f32.mrb[58].mxu0 }
0x2208   :  { %v4551_v2 = vpop.f32.mrb[59].mxu0  ;;  %v4591_v42 = vmul.f32 %v6858_v1, %v7895_v21 }
0x2209   :  { %v4590_v14 = vmul.f32 %v7895_v21, %v4551_v2 }
0x220e   :  { %v6861_v7 = vpop.f32.mrb[60].mxu0 }
0x220f   :  { %v4593_v45 = vmul.f32 %v6861_v7, %v7924_v30  ;;  %v4561_v10 = vpop.f32.mrb[61].mxu0 }
0x2210   :  { %v4592_v13 = vmul.f32 %v7924_v30, %v4561_v10 }
0x2211   :  { %v4599_v25 = vadd.f32 %v4593_v45, %v4591_v42 }
0x2212   :  { %v4598_v11 = vadd.f32 %v4592_v13, %v4590_v14  ;;  %v6864_v26 = vpop.f32.mrb[62].mxu0 }
0x2213   :  { %v4595_v12 = vmul.f32 %v6864_v26, %v7931_v33  ;;  %v4571_v15 = vpop.f32.mrb[63].mxu0 }
0x2214   :  { %v4594_v16 = vmul.f32 %v7931_v33, %v4571_v15 }
0x2215   :  { %v4601_v17 = vadd.f32 %v4599_v25, %v4595_v12  ;;  %v6034_v12 = vld [vmem:[#allocation2 + $0x228] ss:$0 sm:$0xff] }
0x2216   :  { %v4600_v22 = vadd.f32 %v4598_v11, %v4594_v16  ;;  %v6867_v24 = vpop.f32.mrb[64].mxu0 }
0x2217   :  { %v4597_v28 = vmul.f32 %v6867_v24, %v7938_v36  ;;  %v4581_v31 = vpop.f32.mrb[65].mxu0 }
0x2218   :  { %v4596_v32 = vmul.f32 %v7938_v36, %v4581_v31 }
0x2219   :  { %v4603_v35 = vadd.f32 %v4601_v17, %v4597_v28  ;;  %v6035_v28 = vld [vmem:[#allocation2 + $0x229] ss:$0 sm:$0xff] }
0x221a   :  { %v4602_v5 = vadd.f32 %v4600_v22, %v4596_v32 }
0x221c   :  { %6876 = vmatprep.mubr.msk.f32.mxu1 %vm93_vm0, %v4602_v5 }
0x221d   :  { %6877 = vmatmul.mubr.msk.f32.vlgmr.msra.gmra.mrb[64].mxu1 %vm93_vm0, %v4603_v35 }
0x221e   :  { %6898 = vmatprep.mubr.msk.f32.mxu1 %vm93_vm0, %v8304_v59 }
0x22f0   :  { %v6878_v4 = vpop.f32.mrb[64].mxu1 }
0x22f1   :  { %v4698_v51 = vadd.f32 %v6878_v4, %v8428_v18  ;;  %v4688_v38 = vpop.f32.mrb[65].mxu1 }
0x22f2   :  { %v4697_v19 = vadd.f32 %v4688_v38, %v8426_v55  ;;  %v4739_v55 = vld [vmem:[#allocation2 + $0x230] sm:$0xff] }
0x22f3   :  { %v4704_v56 = vsel %vm93_vm0, %v4698_v51, 0.0  ;;  %v8524_v9 = vpack.i.bf16 %v4740_v29, %v4739_v55  ;;  %v7278_v43 = vpack.c.bf16 %v4740_v29, %v4739_v55 }
0x22f4   :  { %4705 = vadd.xlane.f32.xlu0 %v4704_v56  ;;  %v4701_v62 = vsel %vm93_vm0, %v4697_v19, 0.0 }
0x22f5   :  { %4702 = vadd.xlane.f32.xlu1 %v4701_v62  ;;  %7279 = vmatprep.subr.bf16.mxu0 %v7278_v43 }
0x22f6   :  { %7281 = vmatpush3.bf16.msra.mxu0 %v7278_v43 }
0x22f7   :  { %7283 = vmatprep.subr.bf16.mxu0 %v7282_v44 }
0x22fa   :  { %7285 = vmatpush3.bf16.msra.mxu0 %v7282_v44 }
0x2381   :  { %v4706_v39 = vpop.xlane.xlu0 %4705 }
0x2382   :  { %v4708_v40 = vmul.f32 0.03125, %v4706_v39  ;;  %v4703_v37 = vpop.xlane.xlu1 %4702 }
0x2383   :  { %v4707_v47 = vmul.f32 0.03125, %v4703_v37 }
0x2384   :  { %v4710_v52 = vsub.f32 %v4698_v51, %v4708_v40 }
0x2385   :  { %v4709_v34 = vsub.f32 %v4697_v19, %v4707_v47 }
0x2386   :  { %v4712_v23 = vmul.f32 %v4710_v52, %v4710_v52 }
0x2387   :  { %v4711_v41 = vmul.f32 %v4709_v34, %v4709_v34 }
0x2388   :  { %v4716_v20 = vsel %vm93_vm0, %v4712_v23, 0.0 }
0x2389   :  { %4717 = vadd.xlane.f32.xlu0 %v4716_v20  ;;  %v4713_v18 = vsel %vm93_vm0, %v4711_v41, 0.0 }
0x238a   :  { %4714 = vadd.xlane.f32.xlu1 %v4713_v18 }
0x239b   :  { %7512 = vrot.lane.b32.xlu1 %v8524_v9, %s7824_s1 }
0x239f   :  { %7517 = vrot.lane.b32.xlu0 %v8528_v6, %s7824_s1  ;;  %7522 = vrot.lane.b32.xlu1 %v8524_v9, %s7826_s27 }
0x23a3   :  { %7527 = vrot.lane.b32.xlu1 %v8528_v6, %s7826_s27 }
0x2416   :  { %v4718_v46 = vpop.xlane.xlu0 %4717 }
0x2417   :  { %v4720_v48 = vmul.f32 0.03125, %v4718_v46  ;;  %v4715_v49 = vpop.xlane.xlu1 %4714 }
0x2418   :  { %v4719_v54 = vmul.f32 0.03125, %v4715_v49 }
0x2419   :  { %v4722_v57 = vadd.f32 1e-05, %v4720_v48 }
0x241a   :  { %v4721_v58 = vadd.f32 1e-05, %v4719_v54  ;;  %v7518_v60 = vpop.permute.xlu0 %7517 }
0x241b   :  { %7729 = vrsqrt.f32 %v4722_v57  ;;  %v7513_v63 = vpop.permute.xlu1 %7512  ;;  %v7520_v0 = vunpack.i.h.bf16 %v7518_v60  ;;  %v7519_v1 = vunpack.i.l.bf16 %v7518_v60 }
0x241c   :  { %7731 = vrsqrt.f32 %v4721_v58  ;;  %v7515_v2 = vunpack.i.h.bf16 %v7513_v63  ;;  %v7514_v7 = vunpack.i.l.bf16 %v7513_v63 }
0x241d   :  { %v7290_v45 = vpack.c.bf16 %v7520_v0, %v7519_v1 }
0x241e   :  { %v7286_v42 = vpack.c.bf16 %v7515_v2, %v7514_v7 }
0x241f   :  { %v7523_v10 = vpop.permute.xlu1 %7522 }
0x2420   :  { %7287 = vmatprep.subr.bf16.mxu1 %v7286_v42  ;;  %v7525_v14 = vunpack.i.h.bf16 %v7523_v10  ;;  %v7524_v13 = vunpack.i.l.bf16 %v7523_v10 }
0x2421   :  { %7289 = vmatpush3.bf16.msra.mxu1 %v7286_v42 }
0x2422   :  { %7291 = vmatprep.subr.bf16.mxu1 %v7290_v45  ;;  %v7294_v25 = vpack.c.bf16 %v7525_v14, %v7524_v13 }
0x2423   :  { %v7528_v26 = vpop.permute.xlu1 %7527 }
0x2424   :  { %7295 = vmatprep.subr.bf16.mxu0 %v7294_v25  ;;  %v7530_v22 = vunpack.i.h.bf16 %v7528_v26  ;;  %v7529_v24 = vunpack.i.l.bf16 %v7528_v26 }
0x2425   :  { %v7730_v11 = vpop.eup %7729  ;;  %7293 = vmatpush3.bf16.msra.mxu1 %v7290_v45 }
0x2426   :  { %v7732_v15 = vpop.eup %7731  ;;  %v4726_v16 = vmul.f32 %v7730_v11, %v4710_v52  ;;  %v7298_v5 = vpack.c.bf16 %v7530_v22, %v7529_v24 }
0x2427   :  { %v4725_v17 = vmul.f32 %v7732_v15, %v4709_v34 }
0x2428   :  { %6899 = vmatmul.mubr.msk.f32.vlgmr.msra.gmra.mrb[66].mxu1 %vm93_vm0, %v8302_v61  ;;  %v4732_v31 = vmul.f32 %v6034_v12, %v4726_v16 }
0x2429   :  { %v4731_v32 = vmul.f32 %v6034_v12, %v4725_v17 }
0x242a   :  { %v8540_v4 = vadd.f32 %v6035_v28, %v4732_v31 }
0x242b   :  { %v8538_v35 = vadd.f32 %v6035_v28, %v4731_v32 }
0x242d   :  { %6887 = vmatprep.mubr.msk.f32.mxu0 %vm93_vm0, %v8538_v35 }
0x242e   :  { %6888 = vmatmul.mubr.msk.f32.vlgmr.msra.gmra.mrb[66].mxu0 %vm93_vm0, %v8540_v4 }
0x242f   :  { %7297 = vmatpush3.bf16.msra.mxu0 %v7294_v25  ;;  %6909 = vmatprep.mubr.msk.f32.mxu0 %vm93_vm0, %v8304_v59 }
0x2430   :  { %7299 = vmatprep.subr.bf16.mxu0 %v7298_v5 }
0x2433   :  { %7301 = vmatpush3.bf16.msra.mxu0 %v7298_v5 }
0x2436   :  { %6910 = vmatmul.mubr.msk.f32.vlgmr.msra.gmra.mrb[68].mxu0 %vm93_vm0, %v8302_v61 }
0x24fb   :  { %v6900_v51 = vpop.f32.mrb[66].mxu1 }
0x24fc   :  { %v4906_v38 = vpop.f32.mrb[67].mxu1 }
0x24fd   :  { %v7302_v19 = vpack.c.bf16 %v6900_v51, %v4906_v38 }
0x24ff   :  { %7304 = vmatprep.subr.msk.bf16.mxu1 %vm7905_vm2, %v7302_v19 }
0x2500   :  { %7307 = vmatpush3.bf16.xpose.msk.msra.mxu1 %vm7905_vm2, %v7302_v19 }
0x2501   :  { %v6889_v56 = vpop.f32.mrb[66].mxu0 }
0x2502   :  { %v4815_v62 = vpop.f32.mrb[67].mxu0  ;;  %v5003_v59 = vmul.f32 %v6889_v56, %v7895_v21  ;;  %v5005_v61 = vmul.f32 %v6889_v56, %v7924_v30  ;;  %v5007_v34 = vmul.f32 %v6889_v56, %v7931_v33  ;;  %v5009_v41 = vmul.f32 %v6889_v56, %v7938_v36 }
0x2503   :  { %v5002_v39 = vmul.f32 %v7895_v21, %v4815_v62  ;;  %v5004_v40 = vmul.f32 %v7924_v30, %v4815_v62  ;;  %v5006_v27 = vmul.f32 %v7931_v33, %v4815_v62  ;;  %v5008_v23 = vmul.f32 %v7938_v36, %v4815_v62 }
0x2505   :  { %6916 = vmatprep.mubr.msk.f32.mxu1 %vm93_vm0, %v5002_v39 }
0x2507   :  { %6917 = vmatmul.mubr.msk.f32.vlgmr.msra.gmra.mrb[68].mxu1 %vm93_vm0, %v5003_v59 }
0x2508   :  { %6919 = vmatprep.mubr.msk.f32.mxu1 %vm93_vm0, %v5004_v40 }
0x2509   :  { %v6911_v37 = vpop.f32.mrb[68].mxu0 }
0x250a   :  { %v4993_v47 = vpop.f32.mrb[69].mxu0 }
0x250b   :  { %v7308_v52 = vpack.c.bf16 %v6911_v37, %v4993_v47  ;;  %6920 = vmatmul.mubr.msk.f32.gmra.mrb[70].mxu1 %vm93_vm0, %v5005_v61 }
0x250c   :  { %6922 = vmatprep.mubr.msk.f32.mxu1 %vm93_vm0, %v5006_v27 }
0x250d   :  { %7309 = vmatprep.subr.bf16.mxu0 %v7308_v52 }
0x250e   :  { %7311 = vmatpush3.bf16.msra.mxu0 %v7308_v52 }
0x250f   :  { %6923 = vmatmul.mubr.msk.f32.gmra.mrb[72].mxu1 %vm93_vm0, %v5007_v34 }
0x2510   :  { %6925 = vmatprep.mubr.msk.f32.mxu1 %vm93_vm0, %v5008_v23 }
0x2513   :  { %6926 = vmatmul.mubr.msk.f32.gmra.mrb[74].mxu1 %vm93_vm0, %v5009_v41 }
0x25da   :  { %v6918_v20 = vpop.f32.mrb[68].mxu1 }
0x25db   :  { %v5146_v18 = vmul.f32 0.17677669, %v6918_v20  ;;  %v5106_v55 = vpop.f32.mrb[69].mxu1 }
0x25dc   :  { %v5145_v29 = vmul.f32 0.17677669, %v5106_v55 }
0x25dd   :  { %v5154_v8 = vadd.f32 %v5146_v18, %v7952_v50 }
0x25de   :  { %v5153_v3 = vadd.f32 %v5145_v29, %v7956_v53  ;;  %v6921_v43 = vpop.f32.mrb[70].mxu1 }
0x25df   :  { %v5148_v44 = vmul.f32 0.17677669, %v6921_v43  ;;  %v5116_v46 = vpop.f32.mrb[71].mxu1  ;;  %v5164_v48 = vsel %vm512_vm12, %v5154_v8, -inf }
0x25e0   :  { %v5147_v49 = vmul.f32 0.17677669, %v5116_v46  ;;  %5165 = vmax.xlane.f32.xlu1 %v5164_v48  ;;  %v5161_v54 = vsel %vm512_vm12, %v5153_v3, -inf }
0x25e1   :  { %5162 = vmax.xlane.f32.xlu0 %v5161_v54  ;;  %v5156_v60 = vadd.f32 %v5148_v44, %v7952_v50 }
0x25e2   :  { %v5155_v57 = vadd.f32 %v5147_v49, %v7956_v53  ;;  %v6924_v58 = vpop.f32.mrb[72].mxu1 }
0x25e3   :  { %v5126_v63 = vpop.f32.mrb[73].mxu1  ;;  %v5150_v0 = vmul.f32 0.17677669, %v6924_v58  ;;  %v5170_v10 = vsel %vm512_vm12, %v5156_v60, -inf }
0x25e4   :  { %v5149_v1 = vmul.f32 0.17677669, %v5126_v63  ;;  %v5167_v2 = vsel %vm512_vm12, %v5155_v57, -inf }
0x25e5   :  { %5168 = vmax.xlane.f32.xlu0 %v5167_v2  ;;  %v5158_v14 = vadd.f32 %v5150_v0, %v7952_v50 }
0x25e6   :  { %v5157_v7 = vadd.f32 %v5149_v1, %v7956_v53  ;;  %v6927_v42 = vpop.f32.mrb[74].mxu1 }
0x25e7   :  { %v5136_v45 = vpop.f32.mrb[75].mxu1  ;;  %v5152_v13 = vmul.f32 0.17677669, %v6927_v42  ;;  %v5176_v15 = vsel %vm512_vm12, %v5158_v14, -inf }
0x25e8   :  { %v5151_v25 = vmul.f32 0.17677669, %v5136_v45  ;;  %v5173_v11 = vsel %vm512_vm12, %v5157_v7, -inf }
0x25e9   :  { %5171 = vmax.xlane.f32.xlu0 %v5170_v10  ;;  %5174 = vmax.xlane.f32.xlu1 %v5173_v11  ;;  %v5160_v12 = vadd.f32 %v5152_v13, %v7952_v50 }
0x25ea   :  { %v5159_v26 = vadd.f32 %v5151_v25, %v7956_v53 }
0x25eb   :  { %v5182_v17 = vsel %vm512_vm12, %v5160_v12, -inf }
0x25ec   :  { %v5179_v16 = vsel %vm512_vm12, %v5159_v26, -inf }
0x25ed   :  { %5177 = vmax.xlane.f32.xlu0 %v5176_v15  ;;  %5180 = vmax.xlane.f32.xlu1 %v5179_v16 }
0x25f1   :  { %5183 = vmax.xlane.f32.xlu0 %v5182_v17 }
0x266d   :  { %v5166_v22 = vpop.xlane.xlu1 %5165 }
0x266e   :  { %v5186_v24 = vsub.f32 %v5154_v8, %v5166_v22  ;;  %v5163_v28 = vpop.xlane.xlu0 %5162 }
0x266f   :  { %v5185_v31 = vsub.f32 %v5153_v3, %v5163_v28 }
0x2670   :  { %v5195_v32 = vmul.f32 1.442695, %v5186_v24 }
0x2671   :  { %v5193_v5 = vmul.f32 1.442695, %v5185_v31 }
0x2672   :  { %7733 = vpow2.f32 %v5195_v32  ;;  %v5169_v51 = vpop.xlane.xlu0 %5168 }
0x2673   :  { %7735 = vpow2.f32 %v5193_v5  ;;  %v5187_v53 = vsub.f32 %v5155_v57, %v5169_v51 }
0x2675   :  { %v5197_v50 = vmul.f32 1.442695, %v5187_v53 }
0x2676   :  { %v5172_v38 = vpop.xlane.xlu0 %5171  ;;  %v5175_v19 = vpop.xlane.xlu1 %5174 }
0x2677   :  { %7737 = vpow2.f32 %v5197_v50  ;;  %v5188_v56 = vsub.f32 %v5156_v60, %v5172_v38  ;;  %v5189_v62 = vsub.f32 %v5157_v7, %v5175_v19 }
0x2679   :  { %v5199_v39 = vmul.f32 1.442695, %v5188_v56  ;;  %v5201_v59 = vmul.f32 1.442695, %v5189_v62 }
0x267a   :  { %v5178_v40 = vpop.xlane.xlu0 %5177  ;;  %v5181_v61 = vpop.xlane.xlu1 %5180 }
0x267b   :  { %7739 = vpow2.f32 %v5199_v39  ;;  %v5190_v37 = vsub.f32 %v5158_v14, %v5178_v40  ;;  %v5191_v27 = vsub.f32 %v5159_v26, %v5181_v61 }
0x267c   :  { %v7734_v47 = vpop.eup %7733  ;;  %7741 = vpow2.f32 %v5201_v59 }
0x267d   :  { %v7736_v52 = vpop.eup %7735  ;;  %v5203_v34 = vmul.f32 1.442695, %v5190_v37  ;;  %v5205_v23 = vmul.f32 1.442695, %v5191_v27  ;;  %v5212_v41 = vsel %vm512_vm12, %v7734_v47, 0.0 }
0x267e   :  { %5213 = vadd.xlane.f32.xlu0 %v5212_v41  ;;  %v5184_v20 = vpop.xlane.xlu0 %5183  ;;  %v5209_v18 = vsel %vm512_vm12, %v7736_v52, 0.0 }
0x267f   :  { %7743 = vpow2.f32 %v5203_v34  ;;  %v5192_v55 = vsub.f32 %v5160_v12, %v5184_v20  ;;  %5210 = vadd.xlane.f32.xlu1 %v5209_v18 }
0x2680   :  { %7745 = vpow2.f32 %v5205_v23 }
0x2681   :  { %v7738_v29 = vpop.eup %7737  ;;  %v5207_v8 = vmul.f32 1.442695, %v5192_v55 }
0x2682   :  { %v5215_v3 = vsel %vm512_vm12, %v7738_v29, 0.0 }
0x2683   :  { %7747 = vpow2.f32 %v5207_v8  ;;  %5216 = vadd.xlane.f32.xlu1 %v5215_v3 }
0x2685   :  { %v7740_v43 = vpop.eup %7739 }
0x2686   :  { %v7742_v44 = vpop.eup %7741  ;;  %v5218_v46 = vsel %vm512_vm12, %v7740_v43, 0.0 }
0x2687   :  { %5219 = vadd.xlane.f32.xlu0 %v5218_v46  ;;  %v5221_v48 = vsel %vm512_vm12, %v7742_v44, 0.0 }
0x2688   :  { %5222 = vadd.xlane.f32.xlu1 %v5221_v48 }
0x2689   :  { %v7744_v49 = vpop.eup %7743 }
0x268a   :  { %v7746_v54 = vpop.eup %7745  ;;  %v5224_v57 = vsel %vm512_vm12, %v7744_v49, 0.0 }
0x268b   :  { %5225 = vadd.xlane.f32.xlu0 %v5224_v57  ;;  %v5227_v58 = vsel %vm512_vm12, %v7746_v54, 0.0 }
0x268c   :  { %5228 = vadd.xlane.f32.xlu1 %v5227_v58 }
0x268d   :  { %v7748_v60 = vpop.eup %7747 }
0x268e   :  { %v5230_v63 = vsel %vm512_vm12, %v7748_v60, 0.0 }
0x268f   :  { %5231 = vadd.xlane.f32.xlu0 %v5230_v63 }
0x269d   :  { %7532 = vrot.lane.b32.xlu1 %v8524_v9, %s7828_s28 }
0x26a5   :  { %7537 = vrot.lane.b32.xlu0 %v8528_v6, %s7828_s28 }
0x270b   :  { %v5214_v0 = vpop.xlane.xlu0 %5213 }
0x270c   :  { %7749 = vrcp.f32 %v5214_v0  ;;  %v5211_v1 = vpop.xlane.xlu1 %5210 }
0x270d   :  { %7751 = vrcp.f32 %v5211_v1 }
0x2710   :  { %v5217_v2 = vpop.xlane.xlu1 %5216 }
0x2711   :  { %7753 = vrcp.f32 %v5217_v2 }
0x2714   :  { %v5220_v7 = vpop.xlane.xlu0 %5219 }
0x2715   :  { %7755 = vrcp.f32 %v5220_v7  ;;  %v5223_v42 = vpop.xlane.xlu1 %5222 }
0x2716   :  { %v7750_v45 = vpop.eup %7749  ;;  %7757 = vrcp.f32 %v5223_v42 }
0x2717   :  { %v7752_v10 = vpop.eup %7751  ;;  %v5236_v25 = vmul.f32 %v7750_v45, %v7734_v47 }
0x2718   :  { %v5226_v14 = vpop.xlane.xlu0 %5225  ;;  %v5234_v13 = vmul.f32 %v7752_v10, %v7736_v52 }
0x2719   :  { %7759 = vrcp.f32 %v5226_v14  ;;  %v5229_v9 = vpop.xlane.xlu1 %5228  ;;  %v5528_v14 = vld [vmem:[#allocation2 + $0x260] sm:$0xff] }
0x271a   :  { %7761 = vrcp.f32 %v5229_v9  ;;  %6932 = vmatprep.mubr.msk.f32.mxu0 %vm512_vm12, %v5234_v13  ;;  %v5530_v9 = vld [vmem:[#allocation2 + $0x270] sm:$0xff] }
0x271b   :  { %v7754_v6 = vpop.eup %7753  ;;  %6933 = vmatmul.mubr.msk.f32.vlgmr.msra.gmra.mrb[70].mxu0 %vm512_vm12, %v5236_v25  ;;  %v5529_v25 = vld [vmem:[#allocation2 + $0x268] sm:$0xff] }
0x271c   :  { %v5232_v11 = vpop.xlane.xlu0 %5231  ;;  %v5238_v26 = vmul.f32 %v7754_v6, %v7738_v29  ;;  %v7324_v6 = vpack.c.bf16 %v5530_v9, %v5529_v25 }
0x271d   :  { %7763 = vrcp.f32 %v5232_v11  ;;  %v7533_v12 = vpop.permute.xlu1 %7532  ;;  %v5532_v11 = vld [vmem:[#allocation2 + $0x280] sm:$0xff] }
0x271e   :  { %6935 = vmatprep.mubr.msk.f32.mxu0 %vm512_vm12, %v5238_v26  ;;  %v7535_v16 = vunpack.i.h.bf16 %v7533_v12  ;;  %v7534_v17 = vunpack.i.l.bf16 %v7533_v12  ;;  %v5533_v26 = vld [vmem:[#allocation2 + $0x288] sm:$0xff]  ;;  %v5534_v12 = vld [vmem:[#allocation2 + $0x290] sm:$0xff] }
0x271f   :  { %v7756_v15 = vpop.eup %7755 }
0x2720   :  { %v7758_v22 = vpop.eup %7757  ;;  %v5240_v24 = vmul.f32 %v7756_v15, %v7740_v43  ;;  %v7312_v31 = vpack.c.bf16 %v7535_v16, %v7534_v17  ;;  %v7538_v19 = vpop.permute.xlu0 %7537  ;;  %v7328_v15 = vpack.c.bf16 %v5533_v26, %v5532_v11  ;;  %v5535_v16 = vld [vmem:[#allocation2 + $0x298] sm:$0xff] }
0x2721   :  { %v5242_v28 = vmul.f32 %v7758_v22, %v7742_v44  ;;  %v7540_v56 = vunpack.i.h.bf16 %v7538_v19  ;;  %v7539_v62 = vunpack.i.l.bf16 %v7538_v19  ;;  %v7332_v17 = vpack.c.bf16 %v5535_v16, %v5534_v12  ;;  %v5536_v22 = vld [vmem:[#allocation2 + $0x2a0] sm:$0xff]  ;;  %v6062_v19 = vld [vmem:[#allocation2 + $0x250] ss:$0 sm:$0xff] }
0x2722   :  { %6936 = vmatmul.mubr.msk.f32.gmra.mrb[72].mxu0 %vm512_vm12, %v5240_v24  ;;  %7313 = vmatprep.subr.bf16.mxu0 %v7312_v31  ;;  %v5537_v24 = vld [vmem:[#allocation2 + $0x2a8] sm:$0xff] }
0x2723   :  { %v7760_v32 = vpop.eup %7759  ;;  %6938 = vmatprep.mubr.msk.f32.mxu0 %vm512_vm12, %v5242_v28  ;;  %7315 = vmatpush3.bf16.msra.mxu0 %v7312_v31  ;;  %v7316_v39 = vpack.c.bf16 %v7540_v56, %v7539_v62  ;;  %v7336_v28 = vpack.c.bf16 %v5537_v24, %v5536_v22  ;;  %v6071_v24 = vld [vmem:[#allocation2 + $0x2c9] ss:$0 sm:$0xff] }
0x2724   :  { %v7762_v5 = vpop.eup %7761  ;;  %v5244_v51 = vmul.f32 %v7760_v32, %v7744_v49 }
0x2725   :  { %v5246_v53 = vmul.f32 %v7762_v5, %v7746_v54  ;;  %7317 = vmatprep.subr.bf16.mxu0 %v7316_v39 }
0x2726   :  { %6939 = vmatmul.mubr.msk.f32.gmra.mrb[74].mxu0 %vm512_vm12, %v5244_v51 }
0x2727   :  { %v7764_v50 = vpop.eup %7763  ;;  %6941 = vmatprep.mubr.msk.f32.mxu0 %vm512_vm12, %v5246_v53  ;;  %7319 = vmatpush3.bf16.msra.mxu0 %v7316_v39 }
0x2728   :  { %v5248_v38 = vmul.f32 %v7764_v50, %v7748_v60  ;;  %7329 = vmatprep.subr.bf16.mxu0 %v7328_v15 }
0x272a   :  { %6942 = vmatmul.mubr.msk.f32.gmra.mrb[76].mxu0 %vm512_vm12, %v5248_v38 }
0x27ee   :  { %v6934_v59 = vpop.f32.mrb[70].mxu0 }
0x27ef   :  { %v5339_v40 = vpop.f32.mrb[71].mxu0  ;;  %v5379_v37 = vmul.f32 %v6934_v59, %v7895_v21  ;;  %v6063_v59 = vld [vmem:[#allocation2 + $0x251] ss:$0 sm:$0xff] }
0x27f0   :  { %v5378_v52 = vmul.f32 %v7895_v21, %v5339_v40 }
0x27f5   :  { %v6937_v61 = vpop.f32.mrb[72].mxu0 }
0x27f6   :  { %v5381_v27 = vmul.f32 %v6937_v61, %v7924_v30  ;;  %v5349_v47 = vpop.f32.mrb[73].mxu0 }
0x27f7   :  { %v5380_v34 = vmul.f32 %v7924_v30, %v5349_v47  ;;  %v5538_v47 = vld [vmem:[#allocation2 + $0x2b0] sm:$0xff] }
0x27f8   :  { %v5387_v23 = vadd.f32 %v5381_v27, %v5379_v37 }
0x27f9   :  { %v5386_v41 = vadd.f32 %v5380_v34, %v5378_v52  ;;  %v6940_v20 = vpop.f32.mrb[74].mxu0  ;;  %v5539_v52 = vld [vmem:[#allocation2 + $0x2b8] sm:$0xff] }
0x27fa   :  { %v5383_v18 = vmul.f32 %v6940_v20, %v7931_v33  ;;  %v5359_v55 = vpop.f32.mrb[75].mxu0  ;;  %v7340_v34 = vpack.c.bf16 %v5539_v52, %v5538_v47 }
0x27fb   :  { %v5382_v29 = vmul.f32 %v7931_v33, %v5359_v55 }
0x27fc   :  { %v5389_v8 = vadd.f32 %v5387_v23, %v5383_v18  ;;  %v6064_v23 = vld [vmem:[#allocation2 + $0x278] ss:$0 sm:$0xff] }
0x27fd   :  { %v5388_v3 = vadd.f32 %v5386_v41, %v5382_v29  ;;  %v6943_v43 = vpop.f32.mrb[76].mxu0 }
0x27fe   :  { %v5385_v44 = vmul.f32 %v6943_v43, %v7938_v36  ;;  %v5369_v46 = vpop.f32.mrb[77].mxu0 }
0x27ff   :  { %v5384_v48 = vmul.f32 %v7938_v36, %v5369_v46 }
0x2800   :  { %v5391_v49 = vadd.f32 %v5389_v8, %v5385_v44 }
0x2801   :  { %v5390_v21 = vadd.f32 %v5388_v3, %v5384_v48  ;;  %v6067_v3 = vld [vmem:[#allocation2 + $0x2c0] ss:$0 sm:$0xff] }
0x2803   :  { %6952 = vmatprep.mubr.msk.f32.mxu0 %vm93_vm0, %v5390_v21 }
0x2804   :  { %6953 = vmatmul.mubr.msk.f32.vlgmr.msra.gmra.mrb[78].mxu0 %vm93_vm0, %v5391_v49 }
0x2805   :  { %7331 = vmatpush3.bf16.msra.mxu0 %v7328_v15  ;;  %v6070_v15 = vld [vmem:[#allocation2 + $0x2c8] ss:$0 sm:$0xff] }
0x2806   :  { %7333 = vmatprep.subr.bf16.mxu0 %v7332_v17 }
0x2809   :  { %7335 = vmatpush3.bf16.msra.mxu0 %v7332_v17 }
0x280a   :  { %7337 = vmatprep.subr.bf16.mxu0 %v7336_v28 }
0x280d   :  { %7339 = vmatpush3.bf16.msra.mxu0 %v7336_v28 }
0x280e   :  { %7341 = vmatprep.subr.bf16.mxu0 %v7340_v34 }
0x2811   :  { %7343 = vmatpush3.bf16.msra.mxu0 %v7340_v34 }
0x28d7   :  { %v6954_v30 = vpop.f32.mrb[78].mxu0 }
0x28d8   :  { %v5486_v54 = vadd.f32 %v6954_v30, %v8540_v4  ;;  %v5476_v57 = vpop.f32.mrb[79].mxu0 }
0x28d9   :  { %v5485_v33 = vadd.f32 %v5476_v57, %v8538_v35  ;;  %v5527_v35 = vld [vmem:[#allocation2 + $0x258] sm:$0xff] }
0x28da   :  { %v5492_v58 = vsel %vm93_vm0, %v5486_v54, 0.0  ;;  %v7320_v13 = vpack.c.bf16 %v5528_v14, %v5527_v35  ;;  %v5758_v35 = vld [vmem:[#allocation2 + $0x2e8] sm:$0xff] }
0x28db   :  { %5493 = vadd.xlane.f32.xlu0 %v5492_v58  ;;  %v5489_v60 = vsel %vm93_vm0, %v5485_v33, 0.0 }
0x28dc   :  { %5490 = vadd.xlane.f32.xlu1 %v5489_v60  ;;  %7321 = vmatprep.subr.bf16.mxu1 %v7320_v13 }
0x28dd   :  { %7323 = vmatpush3.bf16.msra.mxu1 %v7320_v13 }
0x28de   :  { %7325 = vmatprep.subr.bf16.mxu1 %v7324_v6 }
0x28e1   :  { %7327 = vmatpush3.bf16.msra.mxu1 %v7324_v6 }
0x2968   :  { %v5494_v63 = vpop.xlane.xlu0 %5493 }
0x2969   :  { %v5496_v36 = vmul.f32 0.03125, %v5494_v63  ;;  %v5491_v0 = vpop.xlane.xlu1 %5490 }
0x296a   :  { %v5495_v1 = vmul.f32 0.03125, %v5491_v0 }
0x296b   :  { %v5498_v2 = vsub.f32 %v5486_v54, %v5496_v36 }
0x296c   :  { %v5497_v7 = vsub.f32 %v5485_v33, %v5495_v1 }
0x296d   :  { %v5500_v42 = vmul.f32 %v5498_v2, %v5498_v2 }
0x296e   :  { %v5499_v45 = vmul.f32 %v5497_v7, %v5497_v7 }
0x296f   :  { %v5504_v10 = vsel %vm93_vm0, %v5500_v42, 0.0  ;;  %v5755_v42 = vld [vmem:[#allocation2 + $0x2d0] sm:$0xff] }
0x2970   :  { %5505 = vadd.xlane.f32.xlu0 %v5504_v10  ;;  %v5501_v4 = vsel %vm93_vm0, %v5499_v45, 0.0  ;;  %v5756_v45 = vld [vmem:[#allocation2 + $0x2d8] sm:$0xff] }
0x2971   :  { %5502 = vadd.xlane.f32.xlu1 %v5501_v4  ;;  %v7344_v10 = vpack.c.bf16 %v5756_v45, %v5755_v42  ;;  %v5757_v4 = vld [vmem:[#allocation2 + $0x2e0] sm:$0xff] }
0x2972   :  { %v7348_v14 = vpack.c.bf16 %v5758_v35, %v5757_v4 }
0x2973   :  { %7345 = vmatprep.subr.bf16.mxu1 %v7344_v10 }
0x29fd   :  { %v5506_v31 = vpop.xlane.xlu0 %5505 }
0x29fe   :  { %v5508_v32 = vmul.f32 0.03125, %v5506_v31  ;;  %v5503_v5 = vpop.xlane.xlu1 %5502 }
0x29ff   :  { %v5507_v51 = vmul.f32 0.03125, %v5503_v5 }
0x2a00   :  { %v5510_v53 = vadd.f32 1e-05, %v5508_v32 }
0x2a01   :  { %v5509_v50 = vadd.f32 1e-05, %v5507_v51  ;;  %v6072_v51 = vld [vmem:[#allocation2 + $0x2f0] ss:$0 sm:$0xff] }
0x2a02   :  { %7765 = vrsqrt.f32 %v5510_v53 }
0x2a03   :  { %7767 = vrsqrt.f32 %v5509_v50 }
0x2a0c   :  { %v7766_v38 = vpop.eup %7765 }
0x2a0d   :  { %v7768_v56 = vpop.eup %7767  ;;  %v5514_v62 = vmul.f32 %v7766_v38, %v5498_v2 }
0x2a0e   :  { %v5513_v39 = vmul.f32 %v7768_v56, %v5497_v7 }
0x2a0f   :  { %v5520_v40 = vmul.f32 %v6062_v19, %v5514_v62 }
0x2a10   :  { %v5519_v61 = vmul.f32 %v6062_v19, %v5513_v39 }
0x2a11   :  { %v5526_v27 = vadd.f32 %v6063_v59, %v5520_v40 }
0x2a12   :  { %v5525_v37 = vadd.f32 %v6063_v59, %v5519_v61 }
0x2a14   :  { %6963 = vmatprep.mubr.msk.f32.mxu1 %vm93_vm0, %v5525_v37 }
0x2a15   :  { %6964 = vmatmul.mubr.msk.f32.vlgmr.msra.gmra.mrb[76].mxu1 %vm93_vm0, %v5526_v27 }
0x2a16   :  { %7347 = vmatpush3.bf16.msra.mxu1 %v7344_v10 }
0x2a17   :  { %7349 = vmatprep.subr.bf16.mxu1 %v7348_v14 }
0x2a1a   :  { %7351 = vmatpush3.bf16.msra.mxu1 %v7348_v14 }
0x2ae8   :  { %v6965_v41 = vpop.f32.mrb[76].mxu1 }
0x2ae9   :  { %v5623_v20 = vadd.f32 %v6965_v41, %v6064_v23  ;;  %v5617_v18 = vpop.f32.mrb[77].mxu1 }
0x2aea   :  { %v5618_v55 = vadd.f32 %v6064_v23, %v5617_v18 }
0x2aeb   :  { %v5627_v8 = vmax.f32 %v5623_v20, 0.0 }
0x2aec   :  { %v5626_v29 = vmax.f32 %v5618_v55, 0.0 }
0x2aee   :  { %6982 = vmatprep.mubr.msk.f32.mxu0 %vm985_vm13, %v5626_v29 }
0x2aef   :  { %6983 = vmatmul.mubr.msk.f32.vlgmr.msra.gmra.mrb[80].mxu0 %vm985_vm13, %v5627_v8 }
0x2bc2   :  { %v6984_v43 = vpop.f32.mrb[80].mxu0 }
0x2bc3   :  { %v5710_v44 = vadd.f32 %v6984_v43, %v6067_v3  ;;  %v5704_v46 = vpop.f32.mrb[81].mxu0 }
0x2bc4   :  { %v5705_v48 = vadd.f32 %v6067_v3, %v5704_v46 }
0x2bc5   :  { %v5714_v49 = vadd.f32 %v5710_v44, %v5526_v27 }
0x2bc6   :  { %v5713_v21 = vadd.f32 %v5705_v48, %v5525_v37 }
0x2bc7   :  { %v5720_v30 = vsel %vm93_vm0, %v5714_v49, 0.0 }
0x2bc8   :  { %5721 = vadd.xlane.f32.xlu0 %v5720_v30  ;;  %v5717_v54 = vsel %vm93_vm0, %v5713_v21, 0.0 }
0x2bc9   :  { %5718 = vadd.xlane.f32.xlu1 %v5717_v54 }
0x2c55   :  { %v5722_v57 = vpop.xlane.xlu0 %5721 }
0x2c56   :  { %v5724_v33 = vmul.f32 0.03125, %v5722_v57  ;;  %v5719_v58 = vpop.xlane.xlu1 %5718 }
0x2c57   :  { %v5723_v60 = vmul.f32 0.03125, %v5719_v58 }
0x2c58   :  { %v5726_v63 = vsub.f32 %v5714_v49, %v5724_v33 }
0x2c59   :  { %v5725_v36 = vsub.f32 %v5713_v21, %v5723_v60 }
0x2c5a   :  { %v5728_v0 = vmul.f32 %v5726_v63, %v5726_v63 }
0x2c5b   :  { %v5727_v1 = vmul.f32 %v5725_v36, %v5725_v36 }
0x2c5c   :  { %v5732_v2 = vsel %vm93_vm0, %v5728_v0, 0.0 }
0x2c5d   :  { %5733 = vadd.xlane.f32.xlu0 %v5732_v2  ;;  %v5729_v7 = vsel %vm93_vm0, %v5727_v1, 0.0 }
0x2c5e   :  { %5730 = vadd.xlane.f32.xlu1 %v5729_v7 }
0x2cea   :  { %v5734_v13 = vpop.xlane.xlu0 %5733 }
0x2ceb   :  { %v5736_v25 = vmul.f32 0.03125, %v5734_v13  ;;  %v5731_v9 = vpop.xlane.xlu1 %5730 }
0x2cec   :  { %v5735_v6 = vmul.f32 0.03125, %v5731_v9 }
0x2ced   :  { %v5738_v11 = vadd.f32 1e-05, %v5736_v25 }
0x2cee   :  { %v5737_v26 = vadd.f32 1e-05, %v5735_v6 }
0x2cef   :  { %7769 = vrsqrt.f32 %v5738_v11 }
0x2cf0   :  { %7771 = vrsqrt.f32 %v5737_v26 }
0x2cf9   :  { %v7770_v12 = vpop.eup %7769 }
0x2cfa   :  { %v7772_v16 = vpop.eup %7771  ;;  %v5742_v17 = vmul.f32 %v7770_v12, %v5726_v63 }
0x2cfb   :  { %v5741_v22 = vmul.f32 %v7772_v16, %v5725_v36 }
0x2cfc   :  { %v5748_v28 = vmul.f32 %v6070_v15, %v5742_v17 }
0x2cfd   :  { %v5747_v31 = vmul.f32 %v6070_v15, %v5741_v22 }
0x2cfe   :  { %v5754_v5 = vadd.f32 %v6071_v24, %v5748_v28 }
0x2cff   :  { %v5753_v32 = vadd.f32 %v6071_v24, %v5747_v31 }
0x2d01   :  { %6993 = vmatprep.mubr.msk.f32.mxu1 %vm93_vm0, %v5753_v32 }
0x2d02   :  { %6994 = vmatmul.mubr.msk.f32.vlgmr.msra.gmra.mrb[78].mxu1 %vm93_vm0, %v5754_v5 }
0x2dd5   :  { %v6995_v53 = vpop.f32.mrb[78].mxu1 }
0x2dd6   :  { %v5842_v50 = vadd.f32 %v6995_v53, %v6072_v51  ;;  %v5836_v38 = vpop.f32.mrb[79].mxu1 }
0x2dd7   :  { %v5837_v19 = vadd.f32 %v6072_v51, %v5836_v38 }
0x2dd8   :  { %5846 = vst [vmem:[#allocation5 + $0x8] sm:$0xff] %v5842_v50 }
0x2dd9   :  { %5845 = vst [vmem:[#allocation5] sm:$0xff] %v5837_v19 }
0x2dda   :  { %7806 = shalt.err (!%p7803_p12)
}
0x2ddb   :  { %s7807_s9 = scalar_lea.hbm %s8649_s2, 256 }
0x2ddc   :  { %p7808_p13 = scmp.ne.s32.totalorder %s8649_s2, %s7807_s9  ;;  %p7811_p0 = scmp.lt.u32.totalorder %s7807_s9, %s8649_s2 }
0x2dde   :  { %p7813_p1 = pnand %p7811_p0, %p7808_p13 }
0x2de0   :  { %7816 = shalt.err (!%p7813_p1)
}
0x2de1   :  { %5858 = dma.vmem_to_hbm [thread:$0]  %s5853_s5, 256, %s8649_s2, [#allocation4], %s7822_s19, %s7822_s19, %s7823_s20  }
0x2de2   :  { %7819 = dma.done.wait [#allocation4], 256  }
0x2de3   :  { %7820 = vsyncadd [#allocation4], 4294967040 }
0x2de4   :  { %5862 = vsyncpa [#allocation3], 1 }
0x2de5   :  { %5863 = vsyncpa [#allocation4], 1 }

</bundles_post_ra>
